<compile_context>
chip_gen: v7x
topology: tpu7x:2x2x1
jax: 0.10.0
libtpu: 0.0.40
codegen_flags: <defaults>
</compile_context>

<pallas_src>
import jax
import jax.numpy as jnp
from jax.experimental import pallas as pl
from jax.experimental.pallas import tpu as pltpu


def _make_psconv_kernel(k, Cin, C4, C2, Ho, Wo, Hc, Wc):
    # SMEM offsets for the flat branch-parameter vector.
    n_wb = k * Cin * C4
    OFF_WCW = 0                      # (k, Cin, C4) row-major
    OFF_WCH = OFF_WCW + n_wb         # (k, Cin, C4) row-major
    OFF_BW = OFF_WCH + n_wb          # (C4,)
    OFF_BH = OFF_BW + C4             # (C4,)

    Hw, Ww = Ho + 1, Wo + k          # merged (1,k)-branch plane size
    Hh, Wh = Ho + k, Wo + 1          # merged (k,1)-branch plane size
    L = C2 * Wc                      # lane width of the packed cat accumulator

    def silu(v):
        # Exact sigmoid via tanh -> single EUP op, off the binding VALU slot.
        return v * (0.5 * jnp.tanh(0.5 * v) + 0.5)

    def kernel(x_ref, p_ref, w_ref, o_ref):
        # x_ref: (Cin, Hp, Wp) symmetric k-padded image, H sublanes / W lanes.
        # p_ref: flat f32 SMEM vector (branch weights + folded-BN biases).
        # w_ref: (4*C2 + 1, C2*Wc) VMEM table; row (a*2+b)*C2 + cat_in holds
        #        wcat[a,b,cat_in,co] replicated over the Wc lanes of output-
        #        channel block co; last row is the folded-BN cat bias.
        # o_ref: (Hc, C2*Wc) lane-dense output block (channel-blocked lanes).
        planes = [x_ref[ci] for ci in range(Cin)]

        def branch(w_off, b_off, row0, col0, taps_along_w, Hm, Wm):
            # 1-D conv (k taps) over all input channels, merged for both
            # asymmetric-pad variants of the branch; SMEM-scalar weights.
            acc = [jnp.zeros((Hm, Wm), jnp.float32) for _ in range(C4)]
            for t in range(k):
                r0 = row0 + (0 if taps_along_w else t)
                c0 = col0 + (t if taps_along_w else 0)
                for ci in range(Cin):
                    win = jax.lax.slice(planes[ci], (r0, c0), (r0 + Hm, c0 + Wm))
                    for co in range(C4):
                        w = p_ref[w_off + (t * Cin + ci) * C4 + co]
                        acc[co] = acc[co] + w * win
            return [silu(acc[co] + p_ref[b_off + co]) for co in range(C4)]

        # Merged (1,k) "cw" branch:
        #   yw0 = zw[0:Ho, 0:Wo]       <-> ZeroPad2d((k,0,1,0))
        #   yw1 = zw[1:Ho+1, k:k+Wo]   <-> ZeroPad2d((0,k,0,1))
        zw = branch(OFF_WCW, OFF_BW, k - 1, 0, True, Hw, Ww)
        # Merged (k,1) "ch" branch:
        #   yh0 = zh[0:Ho, 1:1+Wo]     <-> ZeroPad2d((0,1,k,0))
        #   yh1 = zh[k:k+Ho, 0:Wo]     <-> ZeroPad2d((1,0,0,k))
        zh = branch(OFF_WCH, OFF_BH, 0, k - 1, False, Hh, Wh)

        # 2x2 "cat" conv over the virtual concat [yw0, yw1, yh0, yh1], with all
        # C2 output channels packed along lanes.  One (Hc+1, Wc) slice + lane
        # tile per (view, ci, column-tap); both row taps reuse it.
        views = ((zw, 0, 0), (zw, 1, k), (zh, 0, 1), (zh, k, 0))
        accs = []
        for g, (src, gr, gc) in enumerate(views):
            acc_g = jnp.zeros((Hc, L), jnp.float32)
            for ci in range(C4):
                cat_in = g * C4 + ci
                for b in range(2):
                    win = jax.lax.slice(src[ci], (gr, gc + b),
                                        (gr + Hc + 1, gc + b + Wc))  # (Hc+1, Wc)
                    tiled = jnp.concatenate([win] * C2, axis=1)      # (Hc+1, L)
                    for a in range(2):
                        wrow = w_ref[(a * 2 + b) * C2 + cat_in]      # (L,)
                        acc_g = acc_g + wrow * jax.lax.slice(
                            tiled, (a, 0), (a + Hc, L))
            accs.append(acc_g)
        acc2 = (accs[0] + accs[1]) + (accs[2] + accs[3]) + w_ref[4 * C2]
        o_ref[...] = silu(acc2).astype(o_ref.dtype)                  # 2 full vregs

    return kernel


def psconv_pallas(x_nchw, params, *, k, s):
    assert s == 1, "only stride 1 supported in this kernel"
    wcw, wch, wcat, bw, bh, bcat = params          # BN already folded
    x = x_nchw.astype(jnp.float32)
    N, Cin, H, W = x.shape
    C4 = wcw.shape[-1]
    C2 = wcat.shape[-1]
    Ho, Wo = H + 1, W + 1                          # per-branch output (stride 1)
    Hc, Wc = Ho - 1, Wo - 1                        # final output after 2x2 conv
    L = C2 * Wc
    Hp, Wp = H + 2 * k, W + 2 * k
    xp = jnp.pad(x, ((0, 0), (0, 0), (k, k), (k, k)))

    # Branch weights / biases as one flat f32 SMEM scalar vector (52 floats).
    pflat = jnp.concatenate([
        wcw.reshape(-1), wch.reshape(-1), bw.reshape(-1), bh.reshape(-1),
    ]).astype(jnp.float32)

    # Lane-replicated cat-conv weight table.  Row (a*2+b)*C2 + cat_in has
    # wcat[a,b,cat_in,co] repeated over the Wc lanes of channel block co;
    # the final row is the cat bias in the same lane layout.
    wrows = jnp.repeat(wcat.reshape(4 * C2, C2).astype(jnp.float32), Wc, axis=1)
    brow = jnp.repeat(bcat.reshape(C2).astype(jnp.float32), Wc)[None, :]
    wtab = jnp.concatenate([wrows, brow], axis=0)            # (4*C2+1, L)

    kernel = _make_psconv_kernel(k, Cin, C4, C2, Ho, Wo, Hc, Wc)
    out = pl.pallas_call(
        kernel,
        out_shape=jax.ShapeDtypeStruct((N, Hc, L), jnp.float32),
        grid=(N,),
        in_specs=[
            pl.BlockSpec((None, Cin, Hp, Wp), lambda n: (n, 0, 0, 0)),
            pl.BlockSpec(memory_space=pltpu.MemorySpace.SMEM),
            pl.BlockSpec((4 * C2 + 1, L), lambda n: (0, 0)),
        ],
        out_specs=pl.BlockSpec((None, Hc, L), lambda n: (n, 0, 0)),
        compiler_params=pltpu.CompilerParams(dimension_semantics=("parallel",)),
    )(xp, pflat, wtab)
    # Un-interleave the channel-blocked lanes: (N, Hc, C2*Wc) -> (N, C2, Hc, Wc).
    return out.reshape(N, Hc, C2, Wc).transpose(0, 2, 1, 3)


def make_params(key, c1, c2, k):
    """Deterministic synthetic parameters; BN (inference mode) folded into convs."""
    C4 = c2 // 4
    k1, k2, k3 = jax.random.split(key, 3)
    w_cw = jax.random.normal(k1, (k, c1, C4), jnp.float32) * 0.1       # (kw, cin, cout)
    w_ch = jax.random.normal(k2, (k, c1, C4), jnp.float32) * 0.1       # (kh, cin, cout)
    w_cat = jax.random.normal(k3, (2, 2, c2, c2), jnp.float32) * 0.1   # HWIO

    def bn(c, base):
        gamma = 1.0 + 0.05 * jnp.arange(c, dtype=jnp.float32)
        beta = 0.02 * jnp.arange(c, dtype=jnp.float32) - 0.01 * base
        mean = 0.01 * jnp.arange(c, dtype=jnp.float32)
        var = 1.0 + 0.03 * jnp.arange(c, dtype=jnp.float32)
        scale = gamma / jnp.sqrt(var + 1e-5)
        bias = beta - mean * scale
        return scale, bias

    sw, bw = bn(C4, 1.0)
    sh, bh = bn(C4, 2.0)
    sc, bc = bn(c2, 3.0)
    wcw_f = w_cw * sw[None, None, :]
    wch_f = w_ch * sh[None, None, :]
    wcat_f = w_cat * sc[None, None, None, :]
    return (wcw_f, wch_f, wcat_f,
            bw.reshape(1, 1, C4), bh.reshape(1, 1, C4), bc.reshape(1, 1, c2))


def ref_psconv(x_nchw, params, *, k, s):
    """Pure-JAX reference of the PyTorch forward (NCHW in/out)."""
    wcw, wch, wcat, bw, bh, bcat = params
    x = jnp.transpose(x_nchw, (0, 2, 3, 1)).astype(jnp.float32)
    dn = ('NHWC', 'HWIO', 'NHWC')
    hi = jax.lax.Precision.HIGHEST

    def conv(inp, w, bias):
        y = jax.lax.conv_general_dilated(inp, w, (s, s), 'VALID',
                                         dimension_numbers=dn, precision=hi)
        return jax.nn.silu(y + bias)

    def pad(inp, l, r, t, b):   # ZeroPad2d((l, r, t, b))
        return jnp.pad(inp, ((0, 0), (t, b), (l, r), (0, 0)))

    yw0 = conv(pad(x, k, 0, 1, 0), wcw[None], bw)
    yw1 = conv(pad(x, 0, k, 0, 1), wcw[None], bw)
    yh0 = conv(pad(x, 0, 1, k, 0), wch[:, None], bh)
    yh1 = conv(pad(x, 1, 0, 0, k), wch[:, None], bh)
    y = jnp.concatenate([yw0, yw1, yh0, yh1], axis=-1)
    out = conv(y, wcat, bcat)
    return jnp.transpose(out, (0, 3, 1, 2))


if __name__ == "__main__":
    c1, c2, k, s = 4, 8, 3, 1
    N, H, W = 2, 16, 16

    key = jax.random.PRNGKey(0)
    kx, kp = jax.random.split(key)
    x = jax.random.normal(kx, (N, c1, H, W), jnp.float32)   # NCHW, like PyTorch
    params = make_params(kp, c1, c2, k)

    out = psconv_pallas(x, params, k=k, s=s)
    out = jax.block_until_ready(out)

    ref = ref_psconv(x, params, k=k, s=s)
    assert out.shape == ref.shape == (N, c2, H, W), (out.shape, ref.shape)
    err = float(jnp.max(jnp.abs(out - ref)))
    assert err < 1e-4, f"max abs err {err}"
    print("KERNEL_OK")
</pallas_src>

<mosaic_0001>
module attributes {stable_mosaic.version = 11 : i64} {
  func.func @kernel(%arg0: i32, %arg1: memref<1x4x22x22xf32, #tpu.memory_space<vmem>>, %arg2: memref<52xf32, #tpu.memory_space<smem>>, %arg3: memref<33x128xf32, #tpu.memory_space<vmem>>, %arg4: memref<1x16x128xf32, #tpu.memory_space<vmem>>) attributes {dimension_semantics = [#tpu.dimension_semantics<parallel>], iteration_bounds = array<i64: 2>, scalar_prefetch = 0 : i64, scratch_operands = 0 : i64, tpu.core_type = #tpu.core_type<tc>, window_params = [{transform_indices = @transform_0, window_bounds = array<i64: 1, 4, 22, 22>}, {transform_indices = @transform_1, window_bounds = array<i64: 52>}, {pipeline_mode = #tpu.pipeline_mode<synchronous>, transform_indices = @transform_2, window_bounds = array<i64: 33, 128>}, {transform_indices = @transform_3, window_bounds = array<i64: 1, 16, 128>}]} {
    %c0 = arith.constant 0 : index
    %c0_0 = arith.constant 0 : index
    %c0_1 = arith.constant 0 : index
    %c0_2 = arith.constant 0 : index
    %0 = vector.load %arg1[%c0, %c0_0, %c0_1, %c0_2] : memref<1x4x22x22xf32, #tpu.memory_space<vmem>>, vector<1x1x22x22xf32>
    %1 = vector.shape_cast %0 : vector<1x1x22x22xf32> to vector<22x22xf32>
    %c0_3 = arith.constant 0 : index
    %c1 = arith.constant 1 : index
    %c0_4 = arith.constant 0 : index
    %c0_5 = arith.constant 0 : index
    %2 = vector.load %arg1[%c0_3, %c1, %c0_4, %c0_5] : memref<1x4x22x22xf32, #tpu.memory_space<vmem>>, vector<1x1x22x22xf32>
    %3 = vector.shape_cast %2 : vector<1x1x22x22xf32> to vector<22x22xf32>
    %c0_6 = arith.constant 0 : index
    %c2 = arith.constant 2 : index
    %c0_7 = arith.constant 0 : index
    %c0_8 = arith.constant 0 : index
    %4 = vector.load %arg1[%c0_6, %c2, %c0_7, %c0_8] : memref<1x4x22x22xf32, #tpu.memory_space<vmem>>, vector<1x1x22x22xf32>
    %5 = vector.shape_cast %4 : vector<1x1x22x22xf32> to vector<22x22xf32>
    %c0_9 = arith.constant 0 : index
    %c3 = arith.constant 3 : index
    %c0_10 = arith.constant 0 : index
    %c0_11 = arith.constant 0 : index
    %6 = vector.load %arg1[%c0_9, %c3, %c0_10, %c0_11] : memref<1x4x22x22xf32, #tpu.memory_space<vmem>>, vector<1x1x22x22xf32>
    %7 = vector.shape_cast %6 : vector<1x1x22x22xf32> to vector<22x22xf32>
    %cst = arith.constant 0.000000e+00 : f32
    %8 = vector.broadcast %cst : f32 to vector<18x20xf32>
    %cst_12 = arith.constant 0.000000e+00 : f32
    %9 = vector.broadcast %cst_12 : f32 to vector<18x20xf32>
    %10 = vector.extract_strided_slice %1 {offsets = [2, 0], sizes = [18, 20], strides = [1, 1]} : vector<22x22xf32> to vector<18x20xf32>
    %c0_13 = arith.constant 0 : index
    %11 = memref.load %arg2[%c0_13] : memref<52xf32, #tpu.memory_space<smem>>
    %12 = vector.broadcast %11 : f32 to vector<18x20xf32>
    %13 = arith.mulf %12, %10 : vector<18x20xf32>
    %14 = arith.addf %8, %13 : vector<18x20xf32>
    %c1_14 = arith.constant 1 : index
    %15 = memref.load %arg2[%c1_14] : memref<52xf32, #tpu.memory_space<smem>>
    %16 = vector.broadcast %15 : f32 to vector<18x20xf32>
    %17 = arith.mulf %16, %10 : vector<18x20xf32>
    %18 = arith.addf %9, %17 : vector<18x20xf32>
    %19 = vector.extract_strided_slice %3 {offsets = [2, 0], sizes = [18, 20], strides = [1, 1]} : vector<22x22xf32> to vector<18x20xf32>
    %c2_15 = arith.constant 2 : index
    %20 = memref.load %arg2[%c2_15] : memref<52xf32, #tpu.memory_space<smem>>
    %21 = vector.broadcast %20 : f32 to vector<18x20xf32>
    %22 = arith.mulf %21, %19 : vector<18x20xf32>
    %23 = arith.addf %14, %22 : vector<18x20xf32>
    %c3_16 = arith.constant 3 : index
    %24 = memref.load %arg2[%c3_16] : memref<52xf32, #tpu.memory_space<smem>>
    %25 = vector.broadcast %24 : f32 to vector<18x20xf32>
    %26 = arith.mulf %25, %19 : vector<18x20xf32>
    %27 = arith.addf %18, %26 : vector<18x20xf32>
    %28 = vector.extract_strided_slice %5 {offsets = [2, 0], sizes = [18, 20], strides = [1, 1]} : vector<22x22xf32> to vector<18x20xf32>
    %c4 = arith.constant 4 : index
    %29 = memref.load %arg2[%c4] : memref<52xf32, #tpu.memory_space<smem>>
    %30 = vector.broadcast %29 : f32 to vector<18x20xf32>
    %31 = arith.mulf %30, %28 : vector<18x20xf32>
    %32 = arith.addf %23, %31 : vector<18x20xf32>
    %c5 = arith.constant 5 : index
    %33 = memref.load %arg2[%c5] : memref<52xf32, #tpu.memory_space<smem>>
    %34 = vector.broadcast %33 : f32 to vector<18x20xf32>
    %35 = arith.mulf %34, %28 : vector<18x20xf32>
    %36 = arith.addf %27, %35 : vector<18x20xf32>
    %37 = vector.extract_strided_slice %7 {offsets = [2, 0], sizes = [18, 20], strides = [1, 1]} : vector<22x22xf32> to vector<18x20xf32>
    %c6 = arith.constant 6 : index
    %38 = memref.load %arg2[%c6] : memref<52xf32, #tpu.memory_space<smem>>
    %39 = vector.broadcast %38 : f32 to vector<18x20xf32>
    %40 = arith.mulf %39, %37 : vector<18x20xf32>
    %41 = arith.addf %32, %40 : vector<18x20xf32>
    %c7 = arith.constant 7 : index
    %42 = memref.load %arg2[%c7] : memref<52xf32, #tpu.memory_space<smem>>
    %43 = vector.broadcast %42 : f32 to vector<18x20xf32>
    %44 = arith.mulf %43, %37 : vector<18x20xf32>
    %45 = arith.addf %36, %44 : vector<18x20xf32>
    %46 = vector.extract_strided_slice %1 {offsets = [2, 1], sizes = [18, 20], strides = [1, 1]} : vector<22x22xf32> to vector<18x20xf32>
    %c8 = arith.constant 8 : index
    %47 = memref.load %arg2[%c8] : memref<52xf32, #tpu.memory_space<smem>>
    %48 = vector.broadcast %47 : f32 to vector<18x20xf32>
    %49 = arith.mulf %48, %46 : vector<18x20xf32>
    %50 = arith.addf %41, %49 : vector<18x20xf32>
    %c9 = arith.constant 9 : index
    %51 = memref.load %arg2[%c9] : memref<52xf32, #tpu.memory_space<smem>>
    %52 = vector.broadcast %51 : f32 to vector<18x20xf32>
    %53 = arith.mulf %52, %46 : vector<18x20xf32>
    %54 = arith.addf %45, %53 : vector<18x20xf32>
    %55 = vector.extract_strided_slice %3 {offsets = [2, 1], sizes = [18, 20], strides = [1, 1]} : vector<22x22xf32> to vector<18x20xf32>
    %c10 = arith.constant 10 : index
    %56 = memref.load %arg2[%c10] : memref<52xf32, #tpu.memory_space<smem>>
    %57 = vector.broadcast %56 : f32 to vector<18x20xf32>
    %58 = arith.mulf %57, %55 : vector<18x20xf32>
    %59 = arith.addf %50, %58 : vector<18x20xf32>
    %c11 = arith.constant 11 : index
    %60 = memref.load %arg2[%c11] : memref<52xf32, #tpu.memory_space<smem>>
    %61 = vector.broadcast %60 : f32 to vector<18x20xf32>
    %62 = arith.mulf %61, %55 : vector<18x20xf32>
    %63 = arith.addf %54, %62 : vector<18x20xf32>
    %64 = vector.extract_strided_slice %5 {offsets = [2, 1], sizes = [18, 20], strides = [1, 1]} : vector<22x22xf32> to vector<18x20xf32>
    %c12 = arith.constant 12 : index
    %65 = memref.load %arg2[%c12] : memref<52xf32, #tpu.memory_space<smem>>
    %66 = vector.broadcast %65 : f32 to vector<18x20xf32>
    %67 = arith.mulf %66, %64 : vector<18x20xf32>
    %68 = arith.addf %59, %67 : vector<18x20xf32>
    %c13 = arith.constant 13 : index
    %69 = memref.load %arg2[%c13] : memref<52xf32, #tpu.memory_space<smem>>
    %70 = vector.broadcast %69 : f32 to vector<18x20xf32>
    %71 = arith.mulf %70, %64 : vector<18x20xf32>
    %72 = arith.addf %63, %71 : vector<18x20xf32>
    %73 = vector.extract_strided_slice %7 {offsets = [2, 1], sizes = [18, 20], strides = [1, 1]} : vector<22x22xf32> to vector<18x20xf32>
    %c14 = arith.constant 14 : index
    %74 = memref.load %arg2[%c14] : memref<52xf32, #tpu.memory_space<smem>>
    %75 = vector.broadcast %74 : f32 to vector<18x20xf32>
    %76 = arith.mulf %75, %73 : vector<18x20xf32>
    %77 = arith.addf %68, %76 : vector<18x20xf32>
    %c15 = arith.constant 15 : index
    %78 = memref.load %arg2[%c15] : memref<52xf32, #tpu.memory_space<smem>>
    %79 = vector.broadcast %78 : f32 to vector<18x20xf32>
    %80 = arith.mulf %79, %73 : vector<18x20xf32>
    %81 = arith.addf %72, %80 : vector<18x20xf32>
    %82 = vector.extract_strided_slice %1 {offsets = [2, 2], sizes = [18, 20], strides = [1, 1]} : vector<22x22xf32> to vector<18x20xf32>
    %c16 = arith.constant 16 : index
    %83 = memref.load %arg2[%c16] : memref<52xf32, #tpu.memory_space<smem>>
    %84 = vector.broadcast %83 : f32 to vector<18x20xf32>
    %85 = arith.mulf %84, %82 : vector<18x20xf32>
    %86 = arith.addf %77, %85 : vector<18x20xf32>
    %c17 = arith.constant 17 : index
    %87 = memref.load %arg2[%c17] : memref<52xf32, #tpu.memory_space<smem>>
    %88 = vector.broadcast %87 : f32 to vector<18x20xf32>
    %89 = arith.mulf %88, %82 : vector<18x20xf32>
    %90 = arith.addf %81, %89 : vector<18x20xf32>
    %91 = vector.extract_strided_slice %3 {offsets = [2, 2], sizes = [18, 20], strides = [1, 1]} : vector<22x22xf32> to vector<18x20xf32>
    %c18 = arith.constant 18 : index
    %92 = memref.load %arg2[%c18] : memref<52xf32, #tpu.memory_space<smem>>
    %93 = vector.broadcast %92 : f32 to vector<18x20xf32>
    %94 = arith.mulf %93, %91 : vector<18x20xf32>
    %95 = arith.addf %86, %94 : vector<18x20xf32>
    %c19 = arith.constant 19 : index
    %96 = memref.load %arg2[%c19] : memref<52xf32, #tpu.memory_space<smem>>
    %97 = vector.broadcast %96 : f32 to vector<18x20xf32>
    %98 = arith.mulf %97, %91 : vector<18x20xf32>
    %99 = arith.addf %90, %98 : vector<18x20xf32>
    %100 = vector.extract_strided_slice %5 {offsets = [2, 2], sizes = [18, 20], strides = [1, 1]} : vector<22x22xf32> to vector<18x20xf32>
    %c20 = arith.constant 20 : index
    %101 = memref.load %arg2[%c20] : memref<52xf32, #tpu.memory_space<smem>>
    %102 = vector.broadcast %101 : f32 to vector<18x20xf32>
    %103 = arith.mulf %102, %100 : vector<18x20xf32>
    %104 = arith.addf %95, %103 : vector<18x20xf32>
    %c21 = arith.constant 21 : index
    %105 = memref.load %arg2[%c21] : memref<52xf32, #tpu.memory_space<smem>>
    %106 = vector.broadcast %105 : f32 to vector<18x20xf32>
    %107 = arith.mulf %106, %100 : vector<18x20xf32>
    %108 = arith.addf %99, %107 : vector<18x20xf32>
    %109 = vector.extract_strided_slice %7 {offsets = [2, 2], sizes = [18, 20], strides = [1, 1]} : vector<22x22xf32> to vector<18x20xf32>
    %c22 = arith.constant 22 : index
    %110 = memref.load %arg2[%c22] : memref<52xf32, #tpu.memory_space<smem>>
    %111 = vector.broadcast %110 : f32 to vector<18x20xf32>
    %112 = arith.mulf %111, %109 : vector<18x20xf32>
    %113 = arith.addf %104, %112 : vector<18x20xf32>
    %c23 = arith.constant 23 : index
    %114 = memref.load %arg2[%c23] : memref<52xf32, #tpu.memory_space<smem>>
    %115 = vector.broadcast %114 : f32 to vector<18x20xf32>
    %116 = arith.mulf %115, %109 : vector<18x20xf32>
    %117 = arith.addf %108, %116 : vector<18x20xf32>
    %c48 = arith.constant 48 : index
    %118 = memref.load %arg2[%c48] : memref<52xf32, #tpu.memory_space<smem>>
    %119 = vector.broadcast %118 : f32 to vector<18x20xf32>
    %120 = arith.addf %113, %119 : vector<18x20xf32>
    %cst_17 = arith.constant 5.000000e-01 : f32
    %121 = vector.broadcast %cst_17 : f32 to vector<18x20xf32>
    %122 = arith.mulf %121, %120 : vector<18x20xf32>
    %123 = math.tanh %122 : vector<18x20xf32>
    %cst_18 = arith.constant 5.000000e-01 : f32
    %124 = vector.broadcast %cst_18 : f32 to vector<18x20xf32>
    %125 = arith.mulf %124, %123 : vector<18x20xf32>
    %cst_19 = arith.constant 5.000000e-01 : f32
    %126 = vector.broadcast %cst_19 : f32 to vector<18x20xf32>
    %127 = arith.addf %125, %126 : vector<18x20xf32>
    %128 = arith.mulf %120, %127 : vector<18x20xf32>
    %c49 = arith.constant 49 : index
    %129 = memref.load %arg2[%c49] : memref<52xf32, #tpu.memory_space<smem>>
    %130 = vector.broadcast %129 : f32 to vector<18x20xf32>
    %131 = arith.addf %117, %130 : vector<18x20xf32>
    %cst_20 = arith.constant 5.000000e-01 : f32
    %132 = vector.broadcast %cst_20 : f32 to vector<18x20xf32>
    %133 = arith.mulf %132, %131 : vector<18x20xf32>
    %134 = math.tanh %133 : vector<18x20xf32>
    %cst_21 = arith.constant 5.000000e-01 : f32
    %135 = vector.broadcast %cst_21 : f32 to vector<18x20xf32>
    %136 = arith.mulf %135, %134 : vector<18x20xf32>
    %cst_22 = arith.constant 5.000000e-01 : f32
    %137 = vector.broadcast %cst_22 : f32 to vector<18x20xf32>
    %138 = arith.addf %136, %137 : vector<18x20xf32>
    %139 = arith.mulf %131, %138 : vector<18x20xf32>
    %cst_23 = arith.constant 0.000000e+00 : f32
    %140 = vector.broadcast %cst_23 : f32 to vector<20x18xf32>
    %cst_24 = arith.constant 0.000000e+00 : f32
    %141 = vector.broadcast %cst_24 : f32 to vector<20x18xf32>
    %142 = vector.extract_strided_slice %1 {offsets = [0, 2], sizes = [20, 18], strides = [1, 1]} : vector<22x22xf32> to vector<20x18xf32>
    %c24 = arith.constant 24 : index
    %143 = memref.load %arg2[%c24] : memref<52xf32, #tpu.memory_space<smem>>
    %144 = vector.broadcast %143 : f32 to vector<20x18xf32>
    %145 = arith.mulf %144, %142 : vector<20x18xf32>
    %146 = arith.addf %140, %145 : vector<20x18xf32>
    %c25 = arith.constant 25 : index
    %147 = memref.load %arg2[%c25] : memref<52xf32, #tpu.memory_space<smem>>
    %148 = vector.broadcast %147 : f32 to vector<20x18xf32>
    %149 = arith.mulf %148, %142 : vector<20x18xf32>
    %150 = arith.addf %141, %149 : vector<20x18xf32>
    %151 = vector.extract_strided_slice %3 {offsets = [0, 2], sizes = [20, 18], strides = [1, 1]} : vector<22x22xf32> to vector<20x18xf32>
    %c26 = arith.constant 26 : index
    %152 = memref.load %arg2[%c26] : memref<52xf32, #tpu.memory_space<smem>>
    %153 = vector.broadcast %152 : f32 to vector<20x18xf32>
    %154 = arith.mulf %153, %151 : vector<20x18xf32>
    %155 = arith.addf %146, %154 : vector<20x18xf32>
    %c27 = arith.constant 27 : index
    %156 = memref.load %arg2[%c27] : memref<52xf32, #tpu.memory_space<smem>>
    %157 = vector.broadcast %156 : f32 to vector<20x18xf32>
    %158 = arith.mulf %157, %151 : vector<20x18xf32>
    %159 = arith.addf %150, %158 : vector<20x18xf32>
    %160 = vector.extract_strided_slice %5 {offsets = [0, 2], sizes = [20, 18], strides = [1, 1]} : vector<22x22xf32> to vector<20x18xf32>
    %c28 = arith.constant 28 : index
    %161 = memref.load %arg2[%c28] : memref<52xf32, #tpu.memory_space<smem>>
    %162 = vector.broadcast %161 : f32 to vector<20x18xf32>
    %163 = arith.mulf %162, %160 : vector<20x18xf32>
    %164 = arith.addf %155, %163 : vector<20x18xf32>
    %c29 = arith.constant 29 : index
    %165 = memref.load %arg2[%c29] : memref<52xf32, #tpu.memory_space<smem>>
    %166 = vector.broadcast %165 : f32 to vector<20x18xf32>
    %167 = arith.mulf %166, %160 : vector<20x18xf32>
    %168 = arith.addf %159, %167 : vector<20x18xf32>
    %169 = vector.extract_strided_slice %7 {offsets = [0, 2], sizes = [20, 18], strides = [1, 1]} : vector<22x22xf32> to vector<20x18xf32>
    %c30 = arith.constant 30 : index
    %170 = memref.load %arg2[%c30] : memref<52xf32, #tpu.memory_space<smem>>
    %171 = vector.broadcast %170 : f32 to vector<20x18xf32>
    %172 = arith.mulf %171, %169 : vector<20x18xf32>
    %173 = arith.addf %164, %172 : vector<20x18xf32>
    %c31 = arith.constant 31 : index
    %174 = memref.load %arg2[%c31] : memref<52xf32, #tpu.memory_space<smem>>
    %175 = vector.broadcast %174 : f32 to vector<20x18xf32>
    %176 = arith.mulf %175, %169 : vector<20x18xf32>
    %177 = arith.addf %168, %176 : vector<20x18xf32>
    %178 = vector.extract_strided_slice %1 {offsets = [1, 2], sizes = [20, 18], strides = [1, 1]} : vector<22x22xf32> to vector<20x18xf32>
    %c32 = arith.constant 32 : index
    %179 = memref.load %arg2[%c32] : memref<52xf32, #tpu.memory_space<smem>>
    %180 = vector.broadcast %179 : f32 to vector<20x18xf32>
    %181 = arith.mulf %180, %178 : vector<20x18xf32>
    %182 = arith.addf %173, %181 : vector<20x18xf32>
    %c33 = arith.constant 33 : index
    %183 = memref.load %arg2[%c33] : memref<52xf32, #tpu.memory_space<smem>>
    %184 = vector.broadcast %183 : f32 to vector<20x18xf32>
    %185 = arith.mulf %184, %178 : vector<20x18xf32>
    %186 = arith.addf %177, %185 : vector<20x18xf32>
    %187 = vector.extract_strided_slice %3 {offsets = [1, 2], sizes = [20, 18], strides = [1, 1]} : vector<22x22xf32> to vector<20x18xf32>
    %c34 = arith.constant 34 : index
    %188 = memref.load %arg2[%c34] : memref<52xf32, #tpu.memory_space<smem>>
    %189 = vector.broadcast %188 : f32 to vector<20x18xf32>
    %190 = arith.mulf %189, %187 : vector<20x18xf32>
    %191 = arith.addf %182, %190 : vector<20x18xf32>
    %c35 = arith.constant 35 : index
    %192 = memref.load %arg2[%c35] : memref<52xf32, #tpu.memory_space<smem>>
    %193 = vector.broadcast %192 : f32 to vector<20x18xf32>
    %194 = arith.mulf %193, %187 : vector<20x18xf32>
    %195 = arith.addf %186, %194 : vector<20x18xf32>
    %196 = vector.extract_strided_slice %5 {offsets = [1, 2], sizes = [20, 18], strides = [1, 1]} : vector<22x22xf32> to vector<20x18xf32>
    %c36 = arith.constant 36 : index
    %197 = memref.load %arg2[%c36] : memref<52xf32, #tpu.memory_space<smem>>
    %198 = vector.broadcast %197 : f32 to vector<20x18xf32>
    %199 = arith.mulf %198, %196 : vector<20x18xf32>
    %200 = arith.addf %191, %199 : vector<20x18xf32>
    %c37 = arith.constant 37 : index
    %201 = memref.load %arg2[%c37] : memref<52xf32, #tpu.memory_space<smem>>
    %202 = vector.broadcast %201 : f32 to vector<20x18xf32>
    %203 = arith.mulf %202, %196 : vector<20x18xf32>
    %204 = arith.addf %195, %203 : vector<20x18xf32>
    %205 = vector.extract_strided_slice %7 {offsets = [1, 2], sizes = [20, 18], strides = [1, 1]} : vector<22x22xf32> to vector<20x18xf32>
    %c38 = arith.constant 38 : index
    %206 = memref.load %arg2[%c38] : memref<52xf32, #tpu.memory_space<smem>>
    %207 = vector.broadcast %206 : f32 to vector<20x18xf32>
    %208 = arith.mulf %207, %205 : vector<20x18xf32>
    %209 = arith.addf %200, %208 : vector<20x18xf32>
    %c39 = arith.constant 39 : index
    %210 = memref.load %arg2[%c39] : memref<52xf32, #tpu.memory_space<smem>>
    %211 = vector.broadcast %210 : f32 to vector<20x18xf32>
    %212 = arith.mulf %211, %205 : vector<20x18xf32>
    %213 = arith.addf %204, %212 : vector<20x18xf32>
    %214 = vector.extract_strided_slice %1 {offsets = [2, 2], sizes = [20, 18], strides = [1, 1]} : vector<22x22xf32> to vector<20x18xf32>
    %c40 = arith.constant 40 : index
    %215 = memref.load %arg2[%c40] : memref<52xf32, #tpu.memory_space<smem>>
    %216 = vector.broadcast %215 : f32 to vector<20x18xf32>
    %217 = arith.mulf %216, %214 : vector<20x18xf32>
    %218 = arith.addf %209, %217 : vector<20x18xf32>
    %c41 = arith.constant 41 : index
    %219 = memref.load %arg2[%c41] : memref<52xf32, #tpu.memory_space<smem>>
    %220 = vector.broadcast %219 : f32 to vector<20x18xf32>
    %221 = arith.mulf %220, %214 : vector<20x18xf32>
    %222 = arith.addf %213, %221 : vector<20x18xf32>
    %223 = vector.extract_strided_slice %3 {offsets = [2, 2], sizes = [20, 18], strides = [1, 1]} : vector<22x22xf32> to vector<20x18xf32>
    %c42 = arith.constant 42 : index
    %224 = memref.load %arg2[%c42] : memref<52xf32, #tpu.memory_space<smem>>
    %225 = vector.broadcast %224 : f32 to vector<20x18xf32>
    %226 = arith.mulf %225, %223 : vector<20x18xf32>
    %227 = arith.addf %218, %226 : vector<20x18xf32>
    %c43 = arith.constant 43 : index
    %228 = memref.load %arg2[%c43] : memref<52xf32, #tpu.memory_space<smem>>
    %229 = vector.broadcast %228 : f32 to vector<20x18xf32>
    %230 = arith.mulf %229, %223 : vector<20x18xf32>
    %231 = arith.addf %222, %230 : vector<20x18xf32>
    %232 = vector.extract_strided_slice %5 {offsets = [2, 2], sizes = [20, 18], strides = [1, 1]} : vector<22x22xf32> to vector<20x18xf32>
    %c44 = arith.constant 44 : index
    %233 = memref.load %arg2[%c44] : memref<52xf32, #tpu.memory_space<smem>>
    %234 = vector.broadcast %233 : f32 to vector<20x18xf32>
    %235 = arith.mulf %234, %232 : vector<20x18xf32>
    %236 = arith.addf %227, %235 : vector<20x18xf32>
    %c45 = arith.constant 45 : index
    %237 = memref.load %arg2[%c45] : memref<52xf32, #tpu.memory_space<smem>>
    %238 = vector.broadcast %237 : f32 to vector<20x18xf32>
    %239 = arith.mulf %238, %232 : vector<20x18xf32>
    %240 = arith.addf %231, %239 : vector<20x18xf32>
    %241 = vector.extract_strided_slice %7 {offsets = [2, 2], sizes = [20, 18], strides = [1, 1]} : vector<22x22xf32> to vector<20x18xf32>
    %c46 = arith.constant 46 : index
    %242 = memref.load %arg2[%c46] : memref<52xf32, #tpu.memory_space<smem>>
    %243 = vector.broadcast %242 : f32 to vector<20x18xf32>
    %244 = arith.mulf %243, %241 : vector<20x18xf32>
    %245 = arith.addf %236, %244 : vector<20x18xf32>
    %c47 = arith.constant 47 : index
    %246 = memref.load %arg2[%c47] : memref<52xf32, #tpu.memory_space<smem>>
    %247 = vector.broadcast %246 : f32 to vector<20x18xf32>
    %248 = arith.mulf %247, %241 : vector<20x18xf32>
    %249 = arith.addf %240, %248 : vector<20x18xf32>
    %c50 = arith.constant 50 : index
    %250 = memref.load %arg2[%c50] : memref<52xf32, #tpu.memory_space<smem>>
    %251 = vector.broadcast %250 : f32 to vector<20x18xf32>
    %252 = arith.addf %245, %251 : vector<20x18xf32>
    %cst_25 = arith.constant 5.000000e-01 : f32
    %253 = vector.broadcast %cst_25 : f32 to vector<20x18xf32>
    %254 = arith.mulf %253, %252 : vector<20x18xf32>
    %255 = math.tanh %254 : vector<20x18xf32>
    %cst_26 = arith.constant 5.000000e-01 : f32
    %256 = vector.broadcast %cst_26 : f32 to vector<20x18xf32>
    %257 = arith.mulf %256, %255 : vector<20x18xf32>
    %cst_27 = arith.constant 5.000000e-01 : f32
    %258 = vector.broadcast %cst_27 : f32 to vector<20x18xf32>
    %259 = arith.addf %257, %258 : vector<20x18xf32>
    %260 = arith.mulf %252, %259 : vector<20x18xf32>
    %c51 = arith.constant 51 : index
    %261 = memref.load %arg2[%c51] : memref<52xf32, #tpu.memory_space<smem>>
    %262 = vector.broadcast %261 : f32 to vector<20x18xf32>
    %263 = arith.addf %249, %262 : vector<20x18xf32>
    %cst_28 = arith.constant 5.000000e-01 : f32
    %264 = vector.broadcast %cst_28 : f32 to vector<20x18xf32>
    %265 = arith.mulf %264, %263 : vector<20x18xf32>
    %266 = math.tanh %265 : vector<20x18xf32>
    %cst_29 = arith.constant 5.000000e-01 : f32
    %267 = vector.broadcast %cst_29 : f32 to vector<20x18xf32>
    %268 = arith.mulf %267, %266 : vector<20x18xf32>
    %cst_30 = arith.constant 5.000000e-01 : f32
    %269 = vector.broadcast %cst_30 : f32 to vector<20x18xf32>
    %270 = arith.addf %268, %269 : vector<20x18xf32>
    %271 = arith.mulf %263, %270 : vector<20x18xf32>
    %cst_31 = arith.constant 0.000000e+00 : f32
    %272 = vector.broadcast %cst_31 : f32 to vector<16x128xf32>
    %273 = vector.extract_strided_slice %128 {offsets = [0, 0], sizes = [17, 16], strides = [1, 1]} : vector<18x20xf32> to vector<17x16xf32>
    %274 = tpu.concatenate %273, %273, %273, %273, %273, %273, %273, %273 in 1 : vector<17x16xf32>, vector<17x16xf32>, vector<17x16xf32>, vector<17x16xf32>, vector<17x16xf32>, vector<17x16xf32>, vector<17x16xf32>, vector<17x16xf32> -> vector<17x128xf32>
    %c0_32 = arith.constant 0 : index
    %c0_33 = arith.constant 0 : index
    %275 = vector.load %arg3[%c0_32, %c0_33] : memref<33x128xf32, #tpu.memory_space<vmem>>, vector<1x128xf32>
    %276 = vector.shape_cast %275 : vector<1x128xf32> to vector<128xf32>
    %277 = vector.extract_strided_slice %274 {offsets = [0, 0], sizes = [16, 128], strides = [1, 1]} : vector<17x128xf32> to vector<16x128xf32>
    %278 = vector.shape_cast %276 : vector<128xf32> to vector<1x128xf32>
    %279 = vector.broadcast %278 : vector<1x128xf32> to vector<16x128xf32>
    %280 = arith.mulf %279, %277 : vector<16x128xf32>
    %281 = arith.addf %272, %280 : vector<16x128xf32>
    %c16_34 = arith.constant 16 : index
    %c0_35 = arith.constant 0 : index
    %282 = vector.load %arg3[%c16_34, %c0_35] : memref<33x128xf32, #tpu.memory_space<vmem>>, vector<1x128xf32>
    %283 = vector.shape_cast %282 : vector<1x128xf32> to vector<128xf32>
    %284 = vector.extract_strided_slice %274 {offsets = [1, 0], sizes = [16, 128], strides = [1, 1]} : vector<17x128xf32> to vector<16x128xf32>
    %285 = vector.shape_cast %283 : vector<128xf32> to vector<1x128xf32>
    %286 = vector.broadcast %285 : vector<1x128xf32> to vector<16x128xf32>
    %287 = arith.mulf %286, %284 : vector<16x128xf32>
    %288 = arith.addf %281, %287 : vector<16x128xf32>
    %289 = vector.extract_strided_slice %128 {offsets = [0, 1], sizes = [17, 16], strides = [1, 1]} : vector<18x20xf32> to vector<17x16xf32>
    %290 = tpu.concatenate %289, %289, %289, %289, %289, %289, %289, %289 in 1 : vector<17x16xf32>, vector<17x16xf32>, vector<17x16xf32>, vector<17x16xf32>, vector<17x16xf32>, vector<17x16xf32>, vector<17x16xf32>, vector<17x16xf32> -> vector<17x128xf32>
    %c8_36 = arith.constant 8 : index
    %c0_37 = arith.constant 0 : index
    %291 = vector.load %arg3[%c8_36, %c0_37] : memref<33x128xf32, #tpu.memory_space<vmem>>, vector<1x128xf32>
    %292 = vector.shape_cast %291 : vector<1x128xf32> to vector<128xf32>
    %293 = vector.extract_strided_slice %290 {offsets = [0, 0], sizes = [16, 128], strides = [1, 1]} : vector<17x128xf32> to vector<16x128xf32>
    %294 = vector.shape_cast %292 : vector<128xf32> to vector<1x128xf32>
    %295 = vector.broadcast %294 : vector<1x128xf32> to vector<16x128xf32>
    %296 = arith.mulf %295, %293 : vector<16x128xf32>
    %297 = arith.addf %288, %296 : vector<16x128xf32>
    %c24_38 = arith.constant 24 : index
    %c0_39 = arith.constant 0 : index
    %298 = vector.load %arg3[%c24_38, %c0_39] : memref<33x128xf32, #tpu.memory_space<vmem>>, vector<1x128xf32>
    %299 = vector.shape_cast %298 : vector<1x128xf32> to vector<128xf32>
    %300 = vector.extract_strided_slice %290 {offsets = [1, 0], sizes = [16, 128], strides = [1, 1]} : vector<17x128xf32> to vector<16x128xf32>
    %301 = vector.shape_cast %299 : vector<128xf32> to vector<1x128xf32>
    %302 = vector.broadcast %301 : vector<1x128xf32> to vector<16x128xf32>
    %303 = arith.mulf %302, %300 : vector<16x128xf32>
    %304 = arith.addf %297, %303 : vector<16x128xf32>
    %305 = vector.extract_strided_slice %139 {offsets = [0, 0], sizes = [17, 16], strides = [1, 1]} : vector<18x20xf32> to vector<17x16xf32>
    %306 = tpu.concatenate %305, %305, %305, %305, %305, %305, %305, %305 in 1 : vector<17x16xf32>, vector<17x16xf32>, vector<17x16xf32>, vector<17x16xf32>, vector<17x16xf32>, vector<17x16xf32>, vector<17x16xf32>, vector<17x16xf32> -> vector<17x128xf32>
    %c1_40 = arith.constant 1 : index
    %c0_41 = arith.constant 0 : index
    %307 = vector.load %arg3[%c1_40, %c0_41] : memref<33x128xf32, #tpu.memory_space<vmem>>, vector<1x128xf32>
    %308 = vector.shape_cast %307 : vector<1x128xf32> to vector<128xf32>
    %309 = vector.extract_strided_slice %306 {offsets = [0, 0], sizes = [16, 128], strides = [1, 1]} : vector<17x128xf32> to vector<16x128xf32>
    %310 = vector.shape_cast %308 : vector<128xf32> to vector<1x128xf32>
    %311 = vector.broadcast %310 : vector<1x128xf32> to vector<16x128xf32>
    %312 = arith.mulf %311, %309 : vector<16x128xf32>
    %313 = arith.addf %304, %312 : vector<16x128xf32>
    %c17_42 = arith.constant 17 : index
    %c0_43 = arith.constant 0 : index
    %314 = vector.load %arg3[%c17_42, %c0_43] : memref<33x128xf32, #tpu.memory_space<vmem>>, vector<1x128xf32>
    %315 = vector.shape_cast %314 : vector<1x128xf32> to vector<128xf32>
    %316 = vector.extract_strided_slice %306 {offsets = [1, 0], sizes = [16, 128], strides = [1, 1]} : vector<17x128xf32> to vector<16x128xf32>
    %317 = vector.shape_cast %315 : vector<128xf32> to vector<1x128xf32>
    %318 = vector.broadcast %317 : vector<1x128xf32> to vector<16x128xf32>
    %319 = arith.mulf %318, %316 : vector<16x128xf32>
    %320 = arith.addf %313, %319 : vector<16x128xf32>
    %321 = vector.extract_strided_slice %139 {offsets = [0, 1], sizes = [17, 16], strides = [1, 1]} : vector<18x20xf32> to vector<17x16xf32>
    %322 = tpu.concatenate %321, %321, %321, %321, %321, %321, %321, %321 in 1 : vector<17x16xf32>, vector<17x16xf32>, vector<17x16xf32>, vector<17x16xf32>, vector<17x16xf32>, vector<17x16xf32>, vector<17x16xf32>, vector<17x16xf32> -> vector<17x128xf32>
    %c9_44 = arith.constant 9 : index
    %c0_45 = arith.constant 0 : index
    %323 = vector.load %arg3[%c9_44, %c0_45] : memref<33x128xf32, #tpu.memory_space<vmem>>, vector<1x128xf32>
    %324 = vector.shape_cast %323 : vector<1x128xf32> to vector<128xf32>
    %325 = vector.extract_strided_slice %322 {offsets = [0, 0], sizes = [16, 128], strides = [1, 1]} : vector<17x128xf32> to vector<16x128xf32>
    %326 = vector.shape_cast %324 : vector<128xf32> to vector<1x128xf32>
    %327 = vector.broadcast %326 : vector<1x128xf32> to vector<16x128xf32>
    %328 = arith.mulf %327, %325 : vector<16x128xf32>
    %329 = arith.addf %320, %328 : vector<16x128xf32>
    %c25_46 = arith.constant 25 : index
    %c0_47 = arith.constant 0 : index
    %330 = vector.load %arg3[%c25_46, %c0_47] : memref<33x128xf32, #tpu.memory_space<vmem>>, vector<1x128xf32>
    %331 = vector.shape_cast %330 : vector<1x128xf32> to vector<128xf32>
    %332 = vector.extract_strided_slice %322 {offsets = [1, 0], sizes = [16, 128], strides = [1, 1]} : vector<17x128xf32> to vector<16x128xf32>
    %333 = vector.shape_cast %331 : vector<128xf32> to vector<1x128xf32>
    %334 = vector.broadcast %333 : vector<1x128xf32> to vector<16x128xf32>
    %335 = arith.mulf %334, %332 : vector<16x128xf32>
    %336 = arith.addf %329, %335 : vector<16x128xf32>
    %cst_48 = arith.constant 0.000000e+00 : f32
    %337 = vector.broadcast %cst_48 : f32 to vector<16x128xf32>
    %338 = vector.extract_strided_slice %128 {offsets = [1, 3], sizes = [17, 16], strides = [1, 1]} : vector<18x20xf32> to vector<17x16xf32>
    %339 = tpu.concatenate %338, %338, %338, %338, %338, %338, %338, %338 in 1 : vector<17x16xf32>, vector<17x16xf32>, vector<17x16xf32>, vector<17x16xf32>, vector<17x16xf32>, vector<17x16xf32>, vector<17x16xf32>, vector<17x16xf32> -> vector<17x128xf32>
    %c2_49 = arith.constant 2 : index
    %c0_50 = arith.constant 0 : index
    %340 = vector.load %arg3[%c2_49, %c0_50] : memref<33x128xf32, #tpu.memory_space<vmem>>, vector<1x128xf32>
    %341 = vector.shape_cast %340 : vector<1x128xf32> to vector<128xf32>
    %342 = vector.extract_strided_slice %339 {offsets = [0, 0], sizes = [16, 128], strides = [1, 1]} : vector<17x128xf32> to vector<16x128xf32>
    %343 = vector.shape_cast %341 : vector<128xf32> to vector<1x128xf32>
    %344 = vector.broadcast %343 : vector<1x128xf32> to vector<16x128xf32>
    %345 = arith.mulf %344, %342 : vector<16x128xf32>
    %346 = arith.addf %337, %345 : vector<16x128xf32>
    %c18_51 = arith.constant 18 : index
    %c0_52 = arith.constant 0 : index
    %347 = vector.load %arg3[%c18_51, %c0_52] : memref<33x128xf32, #tpu.memory_space<vmem>>, vector<1x128xf32>
    %348 = vector.shape_cast %347 : vector<1x128xf32> to vector<128xf32>
    %349 = vector.extract_strided_slice %339 {offsets = [1, 0], sizes = [16, 128], strides = [1, 1]} : vector<17x128xf32> to vector<16x128xf32>
    %350 = vector.shape_cast %348 : vector<128xf32> to vector<1x128xf32>
    %351 = vector.broadcast %350 : vector<1x128xf32> to vector<16x128xf32>
    %352 = arith.mulf %351, %349 : vector<16x128xf32>
    %353 = arith.addf %346, %352 : vector<16x128xf32>
    %354 = vector.extract_strided_slice %128 {offsets = [1, 4], sizes = [17, 16], strides = [1, 1]} : vector<18x20xf32> to vector<17x16xf32>
    %355 = tpu.concatenate %354, %354, %354, %354, %354, %354, %354, %354 in 1 : vector<17x16xf32>, vector<17x16xf32>, vector<17x16xf32>, vector<17x16xf32>, vector<17x16xf32>, vector<17x16xf32>, vector<17x16xf32>, vector<17x16xf32> -> vector<17x128xf32>
    %c10_53 = arith.constant 10 : index
    %c0_54 = arith.constant 0 : index
    %356 = vector.load %arg3[%c10_53, %c0_54] : memref<33x128xf32, #tpu.memory_space<vmem>>, vector<1x128xf32>
    %357 = vector.shape_cast %356 : vector<1x128xf32> to vector<128xf32>
    %358 = vector.extract_strided_slice %355 {offsets = [0, 0], sizes = [16, 128], strides = [1, 1]} : vector<17x128xf32> to vector<16x128xf32>
    %359 = vector.shape_cast %357 : vector<128xf32> to vector<1x128xf32>
    %360 = vector.broadcast %359 : vector<1x128xf32> to vector<16x128xf32>
    %361 = arith.mulf %360, %358 : vector<16x128xf32>
    %362 = arith.addf %353, %361 : vector<16x128xf32>
    %c26_55 = arith.constant 26 : index
    %c0_56 = arith.constant 0 : index
    %363 = vector.load %arg3[%c26_55, %c0_56] : memref<33x128xf32, #tpu.memory_space<vmem>>, vector<1x128xf32>
    %364 = vector.shape_cast %363 : vector<1x128xf32> to vector<128xf32>
    %365 = vector.extract_strided_slice %355 {offsets = [1, 0], sizes = [16, 128], strides = [1, 1]} : vector<17x128xf32> to vector<16x128xf32>
    %366 = vector.shape_cast %364 : vector<128xf32> to vector<1x128xf32>
    %367 = vector.broadcast %366 : vector<1x128xf32> to vector<16x128xf32>
    %368 = arith.mulf %367, %365 : vector<16x128xf32>
    %369 = arith.addf %362, %368 : vector<16x128xf32>
    %370 = vector.extract_strided_slice %139 {offsets = [1, 3], sizes = [17, 16], strides = [1, 1]} : vector<18x20xf32> to vector<17x16xf32>
    %371 = tpu.concatenate %370, %370, %370, %370, %370, %370, %370, %370 in 1 : vector<17x16xf32>, vector<17x16xf32>, vector<17x16xf32>, vector<17x16xf32>, vector<17x16xf32>, vector<17x16xf32>, vector<17x16xf32>, vector<17x16xf32> -> vector<17x128xf32>
    %c3_57 = arith.constant 3 : index
    %c0_58 = arith.constant 0 : index
    %372 = vector.load %arg3[%c3_57, %c0_58] : memref<33x128xf32, #tpu.memory_space<vmem>>, vector<1x128xf32>
    %373 = vector.shape_cast %372 : vector<1x128xf32> to vector<128xf32>
    %374 = vector.extract_strided_slice %371 {offsets = [0, 0], sizes = [16, 128], strides = [1, 1]} : vector<17x128xf32> to vector<16x128xf32>
    %375 = vector.shape_cast %373 : vector<128xf32> to vector<1x128xf32>
    %376 = vector.broadcast %375 : vector<1x128xf32> to vector<16x128xf32>
    %377 = arith.mulf %376, %374 : vector<16x128xf32>
    %378 = arith.addf %369, %377 : vector<16x128xf32>
    %c19_59 = arith.constant 19 : index
    %c0_60 = arith.constant 0 : index
    %379 = vector.load %arg3[%c19_59, %c0_60] : memref<33x128xf32, #tpu.memory_space<vmem>>, vector<1x128xf32>
    %380 = vector.shape_cast %379 : vector<1x128xf32> to vector<128xf32>
    %381 = vector.extract_strided_slice %371 {offsets = [1, 0], sizes = [16, 128], strides = [1, 1]} : vector<17x128xf32> to vector<16x128xf32>
    %382 = vector.shape_cast %380 : vector<128xf32> to vector<1x128xf32>
    %383 = vector.broadcast %382 : vector<1x128xf32> to vector<16x128xf32>
    %384 = arith.mulf %383, %381 : vector<16x128xf32>
    %385 = arith.addf %378, %384 : vector<16x128xf32>
    %386 = vector.extract_strided_slice %139 {offsets = [1, 4], sizes = [17, 16], strides = [1, 1]} : vector<18x20xf32> to vector<17x16xf32>
    %387 = tpu.concatenate %386, %386, %386, %386, %386, %386, %386, %386 in 1 : vector<17x16xf32>, vector<17x16xf32>, vector<17x16xf32>, vector<17x16xf32>, vector<17x16xf32>, vector<17x16xf32>, vector<17x16xf32>, vector<17x16xf32> -> vector<17x128xf32>
    %c11_61 = arith.constant 11 : index
    %c0_62 = arith.constant 0 : index
    %388 = vector.load %arg3[%c11_61, %c0_62] : memref<33x128xf32, #tpu.memory_space<vmem>>, vector<1x128xf32>
    %389 = vector.shape_cast %388 : vector<1x128xf32> to vector<128xf32>
    %390 = vector.extract_strided_slice %387 {offsets = [0, 0], sizes = [16, 128], strides = [1, 1]} : vector<17x128xf32> to vector<16x128xf32>
    %391 = vector.shape_cast %389 : vector<128xf32> to vector<1x128xf32>
    %392 = vector.broadcast %391 : vector<1x128xf32> to vector<16x128xf32>
    %393 = arith.mulf %392, %390 : vector<16x128xf32>
    %394 = arith.addf %385, %393 : vector<16x128xf32>
    %c27_63 = arith.constant 27 : index
    %c0_64 = arith.constant 0 : index
    %395 = vector.load %arg3[%c27_63, %c0_64] : memref<33x128xf32, #tpu.memory_space<vmem>>, vector<1x128xf32>
    %396 = vector.shape_cast %395 : vector<1x128xf32> to vector<128xf32>
    %397 = vector.extract_strided_slice %387 {offsets = [1, 0], sizes = [16, 128], strides = [1, 1]} : vector<17x128xf32> to vector<16x128xf32>
    %398 = vector.shape_cast %396 : vector<128xf32> to vector<1x128xf32>
    %399 = vector.broadcast %398 : vector<1x128xf32> to vector<16x128xf32>
    %400 = arith.mulf %399, %397 : vector<16x128xf32>
    %401 = arith.addf %394, %400 : vector<16x128xf32>
    %cst_65 = arith.constant 0.000000e+00 : f32
    %402 = vector.broadcast %cst_65 : f32 to vector<16x128xf32>
    %403 = vector.extract_strided_slice %260 {offsets = [0, 1], sizes = [17, 16], strides = [1, 1]} : vector<20x18xf32> to vector<17x16xf32>
    %404 = tpu.concatenate %403, %403, %403, %403, %403, %403, %403, %403 in 1 : vector<17x16xf32>, vector<17x16xf32>, vector<17x16xf32>, vector<17x16xf32>, vector<17x16xf32>, vector<17x16xf32>, vector<17x16xf32>, vector<17x16xf32> -> vector<17x128xf32>
    %c4_66 = arith.constant 4 : index
    %c0_67 = arith.constant 0 : index
    %405 = vector.load %arg3[%c4_66, %c0_67] : memref<33x128xf32, #tpu.memory_space<vmem>>, vector<1x128xf32>
    %406 = vector.shape_cast %405 : vector<1x128xf32> to vector<128xf32>
    %407 = vector.extract_strided_slice %404 {offsets = [0, 0], sizes = [16, 128], strides = [1, 1]} : vector<17x128xf32> to vector<16x128xf32>
    %408 = vector.shape_cast %406 : vector<128xf32> to vector<1x128xf32>
    %409 = vector.broadcast %408 : vector<1x128xf32> to vector<16x128xf32>
    %410 = arith.mulf %409, %407 : vector<16x128xf32>
    %411 = arith.addf %402, %410 : vector<16x128xf32>
    %c20_68 = arith.constant 20 : index
    %c0_69 = arith.constant 0 : index
    %412 = vector.load %arg3[%c20_68, %c0_69] : memref<33x128xf32, #tpu.memory_space<vmem>>, vector<1x128xf32>
    %413 = vector.shape_cast %412 : vector<1x128xf32> to vector<128xf32>
    %414 = vector.extract_strided_slice %404 {offsets = [1, 0], sizes = [16, 128], strides = [1, 1]} : vector<17x128xf32> to vector<16x128xf32>
    %415 = vector.shape_cast %413 : vector<128xf32> to vector<1x128xf32>
    %416 = vector.broadcast %415 : vector<1x128xf32> to vector<16x128xf32>
    %417 = arith.mulf %416, %414 : vector<16x128xf32>
    %418 = arith.addf %411, %417 : vector<16x128xf32>
    %419 = vector.extract_strided_slice %260 {offsets = [0, 2], sizes = [17, 16], strides = [1, 1]} : vector<20x18xf32> to vector<17x16xf32>
    %420 = tpu.concatenate %419, %419, %419, %419, %419, %419, %419, %419 in 1 : vector<17x16xf32>, vector<17x16xf32>, vector<17x16xf32>, vector<17x16xf32>, vector<17x16xf32>, vector<17x16xf32>, vector<17x16xf32>, vector<17x16xf32> -> vector<17x128xf32>
    %c12_70 = arith.constant 12 : index
    %c0_71 = arith.constant 0 : index
    %421 = vector.load %arg3[%c12_70, %c0_71] : memref<33x128xf32, #tpu.memory_space<vmem>>, vector<1x128xf32>
    %422 = vector.shape_cast %421 : vector<1x128xf32> to vector<128xf32>
    %423 = vector.extract_strided_slice %420 {offsets = [0, 0], sizes = [16, 128], strides = [1, 1]} : vector<17x128xf32> to vector<16x128xf32>
    %424 = vector.shape_cast %422 : vector<128xf32> to vector<1x128xf32>
    %425 = vector.broadcast %424 : vector<1x128xf32> to vector<16x128xf32>
    %426 = arith.mulf %425, %423 : vector<16x128xf32>
    %427 = arith.addf %418, %426 : vector<16x128xf32>
    %c28_72 = arith.constant 28 : index
    %c0_73 = arith.constant 0 : index
    %428 = vector.load %arg3[%c28_72, %c0_73] : memref<33x128xf32, #tpu.memory_space<vmem>>, vector<1x128xf32>
    %429 = vector.shape_cast %428 : vector<1x128xf32> to vector<128xf32>
    %430 = vector.extract_strided_slice %420 {offsets = [1, 0], sizes = [16, 128], strides = [1, 1]} : vector<17x128xf32> to vector<16x128xf32>
    %431 = vector.shape_cast %429 : vector<128xf32> to vector<1x128xf32>
    %432 = vector.broadcast %431 : vector<1x128xf32> to vector<16x128xf32>
    %433 = arith.mulf %432, %430 : vector<16x128xf32>
    %434 = arith.addf %427, %433 : vector<16x128xf32>
    %435 = vector.extract_strided_slice %271 {offsets = [0, 1], sizes = [17, 16], strides = [1, 1]} : vector<20x18xf32> to vector<17x16xf32>
    %436 = tpu.concatenate %435, %435, %435, %435, %435, %435, %435, %435 in 1 : vector<17x16xf32>, vector<17x16xf32>, vector<17x16xf32>, vector<17x16xf32>, vector<17x16xf32>, vector<17x16xf32>, vector<17x16xf32>, vector<17x16xf32> -> vector<17x128xf32>
    %c5_74 = arith.constant 5 : index
    %c0_75 = arith.constant 0 : index
    %437 = vector.load %arg3[%c5_74, %c0_75] : memref<33x128xf32, #tpu.memory_space<vmem>>, vector<1x128xf32>
    %438 = vector.shape_cast %437 : vector<1x128xf32> to vector<128xf32>
    %439 = vector.extract_strided_slice %436 {offsets = [0, 0], sizes = [16, 128], strides = [1, 1]} : vector<17x128xf32> to vector<16x128xf32>
    %440 = vector.shape_cast %438 : vector<128xf32> to vector<1x128xf32>
    %441 = vector.broadcast %440 : vector<1x128xf32> to vector<16x128xf32>
    %442 = arith.mulf %441, %439 : vector<16x128xf32>
    %443 = arith.addf %434, %442 : vector<16x128xf32>
    %c21_76 = arith.constant 21 : index
    %c0_77 = arith.constant 0 : index
    %444 = vector.load %arg3[%c21_76, %c0_77] : memref<33x128xf32, #tpu.memory_space<vmem>>, vector<1x128xf32>
    %445 = vector.shape_cast %444 : vector<1x128xf32> to vector<128xf32>
    %446 = vector.extract_strided_slice %436 {offsets = [1, 0], sizes = [16, 128], strides = [1, 1]} : vector<17x128xf32> to vector<16x128xf32>
    %447 = vector.shape_cast %445 : vector<128xf32> to vector<1x128xf32>
    %448 = vector.broadcast %447 : vector<1x128xf32> to vector<16x128xf32>
    %449 = arith.mulf %448, %446 : vector<16x128xf32>
    %450 = arith.addf %443, %449 : vector<16x128xf32>
    %451 = vector.extract_strided_slice %271 {offsets = [0, 2], sizes = [17, 16], strides = [1, 1]} : vector<20x18xf32> to vector<17x16xf32>
    %452 = tpu.concatenate %451, %451, %451, %451, %451, %451, %451, %451 in 1 : vector<17x16xf32>, vector<17x16xf32>, vector<17x16xf32>, vector<17x16xf32>, vector<17x16xf32>, vector<17x16xf32>, vector<17x16xf32>, vector<17x16xf32> -> vector<17x128xf32>
    %c13_78 = arith.constant 13 : index
    %c0_79 = arith.constant 0 : index
    %453 = vector.load %arg3[%c13_78, %c0_79] : memref<33x128xf32, #tpu.memory_space<vmem>>, vector<1x128xf32>
    %454 = vector.shape_cast %453 : vector<1x128xf32> to vector<128xf32>
    %455 = vector.extract_strided_slice %452 {offsets = [0, 0], sizes = [16, 128], strides = [1, 1]} : vector<17x128xf32> to vector<16x128xf32>
    %456 = vector.shape_cast %454 : vector<128xf32> to vector<1x128xf32>
    %457 = vector.broadcast %456 : vector<1x128xf32> to vector<16x128xf32>
    %458 = arith.mulf %457, %455 : vector<16x128xf32>
    %459 = arith.addf %450, %458 : vector<16x128xf32>
    %c29_80 = arith.constant 29 : index
    %c0_81 = arith.constant 0 : index
    %460 = vector.load %arg3[%c29_80, %c0_81] : memref<33x128xf32, #tpu.memory_space<vmem>>, vector<1x128xf32>
    %461 = vector.shape_cast %460 : vector<1x128xf32> to vector<128xf32>
    %462 = vector.extract_strided_slice %452 {offsets = [1, 0], sizes = [16, 128], strides = [1, 1]} : vector<17x128xf32> to vector<16x128xf32>
    %463 = vector.shape_cast %461 : vector<128xf32> to vector<1x128xf32>
    %464 = vector.broadcast %463 : vector<1x128xf32> to vector<16x128xf32>
    %465 = arith.mulf %464, %462 : vector<16x128xf32>
    %466 = arith.addf %459, %465 : vector<16x128xf32>
    %cst_82 = arith.constant 0.000000e+00 : f32
    %467 = vector.broadcast %cst_82 : f32 to vector<16x128xf32>
    %468 = vector.extract_strided_slice %260 {offsets = [3, 0], sizes = [17, 16], strides = [1, 1]} : vector<20x18xf32> to vector<17x16xf32>
    %469 = tpu.concatenate %468, %468, %468, %468, %468, %468, %468, %468 in 1 : vector<17x16xf32>, vector<17x16xf32>, vector<17x16xf32>, vector<17x16xf32>, vector<17x16xf32>, vector<17x16xf32>, vector<17x16xf32>, vector<17x16xf32> -> vector<17x128xf32>
    %c6_83 = arith.constant 6 : index
    %c0_84 = arith.constant 0 : index
    %470 = vector.load %arg3[%c6_83, %c0_84] : memref<33x128xf32, #tpu.memory_space<vmem>>, vector<1x128xf32>
    %471 = vector.shape_cast %470 : vector<1x128xf32> to vector<128xf32>
    %472 = vector.extract_strided_slice %469 {offsets = [0, 0], sizes = [16, 128], strides = [1, 1]} : vector<17x128xf32> to vector<16x128xf32>
    %473 = vector.shape_cast %471 : vector<128xf32> to vector<1x128xf32>
    %474 = vector.broadcast %473 : vector<1x128xf32> to vector<16x128xf32>
    %475 = arith.mulf %474, %472 : vector<16x128xf32>
    %476 = arith.addf %467, %475 : vector<16x128xf32>
    %c22_85 = arith.constant 22 : index
    %c0_86 = arith.constant 0 : index
    %477 = vector.load %arg3[%c22_85, %c0_86] : memref<33x128xf32, #tpu.memory_space<vmem>>, vector<1x128xf32>
    %478 = vector.shape_cast %477 : vector<1x128xf32> to vector<128xf32>
    %479 = vector.extract_strided_slice %469 {offsets = [1, 0], sizes = [16, 128], strides = [1, 1]} : vector<17x128xf32> to vector<16x128xf32>
    %480 = vector.shape_cast %478 : vector<128xf32> to vector<1x128xf32>
    %481 = vector.broadcast %480 : vector<1x128xf32> to vector<16x128xf32>
    %482 = arith.mulf %481, %479 : vector<16x128xf32>
    %483 = arith.addf %476, %482 : vector<16x128xf32>
    %484 = vector.extract_strided_slice %260 {offsets = [3, 1], sizes = [17, 16], strides = [1, 1]} : vector<20x18xf32> to vector<17x16xf32>
    %485 = tpu.concatenate %484, %484, %484, %484, %484, %484, %484, %484 in 1 : vector<17x16xf32>, vector<17x16xf32>, vector<17x16xf32>, vector<17x16xf32>, vector<17x16xf32>, vector<17x16xf32>, vector<17x16xf32>, vector<17x16xf32> -> vector<17x128xf32>
    %c14_87 = arith.constant 14 : index
    %c0_88 = arith.constant 0 : index
    %486 = vector.load %arg3[%c14_87, %c0_88] : memref<33x128xf32, #tpu.memory_space<vmem>>, vector<1x128xf32>
    %487 = vector.shape_cast %486 : vector<1x128xf32> to vector<128xf32>
    %488 = vector.extract_strided_slice %485 {offsets = [0, 0], sizes = [16, 128], strides = [1, 1]} : vector<17x128xf32> to vector<16x128xf32>
    %489 = vector.shape_cast %487 : vector<128xf32> to vector<1x128xf32>
    %490 = vector.broadcast %489 : vector<1x128xf32> to vector<16x128xf32>
    %491 = arith.mulf %490, %488 : vector<16x128xf32>
    %492 = arith.addf %483, %491 : vector<16x128xf32>
    %c30_89 = arith.constant 30 : index
    %c0_90 = arith.constant 0 : index
    %493 = vector.load %arg3[%c30_89, %c0_90] : memref<33x128xf32, #tpu.memory_space<vmem>>, vector<1x128xf32>
    %494 = vector.shape_cast %493 : vector<1x128xf32> to vector<128xf32>
    %495 = vector.extract_strided_slice %485 {offsets = [1, 0], sizes = [16, 128], strides = [1, 1]} : vector<17x128xf32> to vector<16x128xf32>
    %496 = vector.shape_cast %494 : vector<128xf32> to vector<1x128xf32>
    %497 = vector.broadcast %496 : vector<1x128xf32> to vector<16x128xf32>
    %498 = arith.mulf %497, %495 : vector<16x128xf32>
    %499 = arith.addf %492, %498 : vector<16x128xf32>
    %500 = vector.extract_strided_slice %271 {offsets = [3, 0], sizes = [17, 16], strides = [1, 1]} : vector<20x18xf32> to vector<17x16xf32>
    %501 = tpu.concatenate %500, %500, %500, %500, %500, %500, %500, %500 in 1 : vector<17x16xf32>, vector<17x16xf32>, vector<17x16xf32>, vector<17x16xf32>, vector<17x16xf32>, vector<17x16xf32>, vector<17x16xf32>, vector<17x16xf32> -> vector<17x128xf32>
    %c7_91 = arith.constant 7 : index
    %c0_92 = arith.constant 0 : index
    %502 = vector.load %arg3[%c7_91, %c0_92] : memref<33x128xf32, #tpu.memory_space<vmem>>, vector<1x128xf32>
    %503 = vector.shape_cast %502 : vector<1x128xf32> to vector<128xf32>
    %504 = vector.extract_strided_slice %501 {offsets = [0, 0], sizes = [16, 128], strides = [1, 1]} : vector<17x128xf32> to vector<16x128xf32>
    %505 = vector.shape_cast %503 : vector<128xf32> to vector<1x128xf32>
    %506 = vector.broadcast %505 : vector<1x128xf32> to vector<16x128xf32>
    %507 = arith.mulf %506, %504 : vector<16x128xf32>
    %508 = arith.addf %499, %507 : vector<16x128xf32>
    %c23_93 = arith.constant 23 : index
    %c0_94 = arith.constant 0 : index
    %509 = vector.load %arg3[%c23_93, %c0_94] : memref<33x128xf32, #tpu.memory_space<vmem>>, vector<1x128xf32>
    %510 = vector.shape_cast %509 : vector<1x128xf32> to vector<128xf32>
    %511 = vector.extract_strided_slice %501 {offsets = [1, 0], sizes = [16, 128], strides = [1, 1]} : vector<17x128xf32> to vector<16x128xf32>
    %512 = vector.shape_cast %510 : vector<128xf32> to vector<1x128xf32>
    %513 = vector.broadcast %512 : vector<1x128xf32> to vector<16x128xf32>
    %514 = arith.mulf %513, %511 : vector<16x128xf32>
    %515 = arith.addf %508, %514 : vector<16x128xf32>
    %516 = vector.extract_strided_slice %271 {offsets = [3, 1], sizes = [17, 16], strides = [1, 1]} : vector<20x18xf32> to vector<17x16xf32>
    %517 = tpu.concatenate %516, %516, %516, %516, %516, %516, %516, %516 in 1 : vector<17x16xf32>, vector<17x16xf32>, vector<17x16xf32>, vector<17x16xf32>, vector<17x16xf32>, vector<17x16xf32>, vector<17x16xf32>, vector<17x16xf32> -> vector<17x128xf32>
    %c15_95 = arith.constant 15 : index
    %c0_96 = arith.constant 0 : index
    %518 = vector.load %arg3[%c15_95, %c0_96] : memref<33x128xf32, #tpu.memory_space<vmem>>, vector<1x128xf32>
    %519 = vector.shape_cast %518 : vector<1x128xf32> to vector<128xf32>
    %520 = vector.extract_strided_slice %517 {offsets = [0, 0], sizes = [16, 128], strides = [1, 1]} : vector<17x128xf32> to vector<16x128xf32>
    %521 = vector.shape_cast %519 : vector<128xf32> to vector<1x128xf32>
    %522 = vector.broadcast %521 : vector<1x128xf32> to vector<16x128xf32>
    %523 = arith.mulf %522, %520 : vector<16x128xf32>
    %524 = arith.addf %515, %523 : vector<16x128xf32>
    %c31_97 = arith.constant 31 : index
    %c0_98 = arith.constant 0 : index
    %525 = vector.load %arg3[%c31_97, %c0_98] : memref<33x128xf32, #tpu.memory_space<vmem>>, vector<1x128xf32>
    %526 = vector.shape_cast %525 : vector<1x128xf32> to vector<128xf32>
    %527 = vector.extract_strided_slice %517 {offsets = [1, 0], sizes = [16, 128], strides = [1, 1]} : vector<17x128xf32> to vector<16x128xf32>
    %528 = vector.shape_cast %526 : vector<128xf32> to vector<1x128xf32>
    %529 = vector.broadcast %528 : vector<1x128xf32> to vector<16x128xf32>
    %530 = arith.mulf %529, %527 : vector<16x128xf32>
    %531 = arith.addf %524, %530 : vector<16x128xf32>
    %532 = arith.addf %336, %401 : vector<16x128xf32>
    %533 = arith.addf %466, %531 : vector<16x128xf32>
    %534 = arith.addf %532, %533 : vector<16x128xf32>
    %c32_99 = arith.constant 32 : index
    %c0_100 = arith.constant 0 : index
    %535 = vector.load %arg3[%c32_99, %c0_100] : memref<33x128xf32, #tpu.memory_space<vmem>>, vector<1x128xf32>
    %536 = vector.shape_cast %535 : vector<1x128xf32> to vector<128xf32>
    %537 = vector.shape_cast %536 : vector<128xf32> to vector<1x128xf32>
    %538 = vector.broadcast %537 : vector<1x128xf32> to vector<16x128xf32>
    %539 = arith.addf %534, %538 : vector<16x128xf32>
    %cst_101 = arith.constant 5.000000e-01 : f32
    %540 = vector.broadcast %cst_101 : f32 to vector<16x128xf32>
    %541 = arith.mulf %540, %539 : vector<16x128xf32>
    %542 = math.tanh %541 : vector<16x128xf32>
    %cst_102 = arith.constant 5.000000e-01 : f32
    %543 = vector.broadcast %cst_102 : f32 to vector<16x128xf32>
    %544 = arith.mulf %543, %542 : vector<16x128xf32>
    %cst_103 = arith.constant 5.000000e-01 : f32
    %545 = vector.broadcast %cst_103 : f32 to vector<16x128xf32>
    %546 = arith.addf %544, %545 : vector<16x128xf32>
    %547 = arith.mulf %539, %546 : vector<16x128xf32>
    %c0_104 = arith.constant 0 : index
    %c0_105 = arith.constant 0 : index
    %c0_106 = arith.constant 0 : index
    %548 = vector.load %arg4[%c0_104, %c0_105, %c0_106] : memref<1x16x128xf32, #tpu.memory_space<vmem>>, vector<1x16x128xf32>
    %549 = vector.shape_cast %548 : vector<1x16x128xf32> to vector<16x128xf32>
    %550 = vector.shape_cast %547 : vector<16x128xf32> to vector<1x16x128xf32>
    tpu.vector_store %arg4[%c0_104, %c0_105, %c0_106], %550 {strides = array<i32>} : memref<1x16x128xf32, #tpu.memory_space<vmem>>, vector<1x16x128xf32>,
    return
  }
  func.func @transform_0(%arg0: i32) -> (i32, i32, i32, i32) {
    %c0_i32 = arith.constant 0 : i32
    %c0_i32_0 = arith.constant 0 : i32
    %c0_i32_1 = arith.constant 0 : i32
    %c0_i32_2 = arith.constant 0 : i32
    return %arg0, %c0_i32, %c0_i32_0, %c0_i32_1 : i32, i32, i32, i32
  }
  func.func @transform_1(%arg0: i32) -> i32 {
    %c0_i32 = arith.constant 0 : i32
    %c0_i32_0 = arith.constant 0 : i32
    return %c0_i32 : i32
  }
  func.func @transform_2(%arg0: i32) -> (i32, i32) {
    %c0_i32 = arith.constant 0 : i32
    %c0_i32_0 = arith.constant 0 : i32
    %c0_i32_1 = arith.constant 0 : i32
    return %c0_i32, %c0_i32_0 : i32, i32
  }
  func.func @transform_3(%arg0: i32) -> (i32, i32, i32) {
    %c0_i32 = arith.constant 0 : i32
    %c0_i32_0 = arith.constant 0 : i32
    %c0_i32_1 = arith.constant 0 : i32
    return %arg0, %c0_i32, %c0_i32_0 : i32, i32, i32
  }
}

</mosaic_0001>

<bundles_post_ra>
// kernel: tpu_custom_call.1
= control target key start
LH: loop header
LB: loop body
LE: loop exit
PB: predicated region body
PF: predicated region fallthrough
CT: control target
= control target key end

     0   :  { %8 = vsyncpa [#allocation4], 0  ;;  %s6236_s0 = inlined_call_operand.vmem [shape: f32[2,4,22,22], index: 0, kind: input, shape index: {}]   ;;  %s6237_s1 = inlined_call_operand.vmem [shape: f32[52], index: 1, kind: input, shape index: {}]   ;;  %s6238_s2 = inlined_call_operand.vmem [shape: f32[33,128], index: 2, kind: input, shape index: {}]   ;;  %s6239_s3 = inlined_call_operand.hbm [shape: f32[2,16,128], index: 3, kind: output, shape index: {}]  }
   0x1   :  { %9 = vsyncpa [#allocation3], 0 }
   0x2   :  { %11 = vsyncpa [#allocation3 + $0x1], 0  ;;  %s3377_s12 = smov 0   ;;  %s3379_s13 = smov 0  }
   0x3   :  { %s3381_s14 = smov 0   ;;  %s3383_s15 = smov 0  }
   0x4 LB: > { %s3398_s16 = sadd.s32 4294967295, %s3312_s15   ;;  %s3000_s17 = sadd.s32 4294967294, %s3312_s15   ;;  %s3312_s15 = sphi %s3383_s15, %s6716_s15   ;;  %s3308_s14 = sphi %s3381_s14, %s6715_s14   ;;  %s3304_s13 = sphi %s3379_s13, %s6714_s13   ;;  %s3300_s12 = sphi %s3377_s12, %s6713_s12  }
   0x5   : > { %s3402_s18 = sadd.s32 1, %s3312_s15   ;;  %s92_s19 = sadd.s32 1, %s3308_s14 }
   0x6   : > { %s89_s20 = ssub.s32 %s3312_s15, %s3402_s18  ;;  %p102_p0 = scmp.ne.s32.totalorder %s3308_s14, %s3304_s13 }
   0x7   : > { %p90_p1 = scmp.eq.s32.totalorder %s89_s20, 0  ;;  %p103_p2 = scmp.eq.s32.totalorder %s3398_s16, 1 }
   0x8   : > { %p108_p3 = scmp.ne.s32.totalorder %s3304_s13, %s3300_s12  ;;  %p109_p4 = scmp.eq.s32.totalorder %s3000_s17, 1 }
   0x9   : > { %s3413_s21 = scalar_select %p90_p1, %s3308_s14, %s92_s19  }
   0xa   : > { %p3415_p5 = por %p103_p2, %p102_p0  ;;  %p3419_p6 = por %p109_p4, %p108_p3 }
   0xb   : > { %p3001_p7 = scmp.ge.s32.totalorder %s3312_s15, 1  ;;  %p116_p8 = scmp.lt.s32.totalorder %s3312_s15, 3 }
   0xc   : > { %p3122_p9 = scmp.eq.s32.totalorder %s3398_s16, 0  ;;  %s129_s27 = sshll.u32 %s6237_s1, 4  ;;  %s130_s27 = int_to_ptr.vmem [resolvable:$true] %s129_s27 }
   0xd   : > { %p3426_p10 = pnand %p3001_p7, %p116_p8  ;;  %s3231_s28 = scalar_lea.vmem %s130_s27, 16 }
   0xe   : > { %p3232_p13 = scmp.ne.s32.totalorder %s130_s27, %s3231_s28  ;;  %p3239_p3 = scmp.lt.s32.totalorder %s130_s27, %s130_s27 }
   0xf   : > { %p3114_p11 = pneg %p3426_p10  ;;  %p3240_p4 = scmp.lt.s32.totalorder %s3231_s28, %s3231_s28 }
  0x11   : > { %p3115_p12 = pnand %p3122_p9, %p3114_p11  ;;  %p3241_p7 = por %p3240_p4, %p3239_p3 }
  0x13   : > { %p3233_p0 = pneg %p3115_p12 }
  0x15   : > { %p3234_p1 = pnand %p3233_p0, %p3232_p13 }
  0x17   : > { %p3235_p2 = pneg %p3234_p1 }
  0x19   : > { %p3242_p8 = pnand %p3241_p7, %p3235_p2 }
  0x1b   : > { %3245 = shalt.err (!%p3242_p8)
}
  0x1c   : > { %s3314_s29 = smov [#allocation2]   ;;  %153 = sbr.rel (%p3426_p10) target bundleno = 1116 (0x45c), region = 32 }
  0x1d   : > { %3117 = dma.vmem_to_smem (!%p3115_p12), %s130_s27, 16, %s3314_s29, [#allocation4]  }
  0x23   : > { %3291 = dma.done.wait (%p3122_p9), [#allocation4], 16  }
  0x24   : > { %3293 = vsyncadd (%p3122_p9), [#allocation4], 4294967280 }
  0x25   : > { %159 = sfence }
  0x26   : > { %p178_p11 = scmp.lt.s32.totalorder %s3398_s16, 1  ;;  %s3024_s30 = sld [smem:[#allocation2 + $0x8]]  ;;  %vm847_vm0 = vcmask 1045504   ;;  %vm694_vm1 = vcmask 1046528   ;;  %vm1098_vm2 = vcmask 130048   ;;  %vm1102_vm3 = vcmask 261120  }
  0x27   : > { %s3042_s4 = sld [smem:[#allocation2 + $0x18]]  ;;  %s3043_s6 = sld [smem:[#allocation2 + $0x19]]  ;;  %vm1106_vm4 = vcmask 392192   ;;  %vm1110_vm5 = vcmask 523264   ;;  %vm1114_vm6 = vcmask 654336   ;;  %vm1118_vm7 = vcmask 785408  }
  0x28   : > { %s179_s5 = scalar_select %p178_p11, %s3398_s16, 1  ;;  %vm1122_vm8 = vcmask 916480   ;;  %vm2864_vm9 = vcmask 1044480   ;;  %vm2876_vm10 = vcmask 1041408  }
  0x29   : > { %s3050_s7 = sld [smem:[#allocation2 + $0x20]]  ;;  %s3051_s9 = sld [smem:[#allocation2 + $0x21]] }
  0x2a   : > { %s3107_s8 = smul.u32 96, %s179_s5  ;;  %s3058_s10 = sld [smem:[#allocation2 + $0x28]] }
  0x2b   : > { %s3059_s11 = sld [smem:[#allocation2 + $0x29]]  ;;  %s3470_s25 = sld [smem:[#allocation2 + $0xa]] }
  0x2c   : > { %s3448_s20 = scalar_lea.vmem %s6236_s0, %s3107_s8  ;;  %v263_v0 = vstv %s3024_s30  ;;  %s3450_s24 = sld [smem:[#allocation2 + $0x9]] }
  0x2d   : > { %v3453_v1 = vld [vmem:[%s3448_s20 + $0x10] sm:$0x3f]  ;;  %v623_v2 = vstv %s3042_s4  ;;  %v3456_v3 = vld [vmem:[%s3448_s20] sm:$0xff]  ;;  %v3459_v4 = vld [vmem:[%s3448_s20 + $0x8] sm:$0xff]  ;;  %s3472_s26 = sld [smem:[#allocation2 + $0x1a]]  ;;  %s3315_s27 = smov 127  }
  0x2e   : > { %6282 = vst [vmem:[#allocation8_spill] sm:$0xff] %v3453_v1  ;;  %6283 = vst [vmem:[#allocation9_spill] sm:$0xff] %v3456_v3  ;;  %v266_v5 = vmul.f32 %v263_v0, %v3453_v1  ;;  %v3463_v6 = vmul.f32 %v623_v2, %v3453_v1  ;;  %v264_v7 = vmul.f32 %v263_v0, %v3456_v3  ;;  %v631_v8 = vstv %s3043_s6  ;;  %s3489_s28 = sld [smem:[#allocation2 + $0x1b]]  ;;  %s3491_s29 = sld [smem:[#allocation2 + $0x22]]  ;;  %v3523_v40 = vld [vmem:[%s3448_s20 + $0x20] sm:$0xff]  ;;  %v3548_v57 = vld [vmem:[%s3448_s20 + $0x18] sm:$0xff] }
  0x2f   : > { %6284 = vst [vmem:[#allocation10_spill] sm:$0xff] %v3459_v4  ;;  %v687_v9 = vstv %s3050_s7  ;;  %v3467_v10 = vmul.f32 %v623_v2, %v3456_v3  ;;  %v265_v11 = vmul.f32 %v263_v0, %v3459_v4  ;;  %v3475_v12 = vmul.f32 %v631_v8, %v3453_v1  ;;  %s3507_s30 = sld [smem:[#allocation2 + $0x23]]  ;;  %s3513_s4 = sld [smem:[#allocation2 + $0x2a]]  ;;  %6285 = vst [vmem:[#allocation11_spill] sm:$0xff] %v3523_v40 }
  0x30   : > { %v3478_v13 = vmul.f32 %v687_v9, %v3453_v1  ;;  %v707_v14 = vstv %s3051_s9  ;;  %274 = vrot.lane.b32.xlu1 %v266_v5, %s3315_s27  ;;  %270 = vrot.lane.b32.xlu0 %v264_v7, %s3315_s27  ;;  %v3483_v15 = vmul.f32 %v623_v2, %v3459_v4  ;;  %v840_v17 = vstv %s3058_s10  ;;  %s3516_s5 = sld [smem:[#allocation2 + $0x2b]]  ;;  %6286 = vst [vmem:[#allocation12_spill] sm:$0xff] %v3548_v57  ;;  %s3602_s7 = sld [smem:[#allocation2 + $0xc]] }
  0x31   : > { %v3486_v16 = vmul.f32 %v707_v14, %v3453_v1  ;;  %v860_v18 = vstv %s3059_s11  ;;  %v688_v19 = vmul.f32 %v687_v9, %v3456_v3  ;;  %v3494_v20 = vmul.f32 %v840_v17, %v3453_v1  ;;  %s3550_s6 = sld [smem:[#allocation2 + $0xb]]  ;;  %s3608_s8 = sld [smem:[#allocation2 + $0x1c]] }
  0x32   : > { %v3497_v21 = vmul.f32 %v860_v18, %v3453_v1  ;;  %v3500_v22 = vmul.f32 %v631_v8, %v3456_v3  ;;  %v708_v23 = vmul.f32 %v707_v14, %v3456_v3  ;;  %v6247_v24 = vrot.slane %v3478_v13, 1  ;;  %s3615_s9 = sld [smem:[#allocation2 + $0x1d]]  ;;  %s3619_s10 = sld [smem:[#allocation2 + $0x24]] }
  0x33   : > { %v6246_v25 = vrot.slane %v3486_v16, 1  ;;  %v841_v26 = vmul.f32 %v840_v17, %v3456_v3  ;;  %v861_v27 = vmul.f32 %v860_v18, %v3456_v3  ;;  %v6243_v28 = vrot.slane %v3494_v20, 2  ;;  %s3621_s11 = sld [smem:[#allocation2 + $0x25]]  ;;  %s3628_s17 = sld [smem:[#allocation2 + $0x2c]] }
  0x34   : > { %v6242_v29 = vrot.slane %v3497_v21, 2  ;;  %v695_v30 = vrot.slane %v688_v19, 1  ;;  %v283_v31 = vstv %s3450_s24  ;;  %272 = vrot.lane.b32.xlu0 %v265_v11, %s3315_s27  ;;  %v714_v32 = vrot.slane %v708_v23, 1  ;;  %s3641_s19 = sld [smem:[#allocation2 + $0x2d]] }
  0x35   : > { %v848_v33 = vrot.slane %v841_v26, 2  ;;  %v867_v34 = vrot.slane %v861_v27, 2  ;;  %v284_v35 = vmul.f32 %v283_v31, %v3456_v3  ;;  %v689_v36 = vmul.f32 %v687_v9, %v3459_v4  ;;  %s3681_s24 = sld [smem:[#allocation2 + $0xd]] }
  0x36   : > { %v709_v37 = vmul.f32 %v707_v14, %v3459_v4  ;;  %v842_v38 = vmul.f32 %v840_v17, %v3459_v4  ;;  %v862_v39 = vmul.f32 %v860_v18, %v3459_v4  ;;  %v286_v41 = vmul.f32 %v283_v31, %v3453_v1 }
  0x37   : > { %290 = vrot.lane.b32.xlu1 %v284_v35, %s3315_s27  ;;  %v285_v42 = vmul.f32 %v283_v31, %v3459_v4  ;;  %v303_v43 = vstv %s3470_s25  ;;  %v639_v44 = vstv %s3472_s26  ;;  %v696_v45 = vrot.slane %v689_v36, 1  ;;  %s3736_s25 = sld [smem:[#allocation2 + $0xe]] }
  0x38   : > { %v715_v46 = vrot.slane %v709_v37, 1  ;;  %v849_v47 = vrot.slane %v842_v38, 2  ;;  %v868_v48 = vrot.slane %v862_v39, 2  ;;  %v633_v49 = vmul.f32 %v631_v8, %v3459_v4  ;;  %s3738_s26 = sld [smem:[#allocation2 + $0x1e]] }
  0x39   : > { %292 = vrot.lane.b32.xlu0 %v285_v42, %s3315_s27  ;;  %v305_v50 = vmul.f32 %v3523_v40, %v303_v43  ;;  %v647_v51 = vstv %s3489_s28  ;;  %v726_v52 = vstv %s3491_s29  ;;  %v3536_v53 = vsel %vm694_vm1, %v695_v30, %v696_v45  ;;  %s3747_s28 = sld [smem:[#allocation2 + $0x1f]]  ;;  %s3749_s29 = sld [smem:[#allocation2 + $0x26]] }
  0x3a   : > { %v3541_v54 = vsel %vm694_vm1, %v696_v45, %v6247_v24  ;;  %v3544_v55 = vsel %vm694_vm1, %v714_v32, %v715_v46  ;;  %v641_v56 = vmul.f32 %v3523_v40, %v639_v44  ;;  %v3555_v58 = vsel %vm694_vm1, %v715_v46, %v6246_v25 }
  0x3b   : > { %v3558_v59 = vsel %vm847_vm0, %v848_v33, %v849_v47  ;;  %v3563_v60 = vsel %vm847_vm0, %v849_v47, %v6243_v28  ;;  %v3566_v61 = vsel %vm847_vm0, %v867_v34, %v868_v48  ;;  %294 = vrot.lane.b32.xlu1 %v286_v41, %s3315_s27  ;;  %v3572_v62 = vsel %vm847_vm0, %v868_v48, %v6242_v29 }
  0x3c   : > { %v649_v63 = vmul.f32 %v3523_v40, %v647_v51  ;;  %v728_v0 = vmul.f32 %v3523_v40, %v726_v52  ;;  %v745_v2 = vstv %s3507_s30  ;;  %v879_v7 = vstv %s3513_s4  ;;  %s3753_s30 = sld [smem:[#allocation2 + $0x27]]  ;;  %s3761_s4 = sld [smem:[#allocation2 + $0x2e]] }
  0x3d   : > { %v3578_v5 = vmul.f32 %v3523_v40, %v745_v2  ;;  %v898_v8 = vstv %s3516_s5  ;;  %v304_v9 = vmul.f32 %v3548_v57, %v303_v43  ;;  %v3584_v11 = vadd.f32 %v641_v56, %v3483_v15  ;;  %v3600_v15 = vld [vmem:[%s3448_s20 + $0x28] sm:$0x3f]  ;;  %s3763_s5 = sld [smem:[#allocation2 + $0x2f]] }
  0x3e   : > { %v3586_v14 = vadd.f32 %v649_v63, %v633_v49  ;;  %v3589_v17 = vmul.f32 %v3523_v40, %v879_v7  ;;  %v3592_v18 = vmul.f32 %v3523_v40, %v898_v8  ;;  %v734_v19 = vrot.slane %v728_v0, 1  ;;  %6287 = vst [vmem:[#allocation13_spill] sm:$0xff] %v3600_v15 }
  0x3f   : > { %312 = vrot.lane.b32.xlu1 %v305_v50, %s3315_s27  ;;  %v640_v23 = vmul.f32 %v3548_v57, %v639_v44  ;;  %v648_v26 = vmul.f32 %v3548_v57, %v647_v51  ;;  %v727_v27 = vmul.f32 %v3548_v57, %v726_v52  ;;  %310 = vrot.lane.b32.xlu0 %v304_v9, %s3315_s27  ;;  %v753_v30 = vrot.slane %v3578_v5, 1  ;;  %v3665_v9 = vld [vmem:[%s3448_s20 + $0x38] sm:$0xff] }
  0x40   : > { %v887_v31 = vrot.slane %v3589_v17, 2  ;;  %v746_v32 = vmul.f32 %v3548_v57, %v745_v2  ;;  %v880_v33 = vmul.f32 %v3548_v57, %v879_v7  ;;  %v906_v34 = vrot.slane %v3592_v18, 2  ;;  %6290 = vst [vmem:[#allocation16_spill] sm:$0xff] %v3665_v9 }
  0x41   : > { %v3612_v35 = vadd.f32 %v640_v23, %v3467_v10  ;;  %v733_v36 = vrot.slane %v727_v27, 1  ;;  %v899_v37 = vmul.f32 %v3548_v57, %v898_v8  ;;  %v323_v41 = vstv %s3550_s6  ;;  %s3827_s6 = sld [smem:[#allocation2 + $0xf]] }
  0x42   : > { %v752_v38 = vrot.slane %v746_v32, 1  ;;  %v886_v39 = vrot.slane %v880_v33, 2  ;;  %v306_v42 = vmul.f32 %v3600_v15, %v303_v43  ;;  %v3624_v45 = vadd.f32 %v648_v26, %v3500_v22  ;;  %v3694_v33 = vld [vmem:[%s3448_s20 + $0x30] sm:$0xff] }
  0x43   : > { %v905_v46 = vrot.slane %v899_v37, 2  ;;  %v324_v10 = vmul.f32 %v3548_v57, %v323_v41  ;;  %v642_v47 = vmul.f32 %v3600_v15, %v639_v44  ;;  %v3631_v48 = vsel %vm694_vm1, %v733_v36, %v734_v19  ;;  %6291 = vst [vmem:[#allocation17_spill] sm:$0xff] %v3694_v33 }
  0x44   : > { %v3634_v43 = vsel %vm694_vm1, %v752_v38, %v753_v30  ;;  %v650_v49 = vmul.f32 %v3600_v15, %v647_v51  ;;  %v3638_v50 = vmul.f32 %v3600_v15, %v726_v52  ;;  %314 = vrot.lane.b32.xlu0 %v306_v42, %s3315_s27  ;;  %v3644_v22 = vsel %vm847_vm0, %v886_v39, %v887_v31 }
  0x45   : > { %v3647_v44 = vsel %vm847_vm0, %v905_v46, %v906_v34  ;;  %330 = vrot.lane.b32.xlu1 %v324_v10, %s3315_s27  ;;  %v3651_v56 = vmul.f32 %v3600_v15, %v745_v2  ;;  %v3654_v51 = vmul.f32 %v3600_v15, %v879_v7  ;;  %v3657_v52 = vadd.f32 %v642_v47, %v3463_v6 }
  0x46   : > { %v6245_v63 = vrot.slane %v3638_v50, 1  ;;  %v3661_v0 = vmul.f32 %v3600_v15, %v898_v8  ;;  %v326_v5 = vmul.f32 %v3600_v15, %v323_v41  ;;  %v325_v7 = vmul.f32 %v3523_v40, %v323_v41 }
  0x47   : > { %6288 = vst [vmem:[#allocation14_spill] sm:$0xff] %v3654_v51  ;;  %v6244_v2 = vrot.slane %v3651_v56, 1  ;;  %v6241_v17 = vrot.slane %v3654_v51, 2  ;;  %v343_v6 = vstv %s3602_s7  ;;  %v3672_v18 = vadd.f32 %v650_v49, %v3475_v12  ;;  %s3906_s7 = sld [smem:[#allocation2 + $0x10]] }
  0x48   : > { %6289 = vst [vmem:[#allocation15_spill] sm:$0xff] %v3661_v0  ;;  %v3677_v8 = vsel %vm694_vm1, %v734_v19, %v6245_v63  ;;  %v6240_v23 = vrot.slane %v3661_v0, 2  ;;  %v655_v26 = vstv %s3608_s8  ;;  %332 = vrot.lane.b32.xlu0 %v325_v7, %s3315_s27  ;;  %v345_v12 = vmul.f32 %v3665_v9, %v343_v6  ;;  %s3908_s8 = sld [smem:[#allocation2 + $0x11]] }
  0x49   : > { %v3686_v27 = vsel %vm694_vm1, %v753_v30, %v6244_v2  ;;  %334 = vrot.lane.b32.xlu1 %v326_v5, %s3315_s27  ;;  %v657_v19 = vmul.f32 %v3665_v9, %v655_v26  ;;  %v663_v32 = vstv %s3615_s9  ;;  %v3699_v36 = vsel %vm847_vm0, %v887_v31, %v6241_v17  ;;  %v3729_v17 = vld [vmem:[%s3448_s20 + $0x40] sm:$0x3f]  ;;  %s3034_s9 = sld [smem:[#allocation2 + $0x12]] }
  0x4a   : > { %v665_v30 = vmul.f32 %v3665_v9, %v663_v32  ;;  %v764_v37 = vstv %s3619_s10  ;;  %v783_v38 = vstv %s3621_s11  ;;  %v3707_v39 = vsel %vm847_vm0, %v906_v34, %v6240_v23  ;;  %6292 = vst [vmem:[#allocation18_spill] sm:$0xff] %v3729_v17  ;;  %s3316_s10 = smov 126   ;;  %s3035_s11 = sld [smem:[#allocation2 + $0x13]] }
  0x4b   : > { %v766_v41 = vmul.f32 %v3665_v9, %v764_v37  ;;  %v3711_v42 = vmul.f32 %v3665_v9, %v783_v38  ;;  %v917_v46 = vstv %s3628_s17  ;;  %v3715_v10 = vadd.f32 %v657_v19, %v3584_v11  ;;  %s198_s17 = sld [smem:[#allocation2]] }
  0x4c   : > { %v3718_v31 = vmul.f32 %v3665_v9, %v917_v46  ;;  %v936_v47 = vstv %s3641_s19  ;;  %v344_v49 = vmul.f32 %v3694_v33, %v343_v6  ;;  %v3723_v5 = vadd.f32 %v665_v30, %v3586_v14  ;;  %s3018_s19 = sld [smem:[#allocation2 + $0x2]] }
  0x4d   : > { %v772_v34 = vrot.slane %v766_v41, 1  ;;  %v938_v7 = vmul.f32 %v3665_v9, %v936_v47  ;;  %352 = vrot.lane.b32.xlu1 %v345_v12, %s3315_s27  ;;  %v656_v23 = vmul.f32 %v3694_v33, %v655_v26  ;;  %v791_v11 = vrot.slane %v3711_v42, 1 }
  0x4e   : > { %v664_v19 = vmul.f32 %v3694_v33, %v663_v32  ;;  %v765_v29 = vmul.f32 %v3694_v33, %v764_v37  ;;  %v784_v28 = vmul.f32 %v3694_v33, %v783_v38  ;;  %350 = vrot.lane.b32.xlu0 %v344_v49, %s3315_s27  ;;  %v918_v30 = vmul.f32 %v3694_v33, %v917_v46 }
  0x4f   : > { %v944_v12 = vrot.slane %v938_v7, 2  ;;  %v937_v41 = vmul.f32 %v3694_v33, %v936_v47  ;;  %v3744_v42 = vadd.f32 %v656_v23, %v3612_v35  ;;  %v363_v25 = vstv %s3681_s24  ;;  %s3020_s24 = sld [smem:[#allocation2 + $0x4]] }
  0x50   : > { %v771_v2 = vrot.slane %v765_v29, 1  ;;  %v790_v63 = vrot.slane %v784_v28, 1  ;;  %v924_v49 = vrot.slane %v918_v30, 2  ;;  %v364_v15 = vmul.f32 %v3694_v33, %v363_v25 }
  0x51   : > { %v943_v24 = vrot.slane %v937_v41, 2  ;;  %v346_v7 = vmul.f32 %v3729_v17, %v343_v6  ;;  %v667_v14 = vadd.f32 %v664_v19, %v3624_v45  ;;  %v658_v28 = vmul.f32 %v3729_v17, %v655_v26 }
  0x52   : > { %v3757_v35 = vsel %vm694_vm1, %v771_v2, %v772_v34  ;;  %v666_v29 = vmul.f32 %v3729_v17, %v663_v32  ;;  %v3766_v23 = vsel %vm694_vm1, %v790_v63, %v791_v11  ;;  %370 = vrot.lane.b32.xlu1 %v364_v15, %s3315_s27  ;;  %v3773_v45 = vmul.f32 %v3729_v17, %v764_v37  ;;  %v3794_v37 = vld [vmem:[%s3448_s20 + $0x50] sm:$0xff] }
  0x53   : > { %v3769_v6 = vsel %vm847_vm0, %v943_v24, %v944_v12  ;;  %v3776_v2 = vmul.f32 %v3729_v17, %v783_v38  ;;  %v6293_v26 = vrot.slane %v3718_v31, 2  ;;  %v3784_v63 = vadd.f32 %v658_v28, %v3657_v52  ;;  %354 = vrot.lane.b32.xlu0 %v346_v7, %s3315_s27 }
  0x54   : > { %v3787_v24 = vmul.f32 %v3729_v17, %v917_v46  ;;  %v3790_v15 = vmul.f32 %v3729_v17, %v936_v47  ;;  %v6250_v38 = vrot.slane %v3773_v45, 1  ;;  %v366_v30 = vmul.f32 %v3729_v17, %v363_v25 }
  0x55   : > { %v3781_v32 = vsel %vm847_vm0, %v924_v49, %v6293_v26  ;;  %v6257_v19 = vrot.slane %v3776_v2, 1  ;;  %v365_v52 = vmul.f32 %v3665_v9, %v363_v25  ;;  %v3801_v46 = vadd.f32 %v666_v29, %v3672_v18  ;;  %v3814_v29 = vld [vmem:[%s3448_s20 + $0x48] sm:$0xff] }
  0x56   : > { %6294 = vst [vmem:[#allocation19_spill] sm:$0xff] %v3790_v15  ;;  %v6258_v47 = vrot.slane %v3790_v15, 2  ;;  %v383_v41 = vstv %s3736_s25  ;;  %v671_v49 = vstv %s3738_s26  ;;  %v775_v7 = vsel %vm694_vm1, %v772_v34, %v6250_v38  ;;  %374 = vrot.lane.b32.xlu1 %v366_v30, %s3315_s27  ;;  %s3022_s25 = sld [smem:[#allocation2 + $0x6]]  ;;  %s3036_s26 = sld [smem:[#allocation2 + $0x14]] }
  0x57   : > { %v385_v25 = vmul.f32 %v3794_v37, %v383_v41  ;;  %v673_v18 = vmul.f32 %v3794_v37, %v671_v49  ;;  %v794_v26 = vsel %vm694_vm1, %v791_v11, %v6257_v19  ;;  %372 = vrot.lane.b32.xlu0 %v365_v52, %s3315_s27  ;;  %v679_v28 = vstv %s3747_s28  ;;  %s3019_s28 = sld [smem:[#allocation2 + $0x3]] }
  0x58   : > { %v3822_v34 = vsel %vm847_vm0, %v944_v12, %v6258_v47  ;;  %v802_v30 = vstv %s3749_s29  ;;  %v681_v9 = vmul.f32 %v3794_v37, %v679_v28  ;;  %v821_v17 = vstv %s3753_s30  ;;  %s3017_s29 = sld [smem:[#allocation2 + $0x1]]  ;;  %s3021_s30 = sld [smem:[#allocation2 + $0x5]] }
  0x59   : > { %v676_v38 = vadd.f32 %v673_v18, %v3715_v10  ;;  %v3832_v33 = vmul.f32 %v3794_v37, %v802_v30  ;;  %v3836_v11 = vmul.f32 %v3794_v37, %v821_v17  ;;  %v955_v19 = vstv %s3761_s4  ;;  %s3982_s4 = sld [smem:[#allocation2 + $0x7]] }
  0x5a   : > { %v974_v12 = vstv %s3763_s5  ;;  %v384_v47 = vmul.f32 %v3814_v29, %v383_v41  ;;  %v684_v52 = vadd.f32 %v681_v9, %v3723_v5  ;;  %v3845_v10 = vmul.f32 %v3794_v37, %v955_v19  ;;  %392 = vrot.lane.b32.xlu1 %v385_v25, %s3315_s27  ;;  %s3037_s5 = sld [smem:[#allocation2 + $0x15]] }
  0x5b   : > { %v704_v57 = vadd.f32 %v3541_v54, %v676_v38  ;;  %v810_v40 = vrot.slane %v3832_v33, 1  ;;  %v829_v18 = vrot.slane %v3836_v11, 1  ;;  %v3850_v1 = vmul.f32 %v3794_v37, %v974_v12 }
  0x5c   : > { %v672_v3 = vmul.f32 %v3814_v29, %v671_v49  ;;  %v680_v4 = vmul.f32 %v3814_v29, %v679_v28  ;;  %390 = vrot.lane.b32.xlu0 %v384_v47, %s3315_s27  ;;  %v723_v54 = vadd.f32 %v3555_v58, %v684_v52  ;;  %v963_v33 = vrot.slane %v3845_v10, 2  ;;  %v3866_v52 = vld [vmem:[%s3448_s20 + $0x58] sm:$0x3f] }
  0x5d   : > { %v742_v9 = vadd.f32 %v3677_v8, %v704_v57  ;;  %v803_v5 = vmul.f32 %v3814_v29, %v802_v30  ;;  %v982_v38 = vrot.slane %v3850_v1, 2  ;;  %v822_v15 = vmul.f32 %v3814_v29, %v821_v17 }
  0x5e   : > { %v675_v25 = vadd.f32 %v672_v3, %v3744_v42  ;;  %v683_v11 = vadd.f32 %v680_v4, %v667_v14  ;;  %v761_v0 = vadd.f32 %v3686_v27, %v723_v54  ;;  %v956_v47 = vmul.f32 %v3814_v29, %v955_v19 }
  0x5f   : > { %v809_v51 = vrot.slane %v803_v5, 1  ;;  %v975_v58 = vmul.f32 %v3814_v29, %v974_v12  ;;  %v828_v10 = vrot.slane %v822_v15, 1  ;;  %v3871_v1 = vstv %s3827_s6  ;;  %s3038_s6 = sld [smem:[#allocation2 + $0x16]] }
  0x60   : > { %v703_v57 = vadd.f32 %v3536_v53, %v675_v25  ;;  %v722_v8 = vadd.f32 %v3544_v55, %v683_v11  ;;  %v962_v4 = vrot.slane %v956_v47, 2  ;;  %v404_v27 = vmul.f32 %v3814_v29, %v3871_v1 }
  0x61   : > { %v811_v3 = vsel %vm694_vm1, %v809_v51, %v810_v40  ;;  %v981_v14 = vrot.slane %v975_v58, 2  ;;  %v830_v5 = vsel %vm694_vm1, %v828_v10, %v829_v18  ;;  %v386_v53 = vmul.f32 %v3866_v52, %v383_v41 }
  0x62   : > { %v741_v42 = vadd.f32 %v3631_v48, %v703_v57  ;;  %v760_v54 = vadd.f32 %v3634_v43, %v722_v8  ;;  %v964_v55 = vsel %vm847_vm0, %v962_v4, %v963_v33  ;;  %410 = vrot.lane.b32.xlu1 %v404_v27, %s3315_s27  ;;  %v674_v51 = vmul.f32 %v3866_v52, %v671_v49 }
  0x63   : > { %v983_v15 = vsel %vm847_vm0, %v981_v14, %v982_v38  ;;  %v682_v25 = vmul.f32 %v3866_v52, %v679_v28  ;;  %v780_v47 = vadd.f32 %v775_v7, %v742_v9  ;;  %v799_v43 = vadd.f32 %v794_v26, %v761_v0  ;;  %394 = vrot.lane.b32.xlu0 %v386_v53, %s3315_s27 }
  0x64   : > { %v779_v11 = vadd.f32 %v3757_v35, %v741_v42  ;;  %v798_v48 = vadd.f32 %v3766_v23, %v760_v54  ;;  %v677_v41 = vadd.f32 %v674_v51, %v3784_v63  ;;  %v805_v57 = vmul.f32 %v3866_v52, %v802_v30 }
  0x65   : > { %v685_v58 = vadd.f32 %v682_v25, %v3801_v46  ;;  %v824_v8 = vmul.f32 %v3866_v52, %v821_v17  ;;  %v958_v28 = vmul.f32 %v3866_v52, %v955_v19  ;;  %v977_v35 = vmul.f32 %v3866_v52, %v974_v12 }
  0x66   : > { %v817_v10 = vadd.f32 %v811_v3, %v779_v11  ;;  %v836_v49 = vadd.f32 %v830_v5, %v798_v48  ;;  %v6295_v23 = vrot.slane %v3478_v13, 1  ;;  %v6296_v0 = vrot.slane %v3486_v16, 1 }
  0x67   : > { %v812_v9 = vrot.slane %v805_v57, 1  ;;  %v831_v63 = vrot.slane %v824_v8, 1  ;;  %v965_v4 = vrot.slane %v958_v28, 2  ;;  %v984_v17 = vrot.slane %v977_v35, 2  ;;  %v6309_v8 = vld [vmem:[#allocation15_spill] sm:$0xff] }
  0x68   : > { %v705_v7 = vadd.f32 %v6295_v23, %v677_v41  ;;  %v724_v26 = vadd.f32 %v6296_v0, %v685_v58  ;;  %v856_v46 = vadd.f32 %v3558_v59, %v817_v10  ;;  %v875_v30 = vadd.f32 %v3566_v61, %v836_v49  ;;  %v6307_v58 = vld [vmem:[#allocation14_spill] sm:$0xff]  ;;  %v6314_v35 = vld [vmem:[#allocation19_spill] sm:$0xff] }
  0x69   : > { %v6297_v3 = vrot.slane %v3638_v50, 1  ;;  %v6298_v19 = vrot.slane %v3651_v56, 1  ;;  %v813_v13 = vsel %vm694_vm1, %v810_v40, %v812_v9  ;;  %v832_v27 = vsel %vm694_vm1, %v829_v18, %v831_v63  ;;  %v6316_v0 = vld [vmem:[#allocation10_spill] sm:$0xff] }
  0x6a   : > { %v894_v16 = vadd.f32 %v3644_v22, %v856_v46  ;;  %v913_v59 = vadd.f32 %v3647_v44, %v875_v30  ;;  %v818_v61 = vadd.f32 %v813_v13, %v780_v47  ;;  %v837_v42 = vadd.f32 %v832_v27, %v799_v43  ;;  %v6322_v27 = vld [vmem:[#allocation12_spill] sm:$0xff] }
  0x6b   : > { %v743_v14 = vadd.f32 %v6297_v3, %v705_v7  ;;  %v762_v12 = vadd.f32 %v6298_v19, %v724_v26  ;;  %v6299_v50 = vrot.slane %v3773_v45, 1  ;;  %v6300_v56 = vrot.slane %v3776_v2, 1 }
  0x6c   : > { %v966_v40 = vsel %vm847_vm0, %v963_v33, %v965_v4  ;;  %v985_v18 = vsel %vm847_vm0, %v982_v38, %v984_v17  ;;  %v932_v53 = vadd.f32 %v3781_v32, %v894_v16  ;;  %v951_v51 = vadd.f32 %v3769_v6, %v913_v59 }
  0x6d   : > { %v781_v54 = vadd.f32 %v6299_v50, %v743_v14  ;;  %v800_v5 = vadd.f32 %v6300_v56, %v762_v12  ;;  %v857_v22 = vadd.f32 %v3563_v60, %v818_v61  ;;  %v876_v44 = vadd.f32 %v3572_v62, %v837_v42  ;;  %v6321_v12 = vld [vmem:[#allocation11_spill] sm:$0xff]  ;;  %v6323_v56 = vld [vmem:[#allocation13_spill] sm:$0xff] }
  0x6e   : > { %v6301_v25 = vrot.slane %v3787_v24, 2  ;;  %v6302_v45 = vrot.slane %v3718_v31, 2  ;;  %v3927_v33 = vadd.f32 %v964_v55, %v932_v53  ;;  %v3929_v38 = vadd.f32 %v983_v15, %v951_v51  ;;  %v6320_v24 = vld [vmem:[#allocation8_spill] sm:$0xff]  ;;  %v6324_v53 = vld [vmem:[#allocation18_spill] sm:$0xff] }
  0x6f   : > { %v819_v2 = vadd.f32 %v812_v9, %v781_v54  ;;  %v838_v48 = vadd.f32 %v831_v63, %v800_v5  ;;  %v895_v6 = vadd.f32 %v3699_v36, %v857_v22  ;;  %v914_v60 = vadd.f32 %v3707_v39, %v876_v44  ;;  %v6317_v9 = vld [vmem:[#allocation9_spill] sm:$0xff] }
  0x70   : > { %v928_v11 = vsel %vm847_vm0, %v6302_v45, %v6301_v25  ;;  %6303 = vst [vmem:[#allocation20_spill] sm:$0xff] %v3927_v33  ;;  %6304 = vst [vmem:[#allocation21_spill] sm:$0xff] %v3929_v38  ;;  %v6305_v62 = vrot.slane %v3494_v20, 2  ;;  %v6306_v47 = vrot.slane %v3497_v21, 2  ;;  %v406_v43 = vmul.f32 %v3866_v52, %v3871_v1 }
  0x71   : > { %v405_v41 = vmul.f32 %v3794_v37, %v3871_v1  ;;  %v933_v55 = vadd.f32 %v928_v11, %v895_v6  ;;  %v952_v15 = vadd.f32 %v3822_v34, %v914_v60  ;;  %v6308_v57 = vrot.slane %v6307_v58, 2 }
  0x72   : > { %v858_v32 = vadd.f32 %v6305_v62, %v819_v2  ;;  %v877_v31 = vadd.f32 %v6306_v47, %v838_v48  ;;  %v6310_v39 = vrot.slane %v6309_v8, 2  ;;  %414 = vrot.lane.b32.xlu1 %v406_v43, %s3315_s27  ;;  %v423_v20 = vstv %s3906_s7  ;;  %s3039_s7 = sld [smem:[#allocation2 + $0x17]] }
  0x73   : > { %412 = vrot.lane.b32.xlu0 %v405_v41, %s3315_s27  ;;  %v443_v21 = vstv %s3908_s8  ;;  %v3950_v49 = vadd.f32 %v966_v40, %v933_v55  ;;  %v3952_v28 = vadd.f32 %v985_v18, %v952_v15  ;;  %v6313_v1 = vmov %v6301_v25  ;;  %v6325_v25 = vld [vmem:[#allocation17_spill] sm:$0xff]  ;;  %s3040_s8 = sld [smem:[#allocation2 + $0x30]] }
  0x74   : > { %v896_v36 = vadd.f32 %v6308_v57, %v858_v32  ;;  %v915_v10 = vadd.f32 %v6310_v39, %v877_v31  ;;  %v6315_v23 = vrot.slane %v6314_v35, 2  ;;  %v425_v26 = vmul.f32 %v423_v20, %v6316_v0  ;;  %v6326_v57 = vld [vmem:[#allocation16_spill] sm:$0xff] }
  0x75   : > { %6311 = vst [vmem:[#allocation14_spill] sm:$0xff] %v3950_v49  ;;  %6312 = vst [vmem:[#allocation15_spill] sm:$0xff] %v3952_v28  ;;  %v424_v63 = vmul.f32 %v423_v20, %v6317_v9  ;;  %v444_v46 = vmul.f32 %v443_v21, %v6317_v9  ;;  %v426_v14 = vmul.f32 %v423_v20, %v6320_v24  ;;  %v463_v19 = vstv %s3034_s9  ;;  %s3317_s9 = smov 16  }
  0x76   : > { %v934_v34 = vadd.f32 %v6313_v1, %v896_v36  ;;  %v953_v7 = vadd.f32 %v6315_v23, %v915_v10  ;;  %432 = vrot.lane.b32.xlu1 %v425_v26, %s3316_s10  ;;  %v465_v13 = vmul.f32 %v6321_v12, %v463_v19  ;;  %v464_v16 = vmul.f32 %v6322_v27, %v463_v19 }
  0x77   : > { %430 = vrot.lane.b32.xlu0 %v424_v63, %s3316_s10  ;;  %v483_v59 = vstv %s3035_s11  ;;  %v3976_v61 = vstv %s198_s17  ;;  %v3978_v42 = vstv %s3018_s19  ;;  %v466_v5 = vmul.f32 %v6323_v56, %v463_v19  ;;  %s3318_s11 = smov 32   ;;  %s3319_s17 = smov 48  }
  0x78   : > { %v3961_v30 = vadd.f32 %v965_v4, %v934_v34  ;;  %v3963_v3 = vadd.f32 %v984_v17, %v953_v7  ;;  %v446_v4 = vmul.f32 %v443_v21, %v6320_v24  ;;  %v445_v17 = vmul.f32 %v443_v21, %v6316_v0  ;;  %s3320_s19 = smov 64  }
  0x79   : > { %v3980_v50 = vstv %s3020_s24  ;;  %v484_v54 = vmul.f32 %v6322_v27, %v483_v59  ;;  %v218_v40 = vmul.f32 %v6323_v56, %v3978_v42  ;;  %v3990_v18 = vstv %s3022_s25  ;;  %s3321_s24 = smov 80   ;;  %s3322_s25 = smov 96  }
  0x7a   : > { %6318 = vst [vmem:[#allocation19_spill] sm:$0xff] %v3961_v30  ;;  %6319 = vst [vmem:[#allocation10_spill] sm:$0xff] %v3963_v3  ;;  %450 = vrot.lane.b32.xlu1 %v444_v46, %s3316_s10  ;;  %v234_v51 = vmul.f32 %v6324_v53, %v3980_v50  ;;  %v202_v22 = vmul.f32 %v3976_v61, %v6320_v24  ;;  %v216_v44 = vmul.f32 %v6322_v27, %v3978_v42 }
  0x7b   : > { %434 = vrot.lane.b32.xlu0 %v426_v14, %s3316_s10  ;;  %v232_v45 = vmul.f32 %v6325_v25, %v3980_v50  ;;  %v200_v11 = vmul.f32 %v3976_v61, %v6317_v9  ;;  %v486_v2 = vmul.f32 %v6323_v56, %v483_v59  ;;  %v485_v48 = vmul.f32 %v6321_v12, %v483_v59 }
  0x7c   : > { %v250_v6 = vmul.f32 %v3866_v52, %v3990_v18  ;;  %v221_v60 = vadd.f32 %v218_v40, %v202_v22  ;;  %v503_v62 = vstv %s3036_s26  ;;  %v248_v32 = vmul.f32 %v3814_v29, %v3990_v18  ;;  %s3041_s26 = sld [smem:[#allocation2 + $0x31]] }
  0x7d   : > { %v219_v47 = vadd.f32 %v216_v44, %v200_v11  ;;  %v4010_v31 = vstv %s3019_s28  ;;  %v4012_v41 = vstv %s3017_s29  ;;  %v4014_v55 = vstv %s3021_s30  ;;  %s3324_s28 = smov 15   ;;  %s3325_s29 = smov 31  }
  0x7e   : > { %454 = vrot.lane.b32.xlu1 %v446_v4, %s3316_s10  ;;  %v237_v43 = vadd.f32 %v234_v51, %v221_v60  ;;  %v224_v58 = vmul.f32 %v6322_v27, %v4010_v31  ;;  %v505_v36 = vmul.f32 %v6326_v57, %v503_v62  ;;  %v504_v8 = vmul.f32 %v6325_v25, %v503_v62  ;;  %s3326_s30 = smov 47  }
  0x7f   : > { %452 = vrot.lane.b32.xlu0 %v445_v17, %s3316_s10  ;;  %v235_v15 = vadd.f32 %v232_v45, %v219_v47  ;;  %v4023_v10 = vstv %s3982_s4  ;;  %v240_v21 = vmul.f32 %v6325_v25, %v4014_v55  ;;  %v208_v1 = vmul.f32 %v4012_v41, %v6317_v9  ;;  %s3327_s4 = smov 63  }
  0x80   : > { %v4020_v39 = vadd.f32 %v250_v6, %v237_v43  ;;  %v523_v34 = vstv %s3037_s5  ;;  %v256_v35 = vmul.f32 %v3814_v29, %v4023_v10  ;;  %v210_v7 = vmul.f32 %v4012_v41, %v6320_v24  ;;  %s3328_s5 = smov 79  }
  0x81   : > { %v4027_v20 = vadd.f32 %v248_v32, %v235_v15  ;;  %v227_v23 = vadd.f32 %v224_v58, %v208_v1  ;;  %v226_v26 = vmul.f32 %v6323_v56, %v4010_v31  ;;  %v242_v63 = vmul.f32 %v6324_v53, %v4014_v55 }
  0x82   : > { %472 = vrot.lane.b32.xlu1 %v465_v13, %s3316_s10  ;;  %v524_v9 = vmul.f32 %v6325_v25, %v523_v34  ;;  %v506_v46 = vmul.f32 %v6324_v53, %v503_v62  ;;  %v258_v24 = vmul.f32 %v3866_v52, %v4023_v10  ;;  %v526_v13 = vmul.f32 %v6324_v53, %v523_v34 }
  0x83   : > { %470 = vrot.lane.b32.xlu0 %v464_v16, %s3316_s10  ;;  %v243_v14 = vadd.f32 %v240_v21, %v227_v23  ;;  %v229_v4 = vadd.f32 %v226_v26, %v210_v7  ;;  %v525_v27 = vmul.f32 %v6326_v57, %v523_v34  ;;  %v543_v16 = vstv %s3038_s6  ;;  %s3329_s6 = smov 95  }
  0x84   : > { %v544_v56 = vmul.f32 %v3814_v29, %v543_v16  ;;  %v546_v53 = vmul.f32 %v3866_v52, %v543_v16 }
  0x85   : > { %v4047_v17 = vadd.f32 %v256_v35, %v243_v14  ;;  %v245_v19 = vadd.f32 %v242_v63, %v229_v4  ;;  %v201_v14 = vmul.f32 %v3976_v61, %v6316_v0  ;;  %v217_v4 = vmul.f32 %v6321_v12, %v3978_v42 }
  0x86   : > { %490 = vrot.lane.b32.xlu1 %v484_v54, %s3316_s10  ;;  %v545_v54 = vmul.f32 %v3794_v37, %v543_v16 }
  0x87   : > { %474 = vrot.lane.b32.xlu0 %v466_v5, %s3316_s10  ;;  %v4053_v59 = vadd.f32 %v258_v24, %v245_v19  ;;  %v563_v5 = vstv %s3039_s7  ;;  %s3330_s7 = smov 111  }
  0x88   : > { %v564_v40 = vmul.f32 %v3814_v29, %v563_v5  ;;  %v566_v51 = vmul.f32 %v3866_v52, %v563_v5  ;;  %v565_v22 = vmul.f32 %v3794_v37, %v563_v5  ;;  %v249_v5 = vmul.f32 %v3794_v37, %v3990_v18 }
  0x8a   : > { %494 = vrot.lane.b32.xlu1 %v486_v2, %s3316_s10 }
  0x8b   : > { %492 = vrot.lane.b32.xlu0 %v485_v48, %s3316_s10 }
  0x8e   : > { %512 = vrot.lane.b32.xlu1 %v505_v36, %s3316_s10 }
  0x8f   : > { %510 = vrot.lane.b32.xlu0 %v504_v8, %s3316_s10 }
  0x92   : > { %530 = vrot.lane.b32.xlu1 %v524_v9, %s3316_s10 }
  0x93   : > { %514 = vrot.lane.b32.xlu0 %v506_v46, %s3316_s10 }
  0x96   : > { %534 = vrot.lane.b32.xlu1 %v526_v13, %s3316_s10  ;;  %v220_v13 = vadd.f32 %v217_v4, %v201_v14 }
  0x97   : > { %532 = vrot.lane.b32.xlu0 %v525_v27, %s3316_s10  ;;  %v233_v27 = vmul.f32 %v6326_v57, %v3980_v50 }
  0x9a   : > { %552 = vrot.lane.b32.xlu1 %v545_v54, %s3316_s10 }
  0x9b   : > { %550 = vrot.lane.b32.xlu0 %v544_v56, %s3316_s10  ;;  %v236_v56 = vadd.f32 %v233_v27, %v220_v13 }
  0x9d   : > { %v252_v61 = vadd.f32 %v249_v5, %v236_v56 }
  0x9e   : > { %570 = vrot.lane.b32.xlu1 %v564_v40, %s3316_s10 }
  0x9f   : > { %554 = vrot.lane.b32.xlu0 %v546_v53, %s3316_s10 }
  0xa2   : > { %574 = vrot.lane.b32.xlu1 %v566_v51, %s3316_s10  ;;  %v271_v44 = vpop.permute.xlu0 %270  ;;  %v275_v25 = vpop.permute.xlu1 %274 }
  0xa3   : > { %572 = vrot.lane.b32.xlu0 %v565_v22, %s3316_s10  ;;  %v279_v42 = vadd.f32 %v271_v44, %v4027_v20  ;;  %v281_v13 = vadd.f32 %v275_v25, %v4020_v39 }
  0xa6   : > { %v273_v45 = vpop.permute.xlu0 %272 }
  0xa7   : > { %v280_v51 = vadd.f32 %v273_v45, %v252_v61 }
  0xa9   : > { %v4069_v11 = vpop.permute.xlu1 %290 }
  0xab   : > { %v4073_v2 = vpop.permute.xlu0 %292 }
  0xad   : > { %v4071_v29 = vpop.permute.xlu1 %294 }
  0xb1   : > { %v313_v48 = vpop.permute.xlu1 %312  ;;  %v311_v6 = vpop.permute.xlu0 %310 }
  0xb2   : > { %v320_v50 = vadd.f32 %v313_v48, %v280_v51  ;;  %v319_v4 = vadd.f32 %v311_v6, %v279_v42 }
  0xb6   : > { %v315_v52 = vpop.permute.xlu0 %314 }
  0xb7   : > { %v4075_v60 = vpop.permute.xlu1 %330  ;;  %v321_v56 = vadd.f32 %v315_v52, %v281_v13 }
  0xba   : > { %v4079_v32 = vpop.permute.xlu0 %332 }
  0xbb   : > { %v4077_v62 = vpop.permute.xlu1 %334 }
  0xbf   : > { %v353_v47 = vpop.permute.xlu1 %352 }
  0xc0   : > { %v351_v43 = vpop.permute.xlu0 %350  ;;  %v360_v27 = vadd.f32 %v353_v47, %v320_v50 }
  0xc1   : > { %v359_v3 = vadd.f32 %v351_v43, %v319_v4  ;;  %v583_v43 = vstv %s3040_s8  ;;  %s3332_s8 = smov 13  }
  0xc4   : > { %v4081_v15 = vpop.permute.xlu1 %370 }
  0xc5   : > { %v355_v58 = vpop.permute.xlu0 %354 }
  0xc6   : > { %v361_v30 = vadd.f32 %v355_v58, %v321_v56  ;;  %v3229_v56 = vld [vmem:[%s3448_s20 + $0x8] sm:$0xff] }
  0xc8   : > { %v4083_v36 = vpop.permute.xlu1 %374 }
  0xc9   : > { %v4085_v8 = vpop.permute.xlu0 %372 }
  0xcc   : > { %v393_v21 = vpop.permute.xlu1 %392 }
  0xcd   : > { %v400_v5 = vadd.f32 %v393_v21, %v360_v27 }
  0xce   : > { %v391_v1 = vpop.permute.xlu0 %390 }
  0xcf   : > { %v399_v28 = vadd.f32 %v391_v1, %v359_v3 }
  0xd4   : > { %v4087_v34 = vpop.permute.xlu1 %410 }
  0xd5   : > { %v395_v35 = vpop.permute.xlu0 %394 }
  0xd6   : > { %v401_v45 = vadd.f32 %v395_v35, %v361_v30 }
  0xe4   : > { %v4089_v23 = vpop.permute.xlu1 %414 }
  0xe5   : > { %v4091_v7 = vpop.permute.xlu0 %412 }
  0xe8   : > { %v433_v26 = vpop.permute.xlu1 %432 }
  0xe9   : > { %v431_v63 = vpop.permute.xlu0 %430  ;;  %v440_v33 = vadd.f32 %v433_v26, %v400_v5  ;;  %v209_v5 = vmul.f32 %v3229_v56, %v4012_v41 }
  0xea   : > { %v439_v49 = vadd.f32 %v431_v63, %v399_v28 }
  0xec   : > { %v4093_v9 = vpop.permute.xlu1 %450 }
  0xed   : > { %v435_v46 = vpop.permute.xlu0 %434 }
  0xee   : > { %v441_v39 = vadd.f32 %v435_v46, %v401_v45  ;;  %v3230_v45 = vld [vmem:[%s3448_s20 + $0x20] sm:$0xff]  ;;  %s3323_s20 = smov 112  }
  0xf0   : > { %v4099_v24 = vpop.permute.xlu1 %454 }
  0xf1   : > { %v4101_v19 = vpop.permute.xlu0 %452 }
  0xf4   : > { %v473_v16 = vpop.permute.xlu1 %472 }
  0xf5   : > { %v471_v54 = vpop.permute.xlu0 %470  ;;  %v480_v48 = vadd.f32 %v473_v16, %v440_v33 }
  0xf6   : > { %v479_v6 = vadd.f32 %v471_v54, %v439_v49 }
  0xf8   : > { %v4107_v40 = vpop.permute.xlu1 %490 }
  0xf9   : > { %v475_v0 = vpop.permute.xlu0 %474 }
  0xfa   : > { %v481_v51 = vadd.f32 %v475_v0, %v441_v39  ;;  %v241_v39 = vmul.f32 %v6326_v57, %v4014_v55  ;;  %v299_v55 = vadd.f32 %v4069_v11, %v4047_v17 }
  0xfc   : > { %v4109_v53 = vpop.permute.xlu1 %494 }
  0xfd   : > { %v4111_v12 = vpop.permute.xlu0 %492 }
 0x100   : > { %v513_v22 = vpop.permute.xlu1 %512 }
 0x101   : > { %v511_v14 = vpop.permute.xlu0 %510  ;;  %v520_v25 = vadd.f32 %v513_v22, %v480_v48  ;;  %v225_v48 = vmul.f32 %v3230_v45, %v4010_v31  ;;  %v257_v31 = vmul.f32 %v3794_v37, %v4023_v10  ;;  %v301_v37 = vadd.f32 %v4071_v29, %v4053_v59 }
 0x102   : > { %v519_v47 = vadd.f32 %v511_v14, %v479_v6 }
 0x103   : > { %v228_v6 = vadd.f32 %v225_v48, %v209_v5  ;;  %v341_v17 = vadd.f32 %v4077_v62, %v301_v37 }
 0x104   : > { %v4115_v18 = vpop.permute.xlu1 %530 }
 0x105   : > { %v515_v38 = vpop.permute.xlu0 %514  ;;  %v244_v41 = vadd.f32 %v241_v39, %v228_v6 }
 0x106   : > { %v521_v3 = vadd.f32 %v515_v38, %v481_v51 }
 0x107   : > { %v260_v57 = vadd.f32 %v257_v31, %v244_v41 }
 0x108   : > { %v4117_v20 = vpop.permute.xlu1 %534 }
 0x109   : > { %v4119_v44 = vpop.permute.xlu0 %532 }
 0x10c   : > { %v553_v61 = vpop.permute.xlu1 %552 }
 0x10d   : > { %v551_v42 = vpop.permute.xlu0 %550  ;;  %v560_v52 = vadd.f32 %v553_v61, %v520_v25  ;;  %v339_v25 = vadd.f32 %v4075_v60, %v299_v55  ;;  %v603_v61 = vstv %s3041_s26  ;;  %s3340_s26 = smov 12  }
 0x10e   : > { %v559_v21 = vadd.f32 %v551_v42, %v519_v47  ;;  %v300_v47 = vadd.f32 %v4073_v2, %v260_v57 }
 0x10f   : > { %v585_v58 = vadd.f32 %v583_v43, %v560_v52  ;;  %v379_v10 = vadd.f32 %v4081_v15, %v339_v25 }
 0x110   : > { %v584_v1 = vadd.f32 %v583_v43, %v559_v21  ;;  %v340_v60 = vadd.f32 %v4079_v32, %v300_v47  ;;  %v571_v2 = vpop.permute.xlu1 %570 }
 0x111   : > { %v555_v28 = vpop.permute.xlu0 %554  ;;  %v588_v26 = vmul.f32 0.5, %v585_v58  ;;  %v419_v11 = vadd.f32 %v4087_v34, %v379_v10 }
 0x112   : > { %v587_v63 = vmul.f32 0.5, %v584_v1  ;;  %v561_v50 = vadd.f32 %v555_v28, %v521_v3  ;;  %v380_v29 = vadd.f32 %v4085_v8, %v340_v60 }
 0x113   : > { %3199 = vtanh.f32 %v588_v26  ;;  %v459_v59 = vadd.f32 %v4093_v9, %v419_v11 }
 0x114   : > { %v586_v30 = vadd.f32 %v583_v43, %v561_v50  ;;  %3201 = vtanh.f32 %v587_v63  ;;  %v381_v43 = vadd.f32 %v4083_v36, %v341_v17  ;;  %v420_v32 = vadd.f32 %v4091_v7, %v380_v29  ;;  %v575_v7 = vpop.permute.xlu1 %574 }
 0x115   : > { %v499_v15 = vadd.f32 %v4107_v40, %v459_v59  ;;  %v573_v42 = vpop.permute.xlu0 %572 }
 0x116   : > { %v589_v33 = vmul.f32 0.5, %v586_v30  ;;  %v421_v62 = vadd.f32 %v4089_v23, %v381_v43  ;;  %v460_v8 = vadd.f32 %v4101_v19, %v420_v32 }
 0x117   : > { %v539_v34 = vadd.f32 %v4115_v18, %v499_v15 }
 0x118   : > { %3203 = vtanh.f32 %v589_v33  ;;  %v461_v36 = vadd.f32 %v4099_v24, %v421_v62  ;;  %v500_v40 = vadd.f32 %v4111_v12, %v460_v8 }
 0x119   : > { %v579_v23 = vadd.f32 %v571_v2, %v539_v34 }
 0x11a   : > { %v501_v9 = vadd.f32 %v4109_v53, %v461_v36  ;;  %v540_v18 = vadd.f32 %v4119_v44, %v500_v40 }
 0x11b   : > { %v604_v19 = vadd.f32 %v603_v61, %v579_v23 }
 0x11c   : > { %v541_v24 = vadd.f32 %v4117_v20, %v501_v9  ;;  %v580_v53 = vadd.f32 %v573_v42, %v540_v18 }
 0x11d   : > { %v3200_v49 = vpop.eup %3199  ;;  %v607_v12 = vmul.f32 0.5, %v604_v19 }
 0x11e   : > { %v3202_v35 = vpop.eup %3201  ;;  %v594_v46 = vmul.f32 0.5, %v3200_v49  ;;  %v581_v51 = vadd.f32 %v575_v7, %v541_v24  ;;  %v605_v20 = vadd.f32 %v603_v61, %v580_v53 }
 0x11f   : > { %v593_v16 = vmul.f32 0.5, %v3202_v35  ;;  %3205 = vtanh.f32 %v607_v12 }
 0x120   : > { %v597_v54 = vadd.f32 0.5, %v594_v46  ;;  %v606_v52 = vadd.f32 %v603_v61, %v581_v51  ;;  %v608_v21 = vmul.f32 0.5, %v605_v20 }
 0x121   : > { %v596_v0 = vadd.f32 0.5, %v593_v16 }
 0x122   : > { %v3204_v22 = vpop.eup %3203  ;;  %v4121_v14 = vmul.f32 %v597_v54, %v585_v58  ;;  %v609_v44 = vmul.f32 0.5, %v606_v52 }
 0x123   : > { %v4123_v38 = vmul.f32 %v596_v0, %v584_v1  ;;  %v595_v4 = vmul.f32 0.5, %v3204_v22 }
 0x124   : > { %1037 = vrot.lane.b32.xlu1 %v4121_v14, %s3317_s9  ;;  %3207 = vtanh.f32 %v609_v44 }
 0x125   : > { %v598_v13 = vadd.f32 0.5, %v595_v4  ;;  %1035 = vrot.lane.b32.xlu0 %v4123_v38, %s3317_s9  ;;  %3209 = vtanh.f32 %v608_v21 }
 0x127   : > { %v4129_v27 = vmul.f32 %v598_v13, %v586_v30 }
 0x128   : > { %1044 = vrot.lane.b32.xlu1 %v4123_v38, %s3318_s11 }
 0x129   : > { %6327 = vst [vmem:[#allocation9_spill] sm:$0xff] %v4129_v27  ;;  %1039 = vrot.lane.b32.xlu0 %v4129_v27, %s3317_s9  ;;  %v3206_v3 = vpop.eup %3205 }
 0x12a   : > { %v613_v58 = vmul.f32 0.5, %v3206_v3 }
 0x12c   : > { %1048 = vrot.lane.b32.xlu1 %v4129_v27, %s3318_s11  ;;  %v616_v26 = vadd.f32 0.5, %v613_v58 }
 0x12d   : > { %1046 = vrot.lane.b32.xlu0 %v4121_v14, %s3318_s11 }
 0x12e   : > { %v3208_v1 = vpop.eup %3207  ;;  %v4246_v30 = vmul.f32 %v616_v26, %v604_v19 }
 0x12f   : > { %v3210_v28 = vpop.eup %3209  ;;  %v615_v63 = vmul.f32 0.5, %v3208_v1 }
 0x130   : > { %1055 = vrot.lane.b32.xlu1 %v4121_v14, %s3319_s17  ;;  %v614_v50 = vmul.f32 0.5, %v3210_v28  ;;  %6328 = vst [vmem:[#allocation8_spill] sm:$0xff] %v4246_v30 }
 0x131   : > { %1053 = vrot.lane.b32.xlu0 %v4123_v38, %s3319_s17  ;;  %v618_v33 = vadd.f32 0.5, %v615_v63 }
 0x132   : > { %v617_v49 = vadd.f32 0.5, %v614_v50 }
 0x133   : > { %v4252_v35 = vmul.f32 %v618_v33, %v606_v52 }
 0x134   : > { %1062 = vrot.lane.b32.xlu1 %v4123_v38, %s3320_s19  ;;  %v4254_v46 = vmul.f32 %v617_v49, %v605_v20 }
 0x135   : > { %1057 = vrot.lane.b32.xlu0 %v4129_v27, %s3319_s17  ;;  %6329 = vst [vmem:[#allocation11_spill] sm:$0xff] %v4252_v35 }
 0x136   : > { %6330 = vst [vmem:[#allocation12_spill] sm:$0xff] %v4254_v46 }
 0x138   : > { %1066 = vrot.lane.b32.xlu1 %v4129_v27, %s3320_s19 }
 0x139   : > { %1064 = vrot.lane.b32.xlu0 %v4121_v14, %s3320_s19 }
 0x13c   : > { %1073 = vrot.lane.b32.xlu1 %v4121_v14, %s3321_s24 }
 0x13d   : > { %1071 = vrot.lane.b32.xlu0 %v4123_v38, %s3321_s24 }
 0x140   : > { %1080 = vrot.lane.b32.xlu1 %v4123_v38, %s3322_s25 }
 0x141   : > { %1075 = vrot.lane.b32.xlu0 %v4129_v27, %s3321_s24 }
 0x144   : > { %1084 = vrot.lane.b32.xlu1 %v4129_v27, %s3322_s25 }
 0x145   : > { %1082 = vrot.lane.b32.xlu0 %v4121_v14, %s3322_s25 }
 0x148   : > { %1091 = vrot.lane.b32.xlu1 %v4121_v14, %s3323_s20 }
 0x149   : > { %1089 = vrot.lane.b32.xlu0 %v4123_v38, %s3323_s20 }
 0x14c   : > { %1159 = vrot.lane.b32.xlu1 %v4123_v38, %s3315_s27 }
 0x14d   : > { %1093 = vrot.lane.b32.xlu0 %v4129_v27, %s3323_s20 }
 0x150   : > { %1163 = vrot.lane.b32.xlu1 %v4129_v27, %s3315_s27 }
 0x151   : > { %1161 = vrot.lane.b32.xlu0 %v4121_v14, %s3315_s27 }
 0x154   : > { %1170 = vrot.lane.b32.xlu1 %v4121_v14, %s3324_s28 }
 0x155   : > { %1168 = vrot.lane.b32.xlu0 %v4123_v38, %s3324_s28 }
 0x158   : > { %1177 = vrot.lane.b32.xlu1 %v4123_v38, %s3325_s29 }
 0x159   : > { %1172 = vrot.lane.b32.xlu0 %v4129_v27, %s3324_s28 }
 0x15c   : > { %1181 = vrot.lane.b32.xlu1 %v4129_v27, %s3325_s29 }
 0x15d   : > { %1179 = vrot.lane.b32.xlu0 %v4121_v14, %s3325_s29 }
 0x160   : > { %1188 = vrot.lane.b32.xlu1 %v4121_v14, %s3326_s30 }
 0x161   : > { %1186 = vrot.lane.b32.xlu0 %v4123_v38, %s3326_s30 }
 0x164   : > { %1195 = vrot.lane.b32.xlu1 %v4123_v38, %s3327_s4 }
 0x165   : > { %1190 = vrot.lane.b32.xlu0 %v4129_v27, %s3326_s30 }
 0x168   : > { %1199 = vrot.lane.b32.xlu1 %v4129_v27, %s3327_s4 }
 0x169   : > { %1197 = vrot.lane.b32.xlu0 %v4121_v14, %s3327_s4 }
 0x16c   : > { %1206 = vrot.lane.b32.xlu1 %v4121_v14, %s3328_s5 }
 0x16d   : > { %1204 = vrot.lane.b32.xlu0 %v4123_v38, %s3328_s5 }
 0x170   : > { %1213 = vrot.lane.b32.xlu1 %v4123_v38, %s3329_s6 }
 0x171   : > { %1208 = vrot.lane.b32.xlu0 %v4129_v27, %s3328_s5 }
 0x174   : > { %1217 = vrot.lane.b32.xlu1 %v4129_v27, %s3329_s6 }
 0x175   : > { %1215 = vrot.lane.b32.xlu0 %v4121_v14, %s3329_s6 }
 0x178   : > { %1224 = vrot.lane.b32.xlu1 %v4121_v14, %s3330_s7 }
 0x179   : > { %1222 = vrot.lane.b32.xlu0 %v4123_v38, %s3330_s7 }
 0x17c   : > { %1288 = vrot.lane.b32.xlu1 %v4246_v30, %s3317_s9 }
 0x17d   : > { %1226 = vrot.lane.b32.xlu0 %v4129_v27, %s3330_s7 }
 0x180   : > { %1292 = vrot.lane.b32.xlu1 %v4252_v35, %s3317_s9 }
 0x181   : > { %1290 = vrot.lane.b32.xlu0 %v4254_v46, %s3317_s9  ;;  %s3333_s9 = smov 29  }
 0x184   : > { %1299 = vrot.lane.b32.xlu1 %v4254_v46, %s3318_s11 }
 0x185   : > { %1297 = vrot.lane.b32.xlu0 %v4246_v30, %s3318_s11 }
 0x188   : > { %1306 = vrot.lane.b32.xlu1 %v4246_v30, %s3319_s17 }
 0x189   : > { %1301 = vrot.lane.b32.xlu0 %v4252_v35, %s3318_s11  ;;  %s3334_s11 = smov 45  }
 0x18c   : > { %1310 = vrot.lane.b32.xlu1 %v4252_v35, %s3319_s17 }
 0x18d   : > { %1308 = vrot.lane.b32.xlu0 %v4254_v46, %s3319_s17  ;;  %s3335_s17 = smov 61  }
 0x190   : > { %1317 = vrot.lane.b32.xlu1 %v4254_v46, %s3320_s19 }
 0x191   : > { %1315 = vrot.lane.b32.xlu0 %v4246_v30, %s3320_s19 }
 0x194   : > { %1324 = vrot.lane.b32.xlu1 %v4246_v30, %s3321_s24 }
 0x195   : > { %1319 = vrot.lane.b32.xlu0 %v4252_v35, %s3320_s19  ;;  %s3336_s19 = smov 77  }
 0x196   : > { %v4280_v16 = vpop.permute.xlu1 %1037 }
 0x197   : > { %v4282_v54 = vpop.permute.xlu0 %1035 }
 0x198   : > { %1328 = vrot.lane.b32.xlu1 %v4252_v35, %s3321_s24 }
 0x199   : > { %1326 = vrot.lane.b32.xlu0 %v4254_v46, %s3321_s24  ;;  %s3337_s24 = smov 93  }
 0x19a   : > { %v4288_v0 = vpop.permute.xlu1 %1044 }
 0x19b   : > { %v4290_v22 = vpop.permute.xlu0 %1039 }
 0x19c   : > { %6331 = vst [vmem:[#allocation13_spill] sm:$0xff] %v4290_v22  ;;  %1335 = vrot.lane.b32.xlu1 %v4254_v46, %s3322_s25 }
 0x19d   : > { %1333 = vrot.lane.b32.xlu0 %v4246_v30, %s3322_s25 }
 0x19e   : > { %v4296_v4 = vpop.permute.xlu1 %1048 }
 0x19f   : > { %6332 = vst [vmem:[#allocation18_spill] sm:$0xff] %v4296_v4  ;;  %v4298_v13 = vpop.permute.xlu0 %1046 }
 0x1a0   : > { %1342 = vrot.lane.b32.xlu1 %v4246_v30, %s3323_s20 }
 0x1a1   : > { %1337 = vrot.lane.b32.xlu0 %v4252_v35, %s3322_s25  ;;  %s3338_s25 = smov 109  }
 0x1a2   : > { %v4304_v56 = vpop.permute.xlu1 %1055 }
 0x1a3   : > { %v4306_v5 = vpop.permute.xlu0 %1053 }
 0x1a4   : > { %1346 = vrot.lane.b32.xlu1 %v4252_v35, %s3323_s20 }
 0x1a5   : > { %1344 = vrot.lane.b32.xlu0 %v4254_v46, %s3323_s20  ;;  %s3339_s20 = smov 124  }
 0x1a6   : > { %v4312_v45 = vpop.permute.xlu1 %1062 }
 0x1a7   : > { %v4314_v48 = vpop.permute.xlu0 %1057 }
 0x1a8   : > { %6333 = vst [vmem:[#allocation17_spill] sm:$0xff] %v4314_v48  ;;  %1407 = vrot.lane.b32.xlu1 %v4254_v46, %s3315_s27 }
 0x1a9   : > { %1405 = vrot.lane.b32.xlu0 %v4246_v30, %s3315_s27 }
 0x1aa   : > { %v4320_v6 = vpop.permute.xlu1 %1066 }
 0x1ab   : > { %6334 = vst [vmem:[#allocation16_spill] sm:$0xff] %v4320_v6  ;;  %v4322_v39 = vpop.permute.xlu0 %1064 }
 0x1ac   : > { %1414 = vrot.lane.b32.xlu1 %v4246_v30, %s3324_s28 }
 0x1ad   : > { %1409 = vrot.lane.b32.xlu0 %v4252_v35, %s3315_s27  ;;  %s3331_s27 = smov 125  }
 0x1ae   : > { %v4328_v41 = vpop.permute.xlu1 %1073 }
 0x1af   : > { %v4330_v31 = vpop.permute.xlu0 %1071 }
 0x1b0   : > { %1418 = vrot.lane.b32.xlu1 %v4252_v35, %s3324_s28 }
 0x1b1   : > { %1416 = vrot.lane.b32.xlu0 %v4254_v46, %s3324_s28  ;;  %s3341_s28 = smov 28  }
 0x1b2   : > { %v4336_v55 = vpop.permute.xlu1 %1080 }
 0x1b3   : > { %v4338_v57 = vpop.permute.xlu0 %1075 }
 0x1b4   : > { %6335 = vst [vmem:[#allocation22_spill] sm:$0xff] %v4338_v57  ;;  %1425 = vrot.lane.b32.xlu1 %v4254_v46, %s3325_s29 }
 0x1b5   : > { %1423 = vrot.lane.b32.xlu0 %v4246_v30, %s3325_s29 }
 0x1b6   : > { %v4344_v25 = vpop.permute.xlu1 %1084 }
 0x1b7   : > { %6336 = vst [vmem:[#allocation23_spill] sm:$0xff] %v4344_v25  ;;  %v4346_v37 = vpop.permute.xlu0 %1082 }
 0x1b8   : > { %1432 = vrot.lane.b32.xlu1 %v4246_v30, %s3326_s30 }
 0x1b9   : > { %1427 = vrot.lane.b32.xlu0 %v4252_v35, %s3325_s29  ;;  %s3342_s29 = smov 44  }
 0x1ba   : > { %v4352_v10 = vpop.permute.xlu1 %1091 }
 0x1bb   : > { %v4354_v47 = vpop.permute.xlu0 %1089 }
 0x1bc   : > { %6337 = vst [vmem:[#allocation24_spill] sm:$0xff] %v4354_v47  ;;  %1436 = vrot.lane.b32.xlu1 %v4252_v35, %s3326_s30 }
 0x1bd   : > { %1434 = vrot.lane.b32.xlu0 %v4254_v46, %s3326_s30  ;;  %s3343_s30 = smov 60  }
 0x1be   : > { %v4360_v17 = vpop.permute.xlu1 %1159 }
 0x1bf   : > { %6338 = vst [vmem:[#allocation25_spill] sm:$0xff] %v4360_v17  ;;  %v4362_v11 = vpop.permute.xlu0 %1093 }
 0x1c0   : > { %6339 = vst [vmem:[#allocation26_spill] sm:$0xff] %v4362_v11  ;;  %1443 = vrot.lane.b32.xlu1 %v4254_v46, %s3327_s4 }
 0x1c1   : > { %1441 = vrot.lane.b32.xlu0 %v4246_v30, %s3327_s4 }
 0x1c2   : > { %v4368_v60 = vpop.permute.xlu1 %1163 }
 0x1c3   : > { %6340 = vst [vmem:[#allocation27_spill] sm:$0xff] %v4368_v60  ;;  %v4370_v43 = vpop.permute.xlu0 %1161 }
 0x1c4   : > { %6341 = vst [vmem:[#allocation28_spill] sm:$0xff] %v4370_v43  ;;  %1450 = vrot.lane.b32.xlu1 %v4246_v30, %s3328_s5 }
 0x1c5   : > { %1445 = vrot.lane.b32.xlu0 %v4252_v35, %s3327_s4  ;;  %s3344_s4 = smov 76  }
 0x1c6   : > { %v4376_v59 = vpop.permute.xlu1 %1170 }
 0x1c7   : > { %6342 = vst [vmem:[#allocation29_spill] sm:$0xff] %v4376_v59  ;;  %v4378_v29 = vpop.permute.xlu0 %1168 }
 0x1c8   : > { %6343 = vst [vmem:[#allocation30_spill] sm:$0xff] %v4378_v29  ;;  %1454 = vrot.lane.b32.xlu1 %v4252_v35, %s3328_s5 }
 0x1c9   : > { %1452 = vrot.lane.b32.xlu0 %v4254_v46, %s3328_s5  ;;  %s3345_s5 = smov 92  }
 0x1ca   : > { %v4384_v2 = vpop.permute.xlu1 %1177 }
 0x1cb   : > { %6344 = vst [vmem:[#allocation31_spill] sm:$0xff] %v4384_v2  ;;  %v4386_v62 = vpop.permute.xlu0 %1172 }
 0x1cc   : > { %6345 = vst [vmem:[#allocation32_spill] sm:$0xff] %v4386_v62  ;;  %1461 = vrot.lane.b32.xlu1 %v4254_v46, %s3329_s6 }
 0x1cd   : > { %1459 = vrot.lane.b32.xlu0 %v4246_v30, %s3329_s6 }
 0x1ce   : > { %v4392_v15 = vpop.permute.xlu1 %1181 }
 0x1cf   : > { %6346 = vst [vmem:[#allocation33_spill] sm:$0xff] %v4392_v15  ;;  %v4394_v32 = vpop.permute.xlu0 %1179 }
 0x1d0   : > { %6347 = vst [vmem:[#allocation34_spill] sm:$0xff] %v4394_v32  ;;  %1468 = vrot.lane.b32.xlu1 %v4246_v30, %s3330_s7 }
 0x1d1   : > { %1463 = vrot.lane.b32.xlu0 %v4252_v35, %s3329_s6  ;;  %s3346_s6 = smov 108  }
 0x1d2   : > { %v4400_v36 = vpop.permute.xlu1 %1188 }
 0x1d3   : > { %6348 = vst [vmem:[#allocation35_spill] sm:$0xff] %v4400_v36  ;;  %v4402_v34 = vpop.permute.xlu0 %1186 }
 0x1d4   : > { %6349 = vst [vmem:[#allocation36_spill] sm:$0xff] %v4402_v34  ;;  %1472 = vrot.lane.b32.xlu1 %v4252_v35, %s3330_s7 }
 0x1d5   : > { %1470 = vrot.lane.b32.xlu0 %v4254_v46, %s3330_s7  ;;  %s3066_s7 = sld [smem:[#allocation2 + $0x32]] }
 0x1d6   : > { %v4408_v8 = vpop.permute.xlu1 %1195 }
 0x1d7   : > { %6350 = vst [vmem:[#allocation37_spill] sm:$0xff] %v4408_v8  ;;  %v4410_v9 = vpop.permute.xlu0 %1190 }
 0x1d8   : > { %6351 = vst [vmem:[#allocation38_spill] sm:$0xff] %v4410_v9  ;;  %1533 = vrot.lane.b32.xlu1 %v4121_v14, %s3331_s27 }
 0x1d9   : > { %1531 = vrot.lane.b32.xlu0 %v4123_v38, %s3331_s27 }
 0x1da   : > { %v4416_v23 = vpop.permute.xlu1 %1199 }
 0x1db   : > { %6352 = vst [vmem:[#allocation39_spill] sm:$0xff] %v4416_v23  ;;  %v4418_v40 = vpop.permute.xlu0 %1197 }
 0x1dc   : > { %6353 = vst [vmem:[#allocation40_spill] sm:$0xff] %v4418_v40  ;;  %1540 = vrot.lane.b32.xlu1 %v4123_v38, %s3332_s8 }
 0x1dd   : > { %1535 = vrot.lane.b32.xlu0 %v4129_v27, %s3331_s27 }
 0x1de   : > { %v4424_v61 = vpop.permute.xlu1 %1206 }
 0x1df   : > { %6354 = vst [vmem:[#allocation41_spill] sm:$0xff] %v4424_v61  ;;  %v4426_v7 = vpop.permute.xlu0 %1204 }
 0x1e0   : > { %6355 = vst [vmem:[#allocation42_spill] sm:$0xff] %v4426_v7  ;;  %1544 = vrot.lane.b32.xlu1 %v4129_v27, %s3332_s8 }
 0x1e1   : > { %1542 = vrot.lane.b32.xlu0 %v4121_v14, %s3332_s8 }
 0x1e2   : > { %v4432_v24 = vpop.permute.xlu1 %1213 }
 0x1e3   : > { %6356 = vst [vmem:[#allocation43_spill] sm:$0xff] %v4432_v24  ;;  %v4434_v42 = vpop.permute.xlu0 %1208 }
 0x1e4   : > { %6357 = vst [vmem:[#allocation44_spill] sm:$0xff] %v4434_v42  ;;  %1551 = vrot.lane.b32.xlu1 %v4121_v14, %s3333_s9 }
 0x1e5   : > { %1549 = vrot.lane.b32.xlu0 %v4123_v38, %s3333_s9 }
 0x1e6   : > { %v4440_v18 = vpop.permute.xlu1 %1217 }
 0x1e7   : > { %6358 = vst [vmem:[#allocation45_spill] sm:$0xff] %v4440_v18  ;;  %v4442_v19 = vpop.permute.xlu0 %1215 }
 0x1e8   : > { %6359 = vst [vmem:[#allocation46_spill] sm:$0xff] %v4442_v19  ;;  %1558 = vrot.lane.b32.xlu1 %v4123_v38, %s3334_s11 }
 0x1e9   : > { %1553 = vrot.lane.b32.xlu0 %v4129_v27, %s3333_s9 }
 0x1ea   : > { %v4448_v51 = vpop.permute.xlu1 %1224 }
 0x1eb   : > { %6360 = vst [vmem:[#allocation47_spill] sm:$0xff] %v4448_v51  ;;  %v4450_v53 = vpop.permute.xlu0 %1222 }
 0x1ec   : > { %6361 = vst [vmem:[#allocation48_spill] sm:$0xff] %v4450_v53  ;;  %1562 = vrot.lane.b32.xlu1 %v4129_v27, %s3334_s11 }
 0x1ed   : > { %1560 = vrot.lane.b32.xlu0 %v4121_v14, %s3334_s11 }
 0x1ee   : > { %v4456_v12 = vpop.permute.xlu1 %1288 }
 0x1ef   : > { %6362 = vst [vmem:[#allocation49_spill] sm:$0xff] %v4456_v12  ;;  %v4458_v52 = vpop.permute.xlu0 %1226 }
 0x1f0   : > { %6363 = vst [vmem:[#allocation50_spill] sm:$0xff] %v4458_v52  ;;  %1569 = vrot.lane.b32.xlu1 %v4121_v14, %s3335_s17 }
 0x1f1   : > { %1567 = vrot.lane.b32.xlu0 %v4123_v38, %s3335_s17 }
 0x1f2   : > { %v4464_v20 = vpop.permute.xlu1 %1292 }
 0x1f3   : > { %6364 = vst [vmem:[#allocation51_spill] sm:$0xff] %v4464_v20  ;;  %v4466_v44 = vpop.permute.xlu0 %1290 }
 0x1f4   : > { %6365 = vst [vmem:[#allocation52_spill] sm:$0xff] %v4466_v44  ;;  %1576 = vrot.lane.b32.xlu1 %v4123_v38, %s3336_s19 }
 0x1f5   : > { %1571 = vrot.lane.b32.xlu0 %v4129_v27, %s3335_s17 }
 0x1f6   : > { %v4472_v21 = vpop.permute.xlu1 %1299 }
 0x1f7   : > { %6366 = vst [vmem:[#allocation53_spill] sm:$0xff] %v4472_v21  ;;  %v4474_v3 = vpop.permute.xlu0 %1297  ;;  %v6436_v21 = vld [vmem:[#allocation19_spill] sm:$0xff] }
 0x1f8   : > { %6367 = vst [vmem:[#allocation54_spill] sm:$0xff] %v4474_v3  ;;  %1580 = vrot.lane.b32.xlu1 %v4129_v27, %s3336_s19 }
 0x1f9   : > { %1578 = vrot.lane.b32.xlu0 %v4121_v14, %s3336_s19 }
 0x1fa   : > { %v4480_v58 = vpop.permute.xlu1 %1306 }
 0x1fb   : > { %6368 = vst [vmem:[#allocation55_spill] sm:$0xff] %v4480_v58  ;;  %v4482_v1 = vpop.permute.xlu0 %1301 }
 0x1fc   : > { %6369 = vst [vmem:[#allocation56_spill] sm:$0xff] %v4482_v1  ;;  %1587 = vrot.lane.b32.xlu1 %v4121_v14, %s3337_s24 }
 0x1fd   : > { %1585 = vrot.lane.b32.xlu0 %v4123_v38, %s3337_s24 }
 0x1fe   : > { %v4488_v28 = vpop.permute.xlu1 %1310 }
 0x1ff   : > { %6370 = vst [vmem:[#allocation57_spill] sm:$0xff] %v4488_v28  ;;  %v4490_v26 = vpop.permute.xlu0 %1308 }
 0x200   : > { %6371 = vst [vmem:[#allocation58_spill] sm:$0xff] %v4490_v26  ;;  %1594 = vrot.lane.b32.xlu1 %v4123_v38, %s3338_s25  ;;  %v6433_v26 = vld [vmem:[#allocation20_spill] sm:$0xff] }
 0x201   : > { %1589 = vrot.lane.b32.xlu0 %v4129_v27, %s3337_s24 }
 0x202   : > { %v4496_v63 = vpop.permute.xlu1 %1317 }
 0x203   : > { %6372 = vst [vmem:[#allocation59_spill] sm:$0xff] %v4496_v63  ;;  %v4498_v50 = vpop.permute.xlu0 %1315 }
 0x204   : > { %6373 = vst [vmem:[#allocation60_spill] sm:$0xff] %v4498_v50  ;;  %1598 = vrot.lane.b32.xlu1 %v4129_v27, %s3338_s25 }
 0x205   : > { %1596 = vrot.lane.b32.xlu0 %v4121_v14, %s3338_s25 }
 0x206   : > { %v4504_v33 = vpop.permute.xlu1 %1324 }
 0x207   : > { %6374 = vst [vmem:[#allocation61_spill] sm:$0xff] %v4504_v33  ;;  %v4506_v49 = vpop.permute.xlu0 %1319 }
 0x208   : > { %6375 = vst [vmem:[#allocation62_spill] sm:$0xff] %v4506_v49  ;;  %1659 = vrot.lane.b32.xlu1 %v4121_v14, %s3339_s20 }
 0x209   : > { %1657 = vrot.lane.b32.xlu0 %v4123_v38, %s3339_s20 }
 0x20a   : > { %v4512_v58 = vpop.permute.xlu1 %1328 }
 0x20b   : > { %6376 = vst [vmem:[#allocation63_spill] sm:$0xff] %v4512_v58  ;;  %v4514_v50 = vpop.permute.xlu0 %1326 }
 0x20c   : > { %6377 = vst [vmem:[#allocation64_spill] sm:$0xff] %v4514_v50  ;;  %1666 = vrot.lane.b32.xlu1 %v4123_v38, %s3340_s26 }
 0x20d   : > { %1661 = vrot.lane.b32.xlu0 %v4129_v27, %s3339_s20 }
 0x20e   : > { %v4520_v33 = vpop.permute.xlu1 %1335 }
 0x20f   : > { %6378 = vst [vmem:[#allocation65_spill] sm:$0xff] %v4520_v33  ;;  %v4522_v3 = vpop.permute.xlu0 %1333 }
 0x210   : > { %6379 = vst [vmem:[#allocation66_spill] sm:$0xff] %v4522_v3  ;;  %1670 = vrot.lane.b32.xlu1 %v4129_v27, %s3340_s26 }
 0x211   : > { %1668 = vrot.lane.b32.xlu0 %v4121_v14, %s3340_s26 }
 0x212   : > { %v4528_v12 = vpop.permute.xlu1 %1342 }
 0x213   : > { %6380 = vst [vmem:[#allocation67_spill] sm:$0xff] %v4528_v12  ;;  %v4530_v50 = vpop.permute.xlu0 %1337 }
 0x214   : > { %6381 = vst [vmem:[#allocation68_spill] sm:$0xff] %v4530_v50  ;;  %1677 = vrot.lane.b32.xlu1 %v4121_v14, %s3341_s28 }
 0x215   : > { %1675 = vrot.lane.b32.xlu0 %v4123_v38, %s3341_s28 }
 0x216   : > { %v4536_v33 = vpop.permute.xlu1 %1346 }
 0x217   : > { %6382 = vst [vmem:[#allocation69_spill] sm:$0xff] %v4536_v33  ;;  %v4538_v3 = vpop.permute.xlu0 %1344 }
 0x218   : > { %6383 = vst [vmem:[#allocation70_spill] sm:$0xff] %v4538_v3  ;;  %1684 = vrot.lane.b32.xlu1 %v4123_v38, %s3342_s29 }
 0x219   : > { %1679 = vrot.lane.b32.xlu0 %v4129_v27, %s3341_s28 }
 0x21a   : > { %v4544_v12 = vpop.permute.xlu1 %1407 }
 0x21b   : > { %6384 = vst [vmem:[#allocation71_spill] sm:$0xff] %v4544_v12  ;;  %v4546_v50 = vpop.permute.xlu0 %1405 }
 0x21c   : > { %6385 = vst [vmem:[#allocation72_spill] sm:$0xff] %v4546_v50  ;;  %1688 = vrot.lane.b32.xlu1 %v4129_v27, %s3342_s29 }
 0x21d   : > { %1686 = vrot.lane.b32.xlu0 %v4121_v14, %s3342_s29 }
 0x21e   : > { %v4552_v33 = vpop.permute.xlu1 %1414 }
 0x21f   : > { %6386 = vst [vmem:[#allocation73_spill] sm:$0xff] %v4552_v33  ;;  %v4554_v3 = vpop.permute.xlu0 %1409 }
 0x220   : > { %6387 = vst [vmem:[#allocation74_spill] sm:$0xff] %v4554_v3  ;;  %1695 = vrot.lane.b32.xlu1 %v4121_v14, %s3343_s30 }
 0x221   : > { %1693 = vrot.lane.b32.xlu0 %v4123_v38, %s3343_s30 }
 0x222   : > { %v4560_v12 = vpop.permute.xlu1 %1418 }
 0x223   : > { %6388 = vst [vmem:[#allocation75_spill] sm:$0xff] %v4560_v12  ;;  %v4562_v50 = vpop.permute.xlu0 %1416 }
 0x224   : > { %6389 = vst [vmem:[#allocation76_spill] sm:$0xff] %v4562_v50  ;;  %1702 = vrot.lane.b32.xlu1 %v4123_v38, %s3344_s4 }
 0x225   : > { %1697 = vrot.lane.b32.xlu0 %v4129_v27, %s3343_s30 }
 0x226   : > { %v4568_v33 = vpop.permute.xlu1 %1425 }
 0x227   : > { %6390 = vst [vmem:[#allocation77_spill] sm:$0xff] %v4568_v33  ;;  %v4570_v3 = vpop.permute.xlu0 %1423 }
 0x228   : > { %6391 = vst [vmem:[#allocation78_spill] sm:$0xff] %v4570_v3  ;;  %1706 = vrot.lane.b32.xlu1 %v4129_v27, %s3344_s4 }
 0x229   : > { %1704 = vrot.lane.b32.xlu0 %v4121_v14, %s3344_s4 }
 0x22a   : > { %v4576_v12 = vpop.permute.xlu1 %1432 }
 0x22b   : > { %6392 = vst [vmem:[#allocation79_spill] sm:$0xff] %v4576_v12  ;;  %v4578_v50 = vpop.permute.xlu0 %1427 }
 0x22c   : > { %6393 = vst [vmem:[#allocation80_spill] sm:$0xff] %v4578_v50  ;;  %1713 = vrot.lane.b32.xlu1 %v4121_v14, %s3345_s5 }
 0x22d   : > { %1711 = vrot.lane.b32.xlu0 %v4123_v38, %s3345_s5 }
 0x22e   : > { %v4584_v33 = vpop.permute.xlu1 %1436 }
 0x22f   : > { %6394 = vst [vmem:[#allocation81_spill] sm:$0xff] %v4584_v33  ;;  %v4586_v3 = vpop.permute.xlu0 %1434 }
 0x230   : > { %6395 = vst [vmem:[#allocation82_spill] sm:$0xff] %v4586_v3  ;;  %1720 = vrot.lane.b32.xlu1 %v4123_v38, %s3346_s6 }
 0x231   : > { %1715 = vrot.lane.b32.xlu0 %v4129_v27, %s3345_s5 }
 0x232   : > { %v4592_v12 = vpop.permute.xlu1 %1443 }
 0x233   : > { %6396 = vst [vmem:[#allocation83_spill] sm:$0xff] %v4592_v12  ;;  %v4594_v50 = vpop.permute.xlu0 %1441 }
 0x234   : > { %6397 = vst [vmem:[#allocation84_spill] sm:$0xff] %v4594_v50  ;;  %1724 = vrot.lane.b32.xlu1 %v4129_v27, %s3346_s6 }
 0x235   : > { %1722 = vrot.lane.b32.xlu0 %v4121_v14, %s3346_s6 }
 0x236   : > { %v4600_v33 = vpop.permute.xlu1 %1450 }
 0x237   : > { %6398 = vst [vmem:[#allocation85_spill] sm:$0xff] %v4600_v33  ;;  %v4602_v3 = vpop.permute.xlu0 %1445 }
 0x238   : > { %6399 = vst [vmem:[#allocation86_spill] sm:$0xff] %v4602_v3  ;;  %1785 = vrot.lane.b32.xlu1 %v4254_v46, %s3331_s27 }
 0x239   : > { %1783 = vrot.lane.b32.xlu0 %v4246_v30, %s3331_s27 }
 0x23a   : > { %v4608_v58 = vpop.permute.xlu1 %1454 }
 0x23b   : > { %6400 = vst [vmem:[#allocation87_spill] sm:$0xff] %v4608_v58  ;;  %v4610_v12 = vpop.permute.xlu0 %1452 }
 0x23c   : > { %6401 = vst [vmem:[#allocation88_spill] sm:$0xff] %v4610_v12  ;;  %1792 = vrot.lane.b32.xlu1 %v4246_v30, %s3332_s8 }
 0x23d   : > { %1787 = vrot.lane.b32.xlu0 %v4252_v35, %s3331_s27 }
 0x23e   : > { %v4616_v50 = vpop.permute.xlu1 %1461 }
 0x23f   : > { %6402 = vst [vmem:[#allocation89_spill] sm:$0xff] %v4616_v50  ;;  %v4618_v33 = vpop.permute.xlu0 %1459 }
 0x240   : > { %6403 = vst [vmem:[#allocation90_spill] sm:$0xff] %v4618_v33  ;;  %1796 = vrot.lane.b32.xlu1 %v4252_v35, %s3332_s8 }
 0x241   : > { %1794 = vrot.lane.b32.xlu0 %v4254_v46, %s3332_s8 }
 0x242   : > { %v4624_v3 = vpop.permute.xlu1 %1468 }
 0x243   : > { %6404 = vst [vmem:[#allocation91_spill] sm:$0xff] %v4624_v3  ;;  %v4626_v58 = vpop.permute.xlu0 %1463 }
 0x244   : > { %6405 = vst [vmem:[#allocation92_spill] sm:$0xff] %v4626_v58  ;;  %1803 = vrot.lane.b32.xlu1 %v4254_v46, %s3333_s9 }
 0x245   : > { %1801 = vrot.lane.b32.xlu0 %v4246_v30, %s3333_s9 }
 0x246   : > { %v4632_v12 = vpop.permute.xlu1 %1472 }
 0x247   : > { %6406 = vst [vmem:[#allocation93_spill] sm:$0xff] %v4632_v12  ;;  %v4634_v50 = vpop.permute.xlu0 %1470 }
 0x248   : > { %6407 = vst [vmem:[#allocation94_spill] sm:$0xff] %v4634_v50  ;;  %1810 = vrot.lane.b32.xlu1 %v4246_v30, %s3334_s11 }
 0x249   : > { %1805 = vrot.lane.b32.xlu0 %v4252_v35, %s3333_s9 }
 0x24a   : > { %v4640_v33 = vpop.permute.xlu1 %1533 }
 0x24b   : > { %6408 = vst [vmem:[#allocation95_spill] sm:$0xff] %v4640_v33  ;;  %v4642_v3 = vpop.permute.xlu0 %1531 }
 0x24c   : > { %6409 = vst [vmem:[#allocation96_spill] sm:$0xff] %v4642_v3  ;;  %1814 = vrot.lane.b32.xlu1 %v4252_v35, %s3334_s11 }
 0x24d   : > { %1812 = vrot.lane.b32.xlu0 %v4254_v46, %s3334_s11 }
 0x24e   : > { %v4648_v58 = vpop.permute.xlu1 %1540 }
 0x24f   : > { %6410 = vst [vmem:[#allocation97_spill] sm:$0xff] %v4648_v58  ;;  %v4650_v12 = vpop.permute.xlu0 %1535 }
 0x250   : > { %6411 = vst [vmem:[#allocation98_spill] sm:$0xff] %v4650_v12  ;;  %1821 = vrot.lane.b32.xlu1 %v4254_v46, %s3335_s17 }
 0x251   : > { %1819 = vrot.lane.b32.xlu0 %v4246_v30, %s3335_s17 }
 0x252   : > { %v4656_v50 = vpop.permute.xlu1 %1544 }
 0x253   : > { %6412 = vst [vmem:[#allocation99_spill] sm:$0xff] %v4656_v50  ;;  %v4658_v33 = vpop.permute.xlu0 %1542 }
 0x254   : > { %6413 = vst [vmem:[#allocation100_spill] sm:$0xff] %v4658_v33  ;;  %1828 = vrot.lane.b32.xlu1 %v4246_v30, %s3336_s19 }
 0x255   : > { %1823 = vrot.lane.b32.xlu0 %v4252_v35, %s3335_s17 }
 0x256   : > { %v4664_v3 = vpop.permute.xlu1 %1551 }
 0x257   : > { %6414 = vst [vmem:[#allocation101_spill] sm:$0xff] %v4664_v3  ;;  %v4666_v58 = vpop.permute.xlu0 %1549 }
 0x258   : > { %6415 = vst [vmem:[#allocation102_spill] sm:$0xff] %v4666_v58  ;;  %1832 = vrot.lane.b32.xlu1 %v4252_v35, %s3336_s19 }
 0x259   : > { %1830 = vrot.lane.b32.xlu0 %v4254_v46, %s3336_s19 }
 0x25a   : > { %v4672_v12 = vpop.permute.xlu1 %1558 }
 0x25b   : > { %6416 = vst [vmem:[#allocation103_spill] sm:$0xff] %v4672_v12  ;;  %v4674_v50 = vpop.permute.xlu0 %1553 }
 0x25c   : > { %6417 = vst [vmem:[#allocation104_spill] sm:$0xff] %v4674_v50  ;;  %1839 = vrot.lane.b32.xlu1 %v4254_v46, %s3337_s24 }
 0x25d   : > { %1837 = vrot.lane.b32.xlu0 %v4246_v30, %s3337_s24 }
 0x25e   : > { %v4680_v33 = vpop.permute.xlu1 %1562 }
 0x25f   : > { %6418 = vst [vmem:[#allocation105_spill] sm:$0xff] %v4680_v33  ;;  %v4682_v3 = vpop.permute.xlu0 %1560 }
 0x260   : > { %6419 = vst [vmem:[#allocation106_spill] sm:$0xff] %v4682_v3  ;;  %1846 = vrot.lane.b32.xlu1 %v4246_v30, %s3338_s25 }
 0x261   : > { %1841 = vrot.lane.b32.xlu0 %v4252_v35, %s3337_s24 }
 0x262   : > { %v4688_v58 = vpop.permute.xlu1 %1569 }
 0x263   : > { %6420 = vst [vmem:[#allocation107_spill] sm:$0xff] %v4688_v58  ;;  %v4690_v12 = vpop.permute.xlu0 %1567 }
 0x264   : > { %6421 = vst [vmem:[#allocation108_spill] sm:$0xff] %v4690_v12  ;;  %1850 = vrot.lane.b32.xlu1 %v4252_v35, %s3338_s25 }
 0x265   : > { %1848 = vrot.lane.b32.xlu0 %v4254_v46, %s3338_s25 }
 0x266   : > { %v4696_v50 = vpop.permute.xlu1 %1576 }
 0x267   : > { %6422 = vst [vmem:[#allocation109_spill] sm:$0xff] %v4696_v50  ;;  %v4698_v33 = vpop.permute.xlu0 %1571 }
 0x268   : > { %6423 = vst [vmem:[#allocation110_spill] sm:$0xff] %v4698_v33  ;;  %1911 = vrot.lane.b32.xlu1 %v4254_v46, %s3339_s20 }
 0x269   : > { %1909 = vrot.lane.b32.xlu0 %v4246_v30, %s3339_s20 }
 0x26a   : > { %v4704_v3 = vpop.permute.xlu1 %1580 }
 0x26b   : > { %6424 = vst [vmem:[#allocation111_spill] sm:$0xff] %v4704_v3  ;;  %v4706_v58 = vpop.permute.xlu0 %1578 }
 0x26c   : > { %6425 = vst [vmem:[#allocation112_spill] sm:$0xff] %v4706_v58  ;;  %1918 = vrot.lane.b32.xlu1 %v4246_v30, %s3340_s26  ;;  %v993_v58 = vstv %s3066_s7  ;;  %s3067_s7 = sld [smem:[#allocation2 + $0x33]] }
 0x26d   : > { %1913 = vrot.lane.b32.xlu0 %v4252_v35, %s3339_s20  ;;  %v994_v28 = vadd.f32 %v993_v58, %v6433_v26  ;;  %v996_v53 = vadd.f32 %v993_v58, %v6436_v21 }
 0x26e   : > { %v4712_v50 = vpop.permute.xlu1 %1587 }
 0x26f   : > { %6426 = vst [vmem:[#allocation113_spill] sm:$0xff] %v4712_v50  ;;  %v4714_v33 = vpop.permute.xlu0 %1585 }
 0x270   : > { %6427 = vst [vmem:[#allocation114_spill] sm:$0xff] %v4714_v33  ;;  %1922 = vrot.lane.b32.xlu1 %v4252_v35, %s3340_s26  ;;  %v6431_v33 = vld [vmem:[#allocation14_spill] sm:$0xff] }
 0x271   : > { %1920 = vrot.lane.b32.xlu0 %v4254_v46, %s3340_s26  ;;  %v995_v49 = vadd.f32 %v993_v58, %v6431_v33 }
 0x272   : > { %v4720_v3 = vpop.permute.xlu1 %1594 }
 0x273   : > { %6428 = vst [vmem:[#allocation115_spill] sm:$0xff] %v4720_v3  ;;  %v4722_v12 = vpop.permute.xlu0 %1589 }
 0x274   : > { %6429 = vst [vmem:[#allocation116_spill] sm:$0xff] %v4722_v12  ;;  %1929 = vrot.lane.b32.xlu1 %v4254_v46, %s3341_s28  ;;  %v998_v12 = vmul.f32 0.5, %v995_v49 }
 0x275   : > { %1927 = vrot.lane.b32.xlu0 %v4246_v30, %s3341_s28 }
 0x276   : > { %v4728_v50 = vpop.permute.xlu1 %1598  ;;  %3211 = vtanh.f32 %v998_v12 }
 0x277   : > { %6430 = vst [vmem:[#allocation117_spill] sm:$0xff] %v4728_v50  ;;  %v4731_v63 = vpop.permute.xlu0 %1596  ;;  %v997_v50 = vmul.f32 0.5, %v994_v28 }
 0x278   : > { %6432 = vst [vmem:[#allocation14_spill] sm:$0xff] %v4731_v63  ;;  %1936 = vrot.lane.b32.xlu1 %v4246_v30, %s3342_s29  ;;  %v999_v63 = vmul.f32 0.5, %v996_v53 }
 0x279   : > { %1931 = vrot.lane.b32.xlu0 %v4252_v35, %s3341_s28  ;;  %3213 = vtanh.f32 %v997_v50 }
 0x27a   : > { %v4738_v3 = vpop.permute.xlu1 %1659  ;;  %3215 = vtanh.f32 %v999_v63 }
 0x27b   : > { %6434 = vst [vmem:[#allocation20_spill] sm:$0xff] %v4738_v3  ;;  %v4740_v1 = vpop.permute.xlu0 %1657 }
 0x27c   : > { %6435 = vst [vmem:[#allocation118_spill] sm:$0xff] %v4740_v1  ;;  %1940 = vrot.lane.b32.xlu1 %v4252_v35, %s3342_s29 }
 0x27d   : > { %1938 = vrot.lane.b32.xlu0 %v4254_v46, %s3342_s29 }
 0x27e   : > { %v4747_v26 = vpop.permute.xlu1 %1666 }
 0x27f   : > { %6437 = vst [vmem:[#allocation19_spill] sm:$0xff] %v4747_v26  ;;  %v4749_v33 = vpop.permute.xlu0 %1661 }
 0x280   : > { %6438 = vst [vmem:[#allocation119_spill] sm:$0xff] %v4749_v33  ;;  %1947 = vrot.lane.b32.xlu1 %v4254_v46, %s3343_s30  ;;  %v3212_v33 = vpop.eup %3211 }
 0x281   : > { %1945 = vrot.lane.b32.xlu0 %v4246_v30, %s3343_s30 }
 0x282   : > { %v4755_v21 = vpop.permute.xlu1 %1670 }
 0x283   : > { %6439 = vst [vmem:[#allocation120_spill] sm:$0xff] %v4755_v21  ;;  %v4757_v58 = vpop.permute.xlu0 %1668  ;;  %v3214_v21 = vpop.eup %3213 }
 0x284   : > { %6440 = vst [vmem:[#allocation121_spill] sm:$0xff] %v4757_v58  ;;  %1954 = vrot.lane.b32.xlu1 %v4246_v30, %s3344_s4  ;;  %v1004_v58 = vmul.f32 0.5, %v3212_v33  ;;  %v1003_v1 = vmul.f32 0.5, %v3214_v21 }
 0x285   : > { %1949 = vrot.lane.b32.xlu0 %v4252_v35, %s3343_s30 }
 0x286   : > { %v4763_v12 = vpop.permute.xlu1 %1677  ;;  %v1007_v44 = vadd.f32 0.5, %v1004_v58  ;;  %v1006_v20 = vadd.f32 0.5, %v1003_v1 }
 0x287   : > { %6441 = vst [vmem:[#allocation122_spill] sm:$0xff] %v4763_v12  ;;  %v4765_v50 = vpop.permute.xlu0 %1675  ;;  %v3216_v12 = vpop.eup %3215 }
 0x288   : > { %6442 = vst [vmem:[#allocation123_spill] sm:$0xff] %v4765_v50  ;;  %1958 = vrot.lane.b32.xlu1 %v4252_v35, %s3344_s4 }
 0x289   : > { %1956 = vrot.lane.b32.xlu0 %v4254_v46, %s3344_s4 }
 0x28a   : > { %v4771_v3 = vpop.permute.xlu1 %1684 }
 0x28b   : > { %6443 = vst [vmem:[#allocation124_spill] sm:$0xff] %v4771_v3  ;;  %v4773_v63 = vpop.permute.xlu0 %1679  ;;  %v1005_v3 = vmul.f32 0.5, %v3216_v12 }
 0x28c   : > { %6444 = vst [vmem:[#allocation125_spill] sm:$0xff] %v4773_v63  ;;  %1965 = vrot.lane.b32.xlu1 %v4254_v46, %s3345_s5  ;;  %v4791_v63 = vmul.f32 %v1007_v44, %v995_v49 }
 0x28d   : > { %1963 = vrot.lane.b32.xlu0 %v4246_v30, %s3345_s5 }
 0x28e   : > { %v4779_v50 = vpop.permute.xlu1 %1688 }
 0x28f   : > { %6445 = vst [vmem:[#allocation126_spill] sm:$0xff] %v4779_v50  ;;  %v4781_v26 = vpop.permute.xlu0 %1686  ;;  %v1008_v50 = vadd.f32 0.5, %v1005_v3 }
 0x290   : > { %6446 = vst [vmem:[#allocation127_spill] sm:$0xff] %v4781_v26  ;;  %1972 = vrot.lane.b32.xlu1 %v4246_v30, %s3346_s6  ;;  %v4795_v26 = vmul.f32 %v1006_v20, %v994_v28 }
 0x291   : > { %1967 = vrot.lane.b32.xlu0 %v4252_v35, %s3345_s5  ;;  %v4805_v12 = vmul.f32 %v1008_v50, %v996_v53 }
 0x292   : > { %v4787_v33 = vpop.permute.xlu1 %1695 }
 0x293   : > { %6447 = vst [vmem:[#allocation128_spill] sm:$0xff] %v4787_v33  ;;  %v4789_v21 = vpop.permute.xlu0 %1693 }
 0x294   : > { %6448 = vst [vmem:[#allocation129_spill] sm:$0xff] %v4789_v21  ;;  %1976 = vrot.lane.b32.xlu1 %v4252_v35, %s3346_s6  ;;  %v6487_v21 = vld [vmem:[#allocation10_spill] sm:$0xff] }
 0x295   : > { %1974 = vrot.lane.b32.xlu0 %v4254_v46, %s3346_s6 }
 0x296   : > { %v4799_v58 = vpop.permute.xlu1 %1702 }
 0x297   : > { %6449 = vst [vmem:[#allocation130_spill] sm:$0xff] %v4799_v58  ;;  %v4801_v1 = vpop.permute.xlu0 %1697 }
 0x298   : > { %6450 = vst [vmem:[#allocation131_spill] sm:$0xff] %v4801_v1  ;;  %2040 = vrot.lane.b32.xlu1 %v4791_v63, %s3331_s27 }
 0x299   : > { %2038 = vrot.lane.b32.xlu0 %v4795_v26, %s3331_s27 }
 0x29a   : > { %v4809_v44 = vpop.permute.xlu1 %1706 }
 0x29b   : > { %6451 = vst [vmem:[#allocation132_spill] sm:$0xff] %v4809_v44  ;;  %v4811_v3 = vpop.permute.xlu0 %1704 }
 0x29c   : > { %6452 = vst [vmem:[#allocation133_spill] sm:$0xff] %v4811_v3  ;;  %2047 = vrot.lane.b32.xlu1 %v4795_v26, %s3332_s8 }
 0x29d   : > { %2042 = vrot.lane.b32.xlu0 %v4805_v12, %s3331_s27 }
 0x29e   : > { %v4817_v20 = vpop.permute.xlu1 %1713 }
 0x29f   : > { %6453 = vst [vmem:[#allocation134_spill] sm:$0xff] %v4817_v20  ;;  %v4819_v28 = vpop.permute.xlu0 %1711 }
 0x2a0   : > { %6454 = vst [vmem:[#allocation135_spill] sm:$0xff] %v4819_v28  ;;  %2051 = vrot.lane.b32.xlu1 %v4805_v12, %s3332_s8  ;;  %v6484_v28 = vld [vmem:[#allocation21_spill] sm:$0xff] }
 0x2a1   : > { %2049 = vrot.lane.b32.xlu0 %v4791_v63, %s3332_s8 }
 0x2a2   : > { %v4825_v53 = vpop.permute.xlu1 %1720 }
 0x2a3   : > { %6455 = vst [vmem:[#allocation136_spill] sm:$0xff] %v4825_v53  ;;  %v4827_v49 = vpop.permute.xlu0 %1715 }
 0x2a4   : > { %6456 = vst [vmem:[#allocation137_spill] sm:$0xff] %v4827_v49  ;;  %2058 = vrot.lane.b32.xlu1 %v4791_v63, %s3333_s9 }
 0x2a5   : > { %2056 = vrot.lane.b32.xlu0 %v4795_v26, %s3333_s9 }
 0x2a6   : > { %v4833_v50 = vpop.permute.xlu1 %1724 }
 0x2a7   : > { %6457 = vst [vmem:[#allocation138_spill] sm:$0xff] %v4833_v50  ;;  %v4835_v44 = vpop.permute.xlu0 %1722 }
 0x2a8   : > { %6458 = vst [vmem:[#allocation139_spill] sm:$0xff] %v4835_v44  ;;  %2065 = vrot.lane.b32.xlu1 %v4795_v26, %s3334_s11 }
 0x2a9   : > { %2060 = vrot.lane.b32.xlu0 %v4805_v12, %s3333_s9 }
 0x2aa   : > { %v4841_v20 = vpop.permute.xlu1 %1785 }
 0x2ab   : > { %6459 = vst [vmem:[#allocation140_spill] sm:$0xff] %v4841_v20  ;;  %v4843_v1 = vpop.permute.xlu0 %1783 }
 0x2ac   : > { %6460 = vst [vmem:[#allocation141_spill] sm:$0xff] %v4843_v1  ;;  %2069 = vrot.lane.b32.xlu1 %v4805_v12, %s3334_s11 }
 0x2ad   : > { %2067 = vrot.lane.b32.xlu0 %v4791_v63, %s3334_s11 }
 0x2ae   : > { %v4849_v49 = vpop.permute.xlu1 %1792 }
 0x2af   : > { %6461 = vst [vmem:[#allocation142_spill] sm:$0xff] %v4849_v49  ;;  %v4851_v50 = vpop.permute.xlu0 %1787 }
 0x2b0   : > { %6462 = vst [vmem:[#allocation143_spill] sm:$0xff] %v4851_v50  ;;  %2076 = vrot.lane.b32.xlu1 %v4791_v63, %s3335_s17 }
 0x2b1   : > { %2074 = vrot.lane.b32.xlu0 %v4795_v26, %s3335_s17 }
 0x2b2   : > { %v4857_v44 = vpop.permute.xlu1 %1796 }
 0x2b3   : > { %6463 = vst [vmem:[#allocation144_spill] sm:$0xff] %v4857_v44  ;;  %v4859_v20 = vpop.permute.xlu0 %1794 }
 0x2b4   : > { %6464 = vst [vmem:[#allocation145_spill] sm:$0xff] %v4859_v20  ;;  %2083 = vrot.lane.b32.xlu1 %v4795_v26, %s3336_s19 }
 0x2b5   : > { %2078 = vrot.lane.b32.xlu0 %v4805_v12, %s3335_s17 }
 0x2b6   : > { %v4865_v1 = vpop.permute.xlu1 %1803 }
 0x2b7   : > { %6465 = vst [vmem:[#allocation146_spill] sm:$0xff] %v4865_v1  ;;  %v4867_v49 = vpop.permute.xlu0 %1801 }
 0x2b8   : > { %6466 = vst [vmem:[#allocation147_spill] sm:$0xff] %v4867_v49  ;;  %2087 = vrot.lane.b32.xlu1 %v4805_v12, %s3336_s19 }
 0x2b9   : > { %2085 = vrot.lane.b32.xlu0 %v4791_v63, %s3336_s19 }
 0x2ba   : > { %v4873_v50 = vpop.permute.xlu1 %1810 }
 0x2bb   : > { %6467 = vst [vmem:[#allocation148_spill] sm:$0xff] %v4873_v50  ;;  %v4875_v44 = vpop.permute.xlu0 %1805 }
 0x2bc   : > { %6468 = vst [vmem:[#allocation149_spill] sm:$0xff] %v4875_v44  ;;  %2094 = vrot.lane.b32.xlu1 %v4791_v63, %s3337_s24 }
 0x2bd   : > { %2092 = vrot.lane.b32.xlu0 %v4795_v26, %s3337_s24 }
 0x2be   : > { %v4881_v20 = vpop.permute.xlu1 %1814 }
 0x2bf   : > { %6469 = vst [vmem:[#allocation150_spill] sm:$0xff] %v4881_v20  ;;  %v4883_v1 = vpop.permute.xlu0 %1812 }
 0x2c0   : > { %6470 = vst [vmem:[#allocation151_spill] sm:$0xff] %v4883_v1  ;;  %2101 = vrot.lane.b32.xlu1 %v4795_v26, %s3338_s25 }
 0x2c1   : > { %2096 = vrot.lane.b32.xlu0 %v4805_v12, %s3337_s24 }
 0x2c2   : > { %v4889_v49 = vpop.permute.xlu1 %1821 }
 0x2c3   : > { %6471 = vst [vmem:[#allocation152_spill] sm:$0xff] %v4889_v49  ;;  %v4891_v50 = vpop.permute.xlu0 %1819 }
 0x2c4   : > { %6472 = vst [vmem:[#allocation153_spill] sm:$0xff] %v4891_v50  ;;  %2105 = vrot.lane.b32.xlu1 %v4805_v12, %s3338_s25 }
 0x2c5   : > { %2103 = vrot.lane.b32.xlu0 %v4791_v63, %s3338_s25 }
 0x2c6   : > { %v4897_v44 = vpop.permute.xlu1 %1828 }
 0x2c7   : > { %6473 = vst [vmem:[#allocation154_spill] sm:$0xff] %v4897_v44  ;;  %v4899_v20 = vpop.permute.xlu0 %1823 }
 0x2c8   : > { %6474 = vst [vmem:[#allocation155_spill] sm:$0xff] %v4899_v20  ;;  %2162 = vrot.lane.b32.xlu1 %v4791_v63, %s3339_s20  ;;  %v1013_v20 = vstv %s3067_s7 }
 0x2c9   : > { %2160 = vrot.lane.b32.xlu0 %v4795_v26, %s3339_s20  ;;  %v1014_v33 = vadd.f32 %v1013_v20, %v6484_v28  ;;  %v1016_v30 = vadd.f32 %v1013_v20, %v6487_v21 }
 0x2ca   : > { %v4905_v1 = vpop.permute.xlu1 %1832 }
 0x2cb   : > { %6475 = vst [vmem:[#allocation156_spill] sm:$0xff] %v4905_v1  ;;  %v4907_v49 = vpop.permute.xlu0 %1830 }
 0x2cc   : > { %6476 = vst [vmem:[#allocation157_spill] sm:$0xff] %v4907_v49  ;;  %2169 = vrot.lane.b32.xlu1 %v4795_v26, %s3340_s26 }
 0x2cd   : > { %2164 = vrot.lane.b32.xlu0 %v4805_v12, %s3339_s20 }
 0x2ce   : > { %v4913_v44 = vpop.permute.xlu1 %1839 }
 0x2cf   : > { %6477 = vst [vmem:[#allocation158_spill] sm:$0xff] %v4913_v44  ;;  %v4915_v50 = vpop.permute.xlu0 %1837 }
 0x2d0   : > { %6478 = vst [vmem:[#allocation159_spill] sm:$0xff] %v4915_v50  ;;  %2173 = vrot.lane.b32.xlu1 %v4805_v12, %s3340_s26  ;;  %v6482_v50 = vld [vmem:[#allocation15_spill] sm:$0xff] }
 0x2d1   : > { %2171 = vrot.lane.b32.xlu0 %v4791_v63, %s3340_s26  ;;  %v1015_v53 = vadd.f32 %v1013_v20, %v6482_v50 }
 0x2d2   : > { %v4921_v1 = vpop.permute.xlu1 %1846 }
 0x2d3   : > { %6479 = vst [vmem:[#allocation160_spill] sm:$0xff] %v4921_v1  ;;  %v4923_v49 = vpop.permute.xlu0 %1841 }
 0x2d4   : > { %6480 = vst [vmem:[#allocation161_spill] sm:$0xff] %v4923_v49  ;;  %2180 = vrot.lane.b32.xlu1 %v4791_v63, %s3341_s28  ;;  %v1018_v49 = vmul.f32 0.5, %v1015_v53 }
 0x2d5   : > { %2178 = vrot.lane.b32.xlu0 %v4795_v26, %s3341_s28 }
 0x2d6   : > { %v4929_v44 = vpop.permute.xlu1 %1850  ;;  %3217 = vtanh.f32 %v1018_v49 }
 0x2d7   : > { %6481 = vst [vmem:[#allocation162_spill] sm:$0xff] %v4929_v44  ;;  %v4932_v3 = vpop.permute.xlu0 %1848  ;;  %v1017_v44 = vmul.f32 0.5, %v1014_v33 }
 0x2d8   : > { %6483 = vst [vmem:[#allocation15_spill] sm:$0xff] %v4932_v3  ;;  %2187 = vrot.lane.b32.xlu1 %v4795_v26, %s3342_s29  ;;  %v1019_v3 = vmul.f32 0.5, %v1016_v30 }
 0x2d9   : > { %2182 = vrot.lane.b32.xlu0 %v4805_v12, %s3341_s28  ;;  %3219 = vtanh.f32 %v1017_v44 }
 0x2da   : > { %v4939_v1 = vpop.permute.xlu1 %1911  ;;  %3221 = vtanh.f32 %v1019_v3 }
 0x2db   : > { %6485 = vst [vmem:[#allocation21_spill] sm:$0xff] %v4939_v1  ;;  %v4941_v58 = vpop.permute.xlu0 %1909 }
 0x2dc   : > { %6486 = vst [vmem:[#allocation163_spill] sm:$0xff] %v4941_v58  ;;  %2191 = vrot.lane.b32.xlu1 %v4805_v12, %s3342_s29 }
 0x2dd   : > { %2189 = vrot.lane.b32.xlu0 %v4791_v63, %s3342_s29 }
 0x2de   : > { %v4948_v28 = vpop.permute.xlu1 %1918 }
 0x2df   : > { %6488 = vst [vmem:[#allocation10_spill] sm:$0xff] %v4948_v28  ;;  %v4950_v50 = vpop.permute.xlu0 %1913 }
 0x2e0   : > { %6489 = vst [vmem:[#allocation164_spill] sm:$0xff] %v4950_v50  ;;  %2198 = vrot.lane.b32.xlu1 %v4791_v63, %s3343_s30  ;;  %v3218_v1 = vpop.eup %3217 }
 0x2e1   : > { %2196 = vrot.lane.b32.xlu0 %v4795_v26, %s3343_s30 }
 0x2e2   : > { %v4956_v21 = vpop.permute.xlu1 %1922 }
 0x2e3   : > { %6490 = vst [vmem:[#allocation165_spill] sm:$0xff] %v4956_v21  ;;  %v4958_v20 = vpop.permute.xlu0 %1920  ;;  %v3220_v50 = vpop.eup %3219  ;;  %v1024_v21 = vmul.f32 0.5, %v3218_v1 }
 0x2e4   : > { %6491 = vst [vmem:[#allocation166_spill] sm:$0xff] %v4958_v20  ;;  %2205 = vrot.lane.b32.xlu1 %v4795_v26, %s3344_s4  ;;  %v1023_v58 = vmul.f32 0.5, %v3220_v50 }
 0x2e5   : > { %2200 = vrot.lane.b32.xlu0 %v4805_v12, %s3343_s30  ;;  %v1027_v46 = vadd.f32 0.5, %v1024_v21 }
 0x2e6   : > { %v4964_v49 = vpop.permute.xlu1 %1929  ;;  %v1026_v35 = vadd.f32 0.5, %v1023_v58 }
 0x2e7   : > { %6492 = vst [vmem:[#allocation167_spill] sm:$0xff] %v4964_v49  ;;  %v4966_v44 = vpop.permute.xlu0 %1927  ;;  %v3222_v49 = vpop.eup %3221 }
 0x2e8   : > { %6493 = vst [vmem:[#allocation168_spill] sm:$0xff] %v4966_v44  ;;  %2209 = vrot.lane.b32.xlu1 %v4805_v12, %s3344_s4 }
 0x2e9   : > { %2207 = vrot.lane.b32.xlu0 %v4791_v63, %s3344_s4 }
 0x2ea   : > { %v4972_v20 = vpop.permute.xlu1 %1936 }
 0x2eb   : > { %6494 = vst [vmem:[#allocation169_spill] sm:$0xff] %v4972_v20  ;;  %v4974_v3 = vpop.permute.xlu0 %1931  ;;  %v1025_v20 = vmul.f32 0.5, %v3222_v49 }
 0x2ec   : > { %6495 = vst [vmem:[#allocation170_spill] sm:$0xff] %v4974_v3  ;;  %2216 = vrot.lane.b32.xlu1 %v4791_v63, %s3345_s5  ;;  %v4992_v3 = vmul.f32 %v1027_v46, %v1015_v53 }
 0x2ed   : > { %2214 = vrot.lane.b32.xlu0 %v4795_v26, %s3345_s5 }
 0x2ee   : > { %v4980_v44 = vpop.permute.xlu1 %1940 }
 0x2ef   : > { %6496 = vst [vmem:[#allocation171_spill] sm:$0xff] %v4980_v44  ;;  %v4982_v28 = vpop.permute.xlu0 %1938  ;;  %v1028_v44 = vadd.f32 0.5, %v1025_v20 }
 0x2f0   : > { %6497 = vst [vmem:[#allocation172_spill] sm:$0xff] %v4982_v28  ;;  %2223 = vrot.lane.b32.xlu1 %v4795_v26, %s3346_s6  ;;  %v4996_v28 = vmul.f32 %v1026_v35, %v1014_v33 }
 0x2f1   : > { %2218 = vrot.lane.b32.xlu0 %v4805_v12, %s3345_s5  ;;  %v5006_v49 = vmul.f32 %v1028_v44, %v1016_v30 }
 0x2f2   : > { %v4988_v1 = vpop.permute.xlu1 %1947 }
 0x2f3   : > { %6498 = vst [vmem:[#allocation173_spill] sm:$0xff] %v4988_v1  ;;  %v4990_v50 = vpop.permute.xlu0 %1945 }
 0x2f4   : > { %6499 = vst [vmem:[#allocation174_spill] sm:$0xff] %v4990_v50  ;;  %2227 = vrot.lane.b32.xlu1 %v4805_v12, %s3346_s6 }
 0x2f5   : > { %2225 = vrot.lane.b32.xlu0 %v4791_v63, %s3346_s6 }
 0x2f6   : > { %v5000_v21 = vpop.permute.xlu1 %1954 }
 0x2f7   : > { %6500 = vst [vmem:[#allocation175_spill] sm:$0xff] %v5000_v21  ;;  %v5002_v58 = vpop.permute.xlu0 %1949 }
 0x2f8   : > { %6501 = vst [vmem:[#allocation176_spill] sm:$0xff] %v5002_v58  ;;  %2287 = vrot.lane.b32.xlu1 %v4992_v3, %s3331_s27 }
 0x2f9   : > { %2285 = vrot.lane.b32.xlu0 %v4996_v28, %s3331_s27 }
 0x2fa   : > { %v5010_v46 = vpop.permute.xlu1 %1958 }
 0x2fb   : > { %6502 = vst [vmem:[#allocation177_spill] sm:$0xff] %v5010_v46  ;;  %v5012_v53 = vpop.permute.xlu0 %1956 }
 0x2fc   : > { %6503 = vst [vmem:[#allocation178_spill] sm:$0xff] %v5012_v53  ;;  %2294 = vrot.lane.b32.xlu1 %v4996_v28, %s3332_s8 }
 0x2fd   : > { %2289 = vrot.lane.b32.xlu0 %v5006_v49, %s3331_s27  ;;  %s3347_s27 = smov 14  }
 0x2fe   : > { %v5018_v35 = vpop.permute.xlu1 %1965 }
 0x2ff   : > { %6504 = vst [vmem:[#allocation179_spill] sm:$0xff] %v5018_v35  ;;  %v5020_v33 = vpop.permute.xlu0 %1963 }
 0x300   : > { %6505 = vst [vmem:[#allocation180_spill] sm:$0xff] %v5020_v33  ;;  %2298 = vrot.lane.b32.xlu1 %v5006_v49, %s3332_s8 }
 0x301   : > { %2296 = vrot.lane.b32.xlu0 %v4992_v3, %s3332_s8  ;;  %s3348_s8 = smov 30  }
 0x302   : > { %v5026_v30 = vpop.permute.xlu1 %1972 }
 0x303   : > { %6506 = vst [vmem:[#allocation181_spill] sm:$0xff] %v5026_v30  ;;  %v5028_v20 = vpop.permute.xlu0 %1967 }
 0x304   : > { %6507 = vst [vmem:[#allocation182_spill] sm:$0xff] %v5028_v20  ;;  %2305 = vrot.lane.b32.xlu1 %v4992_v3, %s3333_s9 }
 0x305   : > { %2303 = vrot.lane.b32.xlu0 %v4996_v28, %s3333_s9 }
 0x306   : > { %v5034_v44 = vpop.permute.xlu1 %1976 }
 0x307   : > { %6508 = vst [vmem:[#allocation183_spill] sm:$0xff] %v5034_v44  ;;  %v5036_v35 = vpop.permute.xlu0 %1974 }
 0x308   : > { %6509 = vst [vmem:[#allocation184_spill] sm:$0xff] %v5036_v35  ;;  %2312 = vrot.lane.b32.xlu1 %v4996_v28, %s3334_s11 }
 0x309   : > { %2307 = vrot.lane.b32.xlu0 %v5006_v49, %s3333_s9  ;;  %s3349_s9 = smov 46  }
 0x30a   : > { %v5042_v33 = vpop.permute.xlu1 %2040 }
 0x30b   : > { %v5044_v30 = vpop.permute.xlu0 %2038 }
 0x30c   : > { %2316 = vrot.lane.b32.xlu1 %v5006_v49, %s3334_s11 }
 0x30d   : > { %2314 = vrot.lane.b32.xlu0 %v4992_v3, %s3334_s11  ;;  %s3350_s11 = smov 62  }
 0x30e   : > { %v5050_v20 = vpop.permute.xlu1 %2047 }
 0x30f   : > { %v5052_v44 = vpop.permute.xlu0 %2042 }
 0x310   : > { %2323 = vrot.lane.b32.xlu1 %v4992_v3, %s3335_s17 }
 0x311   : > { %2321 = vrot.lane.b32.xlu0 %v4996_v28, %s3335_s17 }
 0x312   : > { %v5058_v35 = vpop.permute.xlu1 %2051 }
 0x313   : > { %v5060_v46 = vpop.permute.xlu0 %2049  ;;  %v2112_v48 = vsel %vm1098_vm2, %v5052_v44, %v5058_v35 }
 0x314   : > { %2330 = vrot.lane.b32.xlu1 %v4996_v28, %s3336_s19  ;;  %v2111_v4 = vsel %vm1098_vm2, %v5042_v33, %v5060_v46 }
 0x315   : > { %2325 = vrot.lane.b32.xlu0 %v5006_v49, %s3335_s17  ;;  %s3352_s17 = smov 94  }
 0x316   : > { %v5066_v53 = vpop.permute.xlu1 %2058 }
 0x317   : > { %v5068_v58 = vpop.permute.xlu0 %2056  ;;  %v2114_v27 = vsel %vm1102_vm3, %v2111_v4, %v5066_v53 }
 0x318   : > { %2334 = vrot.lane.b32.xlu1 %v5006_v49, %s3336_s19 }
 0x319   : > { %2332 = vrot.lane.b32.xlu0 %v4992_v3, %s3336_s19  ;;  %s3353_s19 = smov 110  }
 0x31a   : > { %v5074_v21 = vpop.permute.xlu1 %2065 }
 0x31b   : > { %v5076_v1 = vpop.permute.xlu0 %2060 }
 0x31c   : > { %2341 = vrot.lane.b32.xlu1 %v4992_v3, %s3337_s24  ;;  %v2115_v22 = vsel %vm1102_vm3, %v2112_v48, %v5076_v1 }
 0x31d   : > { %2339 = vrot.lane.b32.xlu0 %v4996_v28, %s3337_s24 }
 0x31e   : > { %v5082_v50 = vpop.permute.xlu1 %2069 }
 0x31f   : > { %v5084_v52 = vpop.permute.xlu0 %2067  ;;  %v2118_v35 = vsel %vm1106_vm4, %v2115_v22, %v5082_v50 }
 0x320   : > { %2348 = vrot.lane.b32.xlu1 %v4996_v28, %s3338_s25  ;;  %v2117_v44 = vsel %vm1106_vm4, %v2114_v27, %v5084_v52 }
 0x321   : > { %2343 = vrot.lane.b32.xlu0 %v5006_v49, %s3337_s24  ;;  %s3351_s24 = smov 78  }
 0x322   : > { %v5090_v51 = vpop.permute.xlu1 %2076 }
 0x323   : > { %v5092_v18 = vpop.permute.xlu0 %2074  ;;  %v2120_v33 = vsel %vm1110_vm5, %v2117_v44, %v5090_v51 }
 0x324   : > { %2352 = vrot.lane.b32.xlu1 %v5006_v49, %s3338_s25 }
 0x325   : > { %2350 = vrot.lane.b32.xlu0 %v4992_v3, %s3338_s25  ;;  %s175_s25 = sand.u32 1, %s3304_s13  }
 0x326   : > { %v5098_v24 = vpop.permute.xlu1 %2083 }
 0x327   : > { %v5100_v19 = vpop.permute.xlu0 %2078 }
 0x328   : > { %2409 = vrot.lane.b32.xlu1 %v4992_v3, %s3339_s20  ;;  %v2121_v4 = vsel %vm1110_vm5, %v2118_v35, %v5100_v19 }
 0x329   : > { %2407 = vrot.lane.b32.xlu0 %v4996_v28, %s3339_s20 }
 0x32a   : > { %v5106_v42 = vpop.permute.xlu1 %2087 }
 0x32b   : > { %v5108_v7 = vpop.permute.xlu0 %2085  ;;  %v2124_v48 = vsel %vm1114_vm6, %v2121_v4, %v5106_v42 }
 0x32c   : > { %2416 = vrot.lane.b32.xlu1 %v4996_v28, %s3340_s26  ;;  %v2123_v22 = vsel %vm1114_vm6, %v2120_v33, %v5108_v7  ;;  %v5220_v7 = vld [vmem:[%s6238_s2 + $0x14] ss:$0 sm:$0xff] }
 0x32d   : > { %2411 = vrot.lane.b32.xlu0 %v5006_v49, %s3339_s20  ;;  %s3006_s20 = sshll.u32 %s175_s25, 4 }
 0x32e   : > { %v5114_v61 = vpop.permute.xlu1 %2094 }
 0x32f   : > { %v5116_v23 = vpop.permute.xlu0 %2092  ;;  %v2126_v27 = vsel %vm1118_vm7, %v2123_v22, %v5114_v61 }
 0x330   : > { %2420 = vrot.lane.b32.xlu1 %v5006_v49, %s3340_s26 }
 0x331   : > { %2418 = vrot.lane.b32.xlu0 %v4992_v3, %s3340_s26 }
 0x332   : > { %v5122_v8 = vpop.permute.xlu1 %2101 }
 0x333   : > { %v2097_v40 = vpop.permute.xlu0 %2096 }
 0x334   : > { %2427 = vrot.lane.b32.xlu1 %v4992_v3, %s3341_s28  ;;  %v2127_v51 = vsel %vm1118_vm7, %v2124_v48, %v2097_v40 }
 0x335   : > { %2425 = vrot.lane.b32.xlu0 %v4996_v28, %s3341_s28 }
 0x336   : > { %v2106_v9 = vpop.permute.xlu1 %2105 }
 0x337   : > { %v2104_v34 = vpop.permute.xlu0 %2103  ;;  %v5210_v52 = vsel %vm1122_vm8, %v2127_v51, %v2106_v9 }
 0x338   : > { %2434 = vrot.lane.b32.xlu1 %v4996_v28, %s3342_s29  ;;  %v5213_v1 = vsel %vm1122_vm8, %v2126_v27, %v2104_v34  ;;  %v2147_v9 = vmul.f32 %v5220_v7, %v5210_v52 }
 0x339   : > { %2429 = vrot.lane.b32.xlu0 %v5006_v49, %s3341_s28  ;;  %v5228_v34 = vmul.f32 %v5220_v7, %v5213_v1  ;;  %s3354_s28 = smov [#allocation5]  }
 0x33a   : > { %v5132_v36 = vpop.permute.xlu1 %2162  ;;  %v2154_v53 = vrot.slane %v2147_v9, 1 }
 0x33b   : > { %v5134_v15 = vpop.permute.xlu0 %2160  ;;  %v2152_v35 = vrot.slane %v5228_v34, 1 }
 0x33c   : > { %2438 = vrot.lane.b32.xlu1 %v5006_v49, %s3342_s29 }
 0x33d   : > { %2436 = vrot.lane.b32.xlu0 %v4992_v3, %s3342_s29  ;;  %s3250_s29 = sshll.u32 %s3354_s28, 4  ;;  %s3251_s29 = int_to_ptr.vmem [resolvable:$false] %s3250_s29 }
 0x33e   : > { %v5140_v2 = vpop.permute.xlu1 %2169  ;;  %s3252_s7 = scalar_lea.vmem %s3251_s29, 512 }
 0x33f   : > { %v5142_v32 = vpop.permute.xlu0 %2164 }
 0x340   : > { %2445 = vrot.lane.b32.xlu1 %v4992_v3, %s3343_s30 }
 0x341   : > { %2443 = vrot.lane.b32.xlu0 %v4996_v28, %s3343_s30 }
 0x342   : > { %v2174_v60 = vpop.permute.xlu1 %2173 }
 0x343   : > { %v5148_v62 = vpop.permute.xlu0 %2171  ;;  %v2234_v50 = vsel %vm1098_vm2, %v5142_v32, %v2174_v60 }
 0x344   : > { %2531 = vrot.lane.b32.xlu1 %v4791_v63, %s3316_s10  ;;  %v2233_v44 = vsel %vm1098_vm2, %v5132_v36, %v5148_v62  ;;  %v2155_v36 = vsel %vm694_vm1, %v2152_v35, %v2154_v53 }
 0x345   : > { %2529 = vrot.lane.b32.xlu0 %v4795_v26, %s3316_s10 }
 0x346   : > { %v5154_v17 = vpop.permute.xlu1 %2180 }
 0x347   : > { %v5156_v29 = vpop.permute.xlu0 %2178  ;;  %v2236_v48 = vsel %vm1102_vm3, %v2233_v44, %v5154_v17  ;;  %v5259_v17 = vld [vmem:[%s6238_s2 + $0x4] ss:$0 sm:$0xff] }
 0x348   : > { %2538 = vrot.lane.b32.xlu1 %v4795_v26, %s3347_s27 }
 0x349   : > { %2533 = vrot.lane.b32.xlu0 %v4805_v12, %s3316_s10 }
 0x34a   : > { %v5162_v11 = vpop.permute.xlu1 %2187 }
 0x34b   : > { %v2183_v43 = vpop.permute.xlu0 %2182 }
 0x34c   : > { %2542 = vrot.lane.b32.xlu1 %v4805_v12, %s3347_s27  ;;  %v2237_v33 = vsel %vm1102_vm3, %v2234_v50, %v2183_v43  ;;  %v5278_v50 = vld [vmem:[%s6238_s2 + $0xc] ss:$0 sm:$0xff] }
 0x34d   : > { %2540 = vrot.lane.b32.xlu0 %v4791_v63, %s3347_s27 }
 0x34e   : > { %v2192_v59 = vpop.permute.xlu1 %2191 }
 0x34f   : > { %v2190_v25 = vpop.permute.xlu0 %2189  ;;  %v2240_v22 = vsel %vm1106_vm4, %v2237_v33, %v2192_v59 }
 0x350   : > { %2549 = vrot.lane.b32.xlu1 %v4791_v63, %s3348_s8  ;;  %v2239_v32 = vsel %vm1106_vm4, %v2236_v48, %v2190_v25 }
 0x351   : > { %2547 = vrot.lane.b32.xlu0 %v4795_v26, %s3348_s8 }
 0x352   : > { %v2199_v57 = vpop.permute.xlu1 %2198 }
 0x353   : > { %v5172_v6 = vpop.permute.xlu0 %2196  ;;  %v2242_v51 = vsel %vm1110_vm5, %v2239_v32, %v2199_v57  ;;  %v2137_v57 = vmul.f32 %v5259_v17, %v5213_v1 }
 0x354   : > { %2556 = vrot.lane.b32.xlu1 %v4795_v26, %s3349_s9 }
 0x355   : > { %2551 = vrot.lane.b32.xlu0 %v4805_v12, %s3348_s8 }
 0x356   : > { %v5188_v47 = vpop.permute.xlu1 %2205 }
 0x357   : > { %v2201_v46 = vpop.permute.xlu0 %2200 }
 0x358   : > { %2560 = vrot.lane.b32.xlu1 %v4805_v12, %s3349_s9  ;;  %v2243_v27 = vsel %vm1110_vm5, %v2240_v22, %v2201_v46 }
 0x359   : > { %2558 = vrot.lane.b32.xlu0 %v4791_v63, %s3349_s9 }
 0x35a   : > { %v2210_v19 = vpop.permute.xlu1 %2209 }
 0x35b   : > { %v2208_v42 = vpop.permute.xlu0 %2207  ;;  %v2246_v62 = vsel %vm1114_vm6, %v2243_v27, %v2210_v19  ;;  %v5272_v19 = vld [vmem:[%s6238_s2 + $0x1c] ss:$0 sm:$0xff] }
 0x35c   : > { %2567 = vrot.lane.b32.xlu1 %v4791_v63, %s3350_s11  ;;  %v2245_v43 = vsel %vm1114_vm6, %v2242_v51, %v2208_v42 }
 0x35d   : > { %2565 = vrot.lane.b32.xlu0 %v4795_v26, %s3350_s11 }
 0x35e   : > { %v2217_v40 = vpop.permute.xlu1 %2216 }
 0x35f   : > { %v5230_v61 = vpop.permute.xlu0 %2214  ;;  %v2248_v46 = vsel %vm1118_vm7, %v2245_v43, %v2217_v40  ;;  %v2159_v40 = vadd.f32 %v2155_v36, %v2137_v57 }
 0x360   : > { %2574 = vrot.lane.b32.xlu1 %v4795_v26, %s3351_s24 }
 0x361   : > { %2569 = vrot.lane.b32.xlu0 %v4805_v12, %s3350_s11 }
 0x362   : > { %v5243_v4 = vpop.permute.xlu1 %2223 }
 0x363   : > { %v2219_v60 = vpop.permute.xlu0 %2218 }
 0x364   : > { %2578 = vrot.lane.b32.xlu1 %v4805_v12, %s3351_s24  ;;  %v2249_v25 = vsel %vm1118_vm7, %v2246_v62, %v2219_v60 }
 0x365   : > { %2576 = vrot.lane.b32.xlu0 %v4791_v63, %s3351_s24 }
 0x366   : > { %v2228_v59 = vpop.permute.xlu1 %2227 }
 0x367   : > { %v2252_v9 = vsel %vm1122_vm8, %v2249_v25, %v2228_v59  ;;  %v2226_v42 = vpop.permute.xlu0 %2225 }
 0x368   : > { %v2269_v53 = vmul.f32 %v5272_v19, %v2252_v9  ;;  %v2251_v44 = vsel %vm1122_vm8, %v2248_v46, %v2226_v42  ;;  %2585 = vrot.lane.b32.xlu1 %v4791_v63, %s3352_s17 }
 0x369   : > { %v2259_v33 = vmul.f32 %v5278_v50, %v2251_v44  ;;  %v5286_v48 = vmul.f32 %v5272_v19, %v2251_v44  ;;  %2583 = vrot.lane.b32.xlu0 %v4795_v26, %s3352_s17 }
 0x36a   : > { %v2276_v22 = vrot.slane %v2269_v53, 1  ;;  %v2288_v60 = vpop.permute.xlu1 %2287 }
 0x36b   : > { %v2261_v32 = vadd.f32 %v2259_v33, %v2159_v40  ;;  %v2274_v27 = vrot.slane %v5286_v48, 1  ;;  %v2286_v51 = vpop.permute.xlu0 %2285 }
 0x36c   : > { %2592 = vrot.lane.b32.xlu1 %v4795_v26, %s3353_s19 }
 0x36d   : > { %v2277_v62 = vsel %vm694_vm1, %v2274_v27, %v2276_v22  ;;  %2587 = vrot.lane.b32.xlu0 %v4805_v12, %s3352_s17 }
 0x36e   : > { %v5298_v43 = vadd.f32 %v2277_v62, %v2261_v32  ;;  %v2295_v25 = vpop.permute.xlu1 %2294 }
 0x36f   : > { %v2357_v59 = vsel %vm1098_vm2, %v2286_v51, %v2295_v25  ;;  %v2290_v36 = vpop.permute.xlu0 %2289 }
 0x370   : > { %2596 = vrot.lane.b32.xlu1 %v4805_v12, %s3353_s19 }
 0x371   : > { %2594 = vrot.lane.b32.xlu0 %v4791_v63, %s3353_s19 }
 0x372   : > { %v2299_v26 = vpop.permute.xlu1 %2298 }
 0x373   : > { %v2359_v57 = vsel %vm1098_vm2, %v2290_v36, %v2299_v26  ;;  %v2297_v46 = vpop.permute.xlu0 %2296 }
 0x374   : > { %v2358_v9 = vsel %vm1098_vm2, %v2288_v60, %v2297_v46  ;;  %2690 = vrot.lane.b32.xlu1 %v4992_v3, %s3316_s10  ;;  %v2110_v60 = vsel %vm1098_vm2, %v5044_v30, %v5050_v20  ;;  %v2232_v30 = vsel %vm1098_vm2, %v5134_v15, %v5140_v2 }
 0x375   : > { %2688 = vrot.lane.b32.xlu0 %v4996_v28, %s3316_s10  ;;  %v2113_v51 = vsel %vm1102_vm3, %v2110_v60, %v5068_v58 }
 0x376   : > { %v2306_v42 = vpop.permute.xlu1 %2305 }
 0x377   : > { %v2361_v53 = vsel %vm1102_vm3, %v2358_v9, %v2306_v42  ;;  %v2304_v44 = vpop.permute.xlu0 %2303 }
 0x378   : > { %v2360_v12 = vsel %vm1102_vm3, %v2357_v59, %v2304_v44  ;;  %2697 = vrot.lane.b32.xlu1 %v4996_v28, %s3347_s27  ;;  %v2116_v59 = vsel %vm1106_vm4, %v2113_v51, %v5074_v21 }
 0x379   : > { %2692 = vrot.lane.b32.xlu0 %v5006_v49, %s3316_s10  ;;  %v2119_v26 = vsel %vm1110_vm5, %v2116_v59, %v5092_v18  ;;  %v3089_v59 = vld [vmem:[%s6238_s2 + $0x15] ss:$0 sm:$0xff] }
 0x37a   : > { %v2313_v63 = vpop.permute.xlu1 %2312  ;;  %v2122_v58 = vsel %vm1114_vm6, %v2119_v26, %v5098_v24 }
 0x37b   : > { %v2363_v40 = vsel %vm1106_vm4, %v2360_v12, %v2313_v63  ;;  %v2308_v33 = vpop.permute.xlu0 %2307  ;;  %v2125_v21 = vsel %vm1118_vm7, %v2122_v58, %v5116_v23 }
 0x37c   : > { %v2362_v22 = vsel %vm1102_vm3, %v2359_v57, %v2308_v33  ;;  %2701 = vrot.lane.b32.xlu1 %v5006_v49, %s3347_s27  ;;  %v2235_v57 = vsel %vm1102_vm3, %v2232_v30, %v5156_v29  ;;  %v5350_v9 = vsel %vm1122_vm8, %v2125_v21, %v5122_v8 }
 0x37d   : > { %2699 = vrot.lane.b32.xlu0 %v4992_v3, %s3347_s27  ;;  %v2238_v24 = vsel %vm1106_vm4, %v2235_v57, %v5162_v11  ;;  %v2145_v8 = vmul.f32 %v5220_v7, %v5350_v9  ;;  %v2136_v33 = vmul.f32 %v5259_v17, %v5350_v9 }
 0x37e   : > { %v2317_v32 = vpop.permute.xlu1 %2316  ;;  %v2241_v2 = vsel %vm1110_vm5, %v2238_v24, %v5172_v6 }
 0x37f   : > { %v2365_v62 = vsel %vm1106_vm4, %v2362_v22, %v2317_v32  ;;  %v2315_v25 = vpop.permute.xlu0 %2314  ;;  %v2244_v29 = vsel %vm1114_vm6, %v2241_v2, %v5188_v47  ;;  %v2151_v12 = vrot.slane %v2145_v8, 1 }
 0x380   : > { %v2364_v36 = vsel %vm1106_vm4, %v2361_v53, %v2315_v25  ;;  %2708 = vrot.lane.b32.xlu1 %v4992_v3, %s3348_s8  ;;  %v2247_v11 = vsel %vm1118_vm7, %v2244_v29, %v5230_v61 }
 0x381   : > { %2706 = vrot.lane.b32.xlu0 %v4996_v28, %s3348_s8  ;;  %v2250_v44 = vsel %vm1122_vm8, %v2247_v11, %v5243_v4  ;;  %v2153_v4 = vsel %vm694_vm1, %v2151_v12, %v2152_v35  ;;  %v3088_v35 = vld [vmem:[%s6238_s2 + $0x5] ss:$0 sm:$0xff] }
 0x382   : > { %v2324_v20 = vpop.permute.xlu1 %2323  ;;  %v2267_v7 = vmul.f32 %v5272_v19, %v2250_v44  ;;  %v2258_v19 = vmul.f32 %v5278_v50, %v2250_v44 }
 0x383   : > { %v2367_v46 = vsel %vm1110_vm5, %v2364_v36, %v2324_v20  ;;  %v2322_v18 = vpop.permute.xlu0 %2321 }
 0x384   : > { %v2366_v42 = vsel %vm1110_vm5, %v2363_v40, %v2322_v18  ;;  %2715 = vrot.lane.b32.xlu1 %v4996_v28, %s3349_s9  ;;  %v2273_v60 = vrot.slane %v2267_v7, 1 }
 0x385   : > { %2710 = vrot.lane.b32.xlu0 %v5006_v49, %s3348_s8 }
 0x386   : > { %v2331_v15 = vpop.permute.xlu1 %2330  ;;  %v2275_v34 = vsel %vm694_vm1, %v2273_v60, %v2274_v27  ;;  %v3099_v27 = vld [vmem:[%s6238_s2 + $0x1f] ss:$0 sm:$0xff] }
 0x387   : > { %v2369_v23 = vsel %vm1114_vm6, %v2366_v42, %v2331_v15  ;;  %v2326_v53 = vpop.permute.xlu0 %2325 }
 0x388   : > { %v2368_v6 = vsel %vm1110_vm5, %v2365_v62, %v2326_v53  ;;  %2719 = vrot.lane.b32.xlu1 %v5006_v49, %s3349_s9  ;;  %v2158_v62 = vadd.f32 %v2153_v4, %v2136_v33 }
 0x389   : > { %2717 = vrot.lane.b32.xlu0 %v4992_v3, %s3349_s9 }
 0x38a   : > { %v2335_v47 = vpop.permute.xlu1 %2334  ;;  %v2260_v17 = vadd.f32 %v2258_v19, %v2158_v62 }
 0x38b   : > { %v2371_v61 = vsel %vm1114_vm6, %v2368_v6, %v2335_v47  ;;  %v2333_v63 = vpop.permute.xlu0 %2332 }
 0x38c   : > { %v2370_v40 = vsel %vm1114_vm6, %v2367_v46, %v2333_v63  ;;  %2726 = vrot.lane.b32.xlu1 %v4992_v3, %s3350_s11  ;;  %v2280_v48 = vadd.f32 %v2275_v34, %v2260_v17 }
 0x38d   : > { %2724 = vrot.lane.b32.xlu0 %v4996_v28, %s3350_s11 }
 0x38e   : > { %v2342_v22 = vpop.permute.xlu1 %2341 }
 0x38f   : > { %v2373_v32 = vsel %vm1118_vm7, %v2370_v40, %v2342_v22  ;;  %v2340_v51 = vpop.permute.xlu0 %2339 }
 0x390   : > { %v2372_v25 = vsel %vm1118_vm7, %v2369_v23, %v2340_v51  ;;  %2733 = vrot.lane.b32.xlu1 %v4996_v28, %s3351_s24 }
 0x391   : > { %2728 = vrot.lane.b32.xlu0 %v5006_v49, %s3350_s11 }
 0x392   : > { %v2349_v50 = vpop.permute.xlu1 %2348 }
 0x393   : > { %v5404_v36 = vsel %vm1122_vm8, %v2372_v25, %v2349_v50  ;;  %v2344_v26 = vpop.permute.xlu0 %2343 }
 0x394   : > { %v2383_v58 = vmul.f32 %v3088_v35, %v5404_v36  ;;  %2737 = vrot.lane.b32.xlu1 %v5006_v49, %s3351_s24  ;;  %v2374_v30 = vsel %vm1118_vm7, %v2371_v61, %v2344_v26  ;;  %v2392_v21 = vmul.f32 %v3089_v59, %v5404_v36  ;;  %v2830_v46 = vmul.f32 %v3099_v27, %v5404_v36 }
 0x395   : > { %2735 = vrot.lane.b32.xlu0 %v4992_v3, %s3351_s24 }
 0x396   : > { %v2385_v20 = vadd.f32 %v2383_v58, %v2280_v48  ;;  %v2353_v57 = vpop.permute.xlu1 %2352  ;;  %v2398_v23 = vrot.slane %v2392_v21, 1  ;;  %v2836_v47 = vrot.slane %v2830_v46, 1 }
 0x397   : > { %v5418_v18 = vsel %vm1122_vm8, %v2374_v30, %v2353_v57  ;;  %v2351_v24 = vpop.permute.xlu0 %2350 }
 0x398   : > { %v2394_v42 = vmul.f32 %v3089_v59, %v5418_v18  ;;  %v5422_v2 = vmul.f32 %v3099_v27, %v5418_v18  ;;  %v5425_v29 = vsel %vm1122_vm8, %v2373_v32, %v2351_v24  ;;  %2744 = vrot.lane.b32.xlu1 %v4992_v3, %s3352_s17 }
 0x399   : > { %v2384_v15 = vmul.f32 %v3088_v35, %v5425_v29  ;;  %v2393_v8 = vmul.f32 %v3089_v59, %v5425_v29  ;;  %v2831_v11 = vmul.f32 %v3099_v27, %v5425_v29  ;;  %2742 = vrot.lane.b32.xlu0 %v4996_v28, %s3352_s17 }
 0x39a   : > { %v2401_v53 = vrot.slane %v2394_v42, 1  ;;  %v6276_v44 = vrot.slane %v5422_v2, 1  ;;  %v2410_v6 = vpop.permute.xlu1 %2409 }
 0x39b   : > { %v2386_v12 = vadd.f32 %v2384_v15, %v5298_v43  ;;  %v2399_v7 = vrot.slane %v2393_v8, 1  ;;  %v2837_v61 = vrot.slane %v2831_v11, 1  ;;  %v2408_v63 = vpop.permute.xlu0 %2407 }
 0x39c   : > { %2751 = vrot.lane.b32.xlu1 %v4996_v28, %s3353_s19 }
 0x39d   : > { %v5439_v40 = vsel %vm694_vm1, %v2836_v47, %v2837_v61  ;;  %v5444_v4 = vsel %vm694_vm1, %v2837_v61, %v6276_v44  ;;  %2746 = vrot.lane.b32.xlu0 %v5006_v49, %s3352_s17  ;;  %v2400_v33 = vsel %vm694_vm1, %v2398_v23, %v2399_v7  ;;  %v2402_v43 = vsel %vm694_vm1, %v2399_v7, %v2401_v53 }
 0x39e   : > { %v2417_v19 = vpop.permute.xlu1 %2416  ;;  %v5450_v22 = vadd.f32 %v2400_v33, %v2385_v20  ;;  %v5452_v60 = vadd.f32 %v2402_v43, %v2386_v12  ;;  %v1100_v47 = vsel %vm1098_vm2, %v4121_v14, %v4280_v16  ;;  %v1099_v12 = vsel %vm1098_vm2, %v4123_v38, %v4282_v54  ;;  %v6513_v43 = vld [vmem:[#allocation24_spill] sm:$0xff] }
 0x39f   : > { %v2479_v32 = vsel %vm1098_vm2, %v2408_v63, %v2417_v19  ;;  %v2412_v51 = vpop.permute.xlu0 %2411 }
 0x3a0   : > { %6510 = vst [vmem:[#allocation185_spill] sm:$0xff] %v5450_v22  ;;  %6511 = vst [vmem:[#allocation186_spill] sm:$0xff] %v5452_v60  ;;  %2755 = vrot.lane.b32.xlu1 %v5006_v49, %s3353_s19  ;;  %v6656_v60 = vld [vmem:[#allocation148_spill] sm:$0xff] }
 0x3a1   : > { %2753 = vrot.lane.b32.xlu0 %v4992_v3, %s3353_s19 }
 0x3a2   : > { %v2421_v62 = vpop.permute.xlu1 %2420 }
 0x3a3   : > { %v2481_v25 = vsel %vm1098_vm2, %v2412_v51, %v2421_v62  ;;  %v2419_v34 = vpop.permute.xlu0 %2418 }
 0x3a4   : > { %v2480_v35 = vsel %vm1098_vm2, %v2410_v6, %v2419_v34  ;;  %2452 = vrot.lane.b32.xlu1 %v4996_v28, %s3344_s4 }
 0x3a5   : > { %2447 = vrot.lane.b32.xlu0 %v5006_v49, %s3343_s30  ;;  %s3106_s30 = sshll.u32 %s3398_s16, 8  ;;  %s6195_s16 = scalar_lea.sflag [#allocation3], %s175_s25 }
 0x3a6   : > { %v2428_v17 = vpop.permute.xlu1 %2427  ;;  %s6191_s24 = scalar_lea.hbm %s6239_s3, %s3106_s30 }
 0x3a7   : > { %v2483_v50 = vsel %vm1102_vm3, %v2480_v35, %v2428_v17  ;;  %v2426_v59 = vpop.permute.xlu0 %2425  ;;  %v6517_v35 = vld [vmem:[#allocation17_spill] sm:$0xff] }
 0x3a8   : > { %v2482_v26 = vsel %vm1102_vm3, %v2479_v32, %v2426_v59  ;;  %2456 = vrot.lane.b32.xlu1 %v5006_v49, %s3344_s4  ;;  %v6515_v32 = vld [vmem:[#allocation9_spill] sm:$0xff] }
 0x3a9   : > { %2454 = vrot.lane.b32.xlu0 %v4992_v3, %s3344_s4  ;;  %s177_s4 = scalar_lea.vmem [#allocation5], %s3006_s20 }
 0x3aa   : > { %v2435_v48 = vpop.permute.xlu1 %2434 }
 0x3ab   : > { %v2485_v27 = vsel %vm1106_vm4, %v2482_v26, %v2435_v48  ;;  %v2430_v58 = vpop.permute.xlu0 %2429  ;;  %v6518_v26 = vld [vmem:[#allocation16_spill] sm:$0xff] }
 0x3ac   : > { %v2484_v30 = vsel %vm1102_vm3, %v2481_v25, %v2430_v58  ;;  %2463 = vrot.lane.b32.xlu1 %v4992_v3, %s3345_s5  ;;  %v6516_v25 = vld [vmem:[#allocation18_spill] sm:$0xff] }
 0x3ad   : > { %2461 = vrot.lane.b32.xlu0 %v4996_v28, %s3345_s5  ;;  %v6519_v58 = vld [vmem:[#allocation22_spill] sm:$0xff] }
 0x3ae   : > { %v2439_v20 = vpop.permute.xlu1 %2438 }
 0x3af   : > { %v5478_v21 = vsel %vm1106_vm4, %v2484_v30, %v2439_v20  ;;  %v2437_v57 = vpop.permute.xlu0 %2436 }
 0x3b0   : > { %v2486_v46 = vsel %vm1106_vm4, %v2483_v50, %v2437_v57  ;;  %2470 = vrot.lane.b32.xlu1 %v4996_v28, %s3346_s6 }
 0x3b1   : > { %2465 = vrot.lane.b32.xlu0 %v5006_v49, %s3345_s5  ;;  %s2926_s5 = sshll.u32 %s177_s4, 4  ;;  %s6193_s5 = int_to_ptr.vmem [resolvable:$true] %s2926_s5 }
 0x3b2   : > { %v2446_v24 = vpop.permute.xlu1 %2445  ;;  %s3246_s26 = scalar_lea.vmem %s6193_s5, 256  ;;  %p3253_p13 = scmp.lt.s32.totalorder %s6193_s5, %s3251_s29 }
 0x3b3   : > { %v5486_v42 = vsel %vm1110_vm5, %v2486_v46, %v2446_v24  ;;  %v2444_v15 = vpop.permute.xlu0 %2443  ;;  %v6520_v46 = vld [vmem:[#allocation23_spill] sm:$0xff]  ;;  %p3247_p9 = scmp.ne.s32.totalorder %s6193_s5, %s3246_s26  ;;  %p3254_p0 = scmp.lt.s32.totalorder %s3252_s7, %s3246_s26 }
 0x3b4   : > { %6512 = vst [vmem:[#allocation187_spill] sm:$0xff] %v5486_v42  ;;  %v5489_v8 = vsel %vm1110_vm5, %v2485_v27, %v2444_v15  ;;  %2474 = vrot.lane.b32.xlu1 %v5006_v49, %s3346_s6  ;;  %v1103_v49 = vsel %vm1102_vm3, %v1099_v12, %v4288_v0  ;;  %v6683_v42 = vld [vmem:[#allocation171_spill] sm:$0xff] }
 0x3b5   : > { %2472 = vrot.lane.b32.xlu0 %v4992_v3, %s3346_s6  ;;  %v1104_v3 = vsel %vm1102_vm3, %v1100_v47, %v4298_v13  ;;  %v1107_v61 = vsel %vm1106_vm4, %v1103_v49, %v4306_v5  ;;  %v6522_v47 = vld [vmem:[#allocation28_spill] sm:$0xff]  ;;  %v6523_v49 = vld [vmem:[#allocation26_spill] sm:$0xff]  ;;  %p3248_p10 = pnand %p3247_p9, %p3415_p5  ;;  %p3255_p1 = por %p3254_p0, %p3253_p13 }
 0x3b6   : > { %v2532_v11 = vpop.permute.xlu1 %2531  ;;  %v1108_v7 = vsel %vm1106_vm4, %v1104_v3, %v4304_v56  ;;  %v1111_v14 = vsel %vm1110_vm5, %v1107_v61, %v4312_v45  ;;  %v6525_v61 = vld [vmem:[#allocation25_spill] sm:$0xff] }
 0x3b7   : > { %v2530_v23 = vpop.permute.xlu0 %2529  ;;  %v1112_v16 = vsel %vm1110_vm5, %v1108_v7, %v4322_v39  ;;  %v1115_v13 = vsel %vm1114_vm6, %v1111_v14, %v4330_v31  ;;  %v3069_v39 = vld [vmem:[%s6238_s2 + $0x10] ss:$0 sm:$0xff]  ;;  %v6514_v31 = vld [vmem:[#allocation13_spill] sm:$0xff]  ;;  %v6526_v14 = vld [vmem:[#allocation32_spill] sm:$0xff]  ;;  %p3249_p12 = pneg %p3248_p10 }
 0x3b8   : > { %v1116_v0 = vsel %vm1114_vm6, %v1112_v16, %v4328_v41  ;;  %v1119_v5 = vsel %vm1118_vm7, %v1115_v13, %v4336_v55  ;;  %v1101_v51 = vsel %vm1098_vm2, %v6515_v32, %v6514_v31  ;;  %v6524_v7 = vld [vmem:[#allocation30_spill] sm:$0xff]  ;;  %v6527_v16 = vld [vmem:[#allocation27_spill] sm:$0xff]  ;;  %v6532_v32 = vld [vmem:[#allocation36_spill] sm:$0xff] }
 0x3b9   : > { %v1120_v45 = vsel %vm1118_vm7, %v1116_v0, %v4346_v37  ;;  %v1123_v41 = vsel %vm1122_vm8, %v1119_v5, %v6513_v43  ;;  %v1105_v37 = vsel %vm1102_vm3, %v1101_v51, %v6516_v25  ;;  %v6531_v43 = vld [vmem:[#allocation35_spill] sm:$0xff]  ;;  %p3256_p2 = pnand %p3255_p1, %p3249_p12 }
 0x3ba   : > { %v2539_v28 = vpop.permute.xlu1 %2538  ;;  %v1124_v33 = vsel %vm1122_vm8, %v1120_v45, %v4352_v10  ;;  %v1109_v17 = vsel %vm1106_vm4, %v1105_v37, %v6517_v35  ;;  %v3068_v10 = vld [vmem:[%s6238_s2] ss:$0 sm:$0xff]  ;;  %v1142_v59 = vmul.f32 %v3069_v39, %v1123_v41  ;;  %v6530_v45 = vld [vmem:[#allocation33_spill] sm:$0xff] }
 0x3bb   : > { %v2601_v53 = vsel %vm1098_vm2, %v2530_v23, %v2539_v28  ;;  %v2534_v6 = vpop.permute.xlu0 %2533  ;;  %v5543_v50 = vmul.f32 %v3069_v39, %v1124_v33  ;;  %v1113_v48 = vsel %vm1110_vm5, %v1109_v17, %v6518_v26  ;;  %v5552_v15 = vmul.f32 %v3068_v10, %v1124_v33  ;;  %v6534_v37 = vld [vmem:[#allocation40_spill] sm:$0xff] }
 0x3bc   : > { %v1117_v30 = vsel %vm1114_vm6, %v1113_v48, %v6519_v58  ;;  %v5556_v28 = vmul.f32 %v3068_v10, %v1123_v41  ;;  %v6536_v48 = vld [vmem:[#allocation39_spill] sm:$0xff]  ;;  %v6537_v58 = vld [vmem:[#allocation41_spill] sm:$0xff] }
 0x3bd   : > { %v1121_v24 = vsel %vm1118_vm7, %v1117_v30, %v6520_v46  ;;  %v1149_v23 = vrot.slane %v5543_v50, 1  ;;  %v6538_v46 = vld [vmem:[#allocation42_spill] sm:$0xff]  ;;  %v6567_v50 = vld [vmem:[#allocation61_spill] sm:$0xff] }
 0x3be   : > { %v2543_v63 = vpop.permute.xlu1 %2542  ;;  %v1125_v3 = vsel %vm1122_vm8, %v1121_v24, %v6523_v49 }
 0x3bf   : > { %v2603_v38 = vsel %vm1098_vm2, %v2534_v6, %v2543_v63  ;;  %v2541_v54 = vpop.permute.xlu0 %2540  ;;  %v6521_v6 = vld [vmem:[#allocation29_spill] sm:$0xff]  ;;  %v1231_v63 = vsel %vm1098_vm2, %v6525_v61, %v6524_v7 }
 0x3c0   : > { %v2602_v56 = vsel %vm1098_vm2, %v2532_v11, %v2541_v54  ;;  %v1232_v12 = vsel %vm1098_vm2, %v6522_v47, %v6521_v6  ;;  %v6528_v54 = vld [vmem:[#allocation34_spill] sm:$0xff]  ;;  %v6542_v7 = vld [vmem:[#allocation45_spill] sm:$0xff] }
 0x3c1   : > { %v1235_v0 = vsel %vm1102_vm3, %v1232_v12, %v6528_v54  ;;  %v6540_v6 = vld [vmem:[#allocation46_spill] sm:$0xff]  ;;  %v6541_v12 = vld [vmem:[#allocation43_spill] sm:$0xff] }
 0x3c2   : > { %v2550_v19 = vpop.permute.xlu1 %2549  ;;  %v1238_v41 = vsel %vm1106_vm4, %v1235_v0, %v6531_v43  ;;  %v6544_v54 = vld [vmem:[#allocation50_spill] sm:$0xff] }
 0x3c3   : > { %v2605_v55 = vsel %vm1102_vm3, %v2602_v56, %v2550_v19  ;;  %v2548_v62 = vpop.permute.xlu0 %2547  ;;  %v6529_v56 = vld [vmem:[#allocation31_spill] sm:$0xff] }
 0x3c4   : > { %v2604_v34 = vsel %vm1102_vm3, %v2601_v53, %v2548_v62  ;;  %v1148_v53 = vrot.slane %v1142_v59, 1  ;;  %v1234_v5 = vsel %vm1102_vm3, %v1231_v63, %v6529_v56  ;;  %v6533_v62 = vld [vmem:[#allocation38_spill] sm:$0xff]  ;;  %v6535_v59 = vld [vmem:[#allocation37_spill] sm:$0xff]  ;;  %v6543_v63 = vld [vmem:[#allocation47_spill] sm:$0xff] }
 0x3c5   : > { %v1237_v51 = vsel %vm1106_vm4, %v1234_v5, %v6532_v32  ;;  %v6546_v56 = vld [vmem:[#allocation11_spill] sm:$0xff]  ;;  %v6549_v32 = vld [vmem:[#allocation48_spill] sm:$0xff] }
 0x3c6   : > { %v2557_v27 = vpop.permute.xlu1 %2556  ;;  %v1150_v17 = vsel %vm694_vm1, %v1148_v53, %v1149_v23  ;;  %v1240_v26 = vsel %vm1110_vm5, %v1237_v51, %v6535_v59 }
 0x3c7   : > { %v2607_v20 = vsel %vm1106_vm4, %v2604_v34, %v2557_v27  ;;  %v2552_v57 = vpop.permute.xlu0 %2551  ;;  %v1241_v34 = vsel %vm1110_vm5, %v1238_v41, %v6534_v37  ;;  %v1243_v24 = vsel %vm1114_vm6, %v1240_v26, %v6538_v46  ;;  %v6551_v37 = vld [vmem:[#allocation56_spill] sm:$0xff]  ;;  %v6552_v26 = vld [vmem:[#allocation57_spill] sm:$0xff]  ;;  %v6555_v46 = vld [vmem:[#allocation62_spill] sm:$0xff] }
 0x3c8   : > { %v2606_v11 = vsel %vm1102_vm3, %v2603_v38, %v2552_v57  ;;  %v1233_v38 = vsel %vm1098_vm2, %v6527_v16, %v6526_v14  ;;  %v1244_v30 = vsel %vm1114_vm6, %v1241_v34, %v6537_v58  ;;  %v1144_v57 = vmul.f32 %v3069_v39, %v1125_v3  ;;  %v3071_v39 = vld [vmem:[%s6238_s2 + $0x18] ss:$0 sm:$0xff] }
 0x3c9   : > { %v1236_v33 = vsel %vm1102_vm3, %v1233_v38, %v6530_v45  ;;  %v1247_v47 = vsel %vm1118_vm7, %v1244_v30, %v6540_v6  ;;  %v1246_v49 = vsel %vm1118_vm7, %v1243_v24, %v6541_v12  ;;  %v6547_v45 = vld [vmem:[#allocation52_spill] sm:$0xff] }
 0x3ca   : > { %v2561_v13 = vpop.permute.xlu1 %2560  ;;  %v1239_v25 = vsel %vm1106_vm4, %v1236_v33, %v6533_v62  ;;  %v1250_v14 = vsel %vm1122_vm8, %v1247_v47, %v6543_v63  ;;  %v6548_v33 = vld [vmem:[#allocation12_spill] sm:$0xff]  ;;  %v1249_v51 = vsel %vm1122_vm8, %v1246_v49, %v6549_v32  ;;  %v6550_v62 = vld [vmem:[#allocation53_spill] sm:$0xff]  ;;  %v6556_v47 = vld [vmem:[#allocation63_spill] sm:$0xff] }
 0x3cb   : > { %v2609_v19 = vsel %vm1106_vm4, %v2606_v11, %v2561_v13  ;;  %v2559_v31 = vpop.permute.xlu0 %2558  ;;  %v1242_v27 = vsel %vm1110_vm5, %v1239_v25, %v6536_v48  ;;  %v6539_v11 = vld [vmem:[#allocation44_spill] sm:$0xff]  ;;  %v6545_v13 = vld [vmem:[#allocation51_spill] sm:$0xff]  ;;  %v1352_v43 = vsel %vm1098_vm2, %v6548_v33, %v6547_v45  ;;  %v1269_v59 = vmul.f32 %v3071_v39, %v1250_v14  ;;  %v6562_v33 = vld [vmem:[#allocation54_spill] sm:$0xff] }
 0x3cc   : > { %v2608_v35 = vsel %vm1106_vm4, %v2605_v55, %v2559_v31  ;;  %v1245_v55 = vsel %vm1114_vm6, %v1242_v27, %v6539_v11  ;;  %v1353_v5 = vsel %vm1098_vm2, %v6546_v56, %v6545_v13  ;;  %v1133_v31 = vmul.f32 %v3068_v10, %v1125_v3  ;;  %v6553_v27 = vld [vmem:[#allocation58_spill] sm:$0xff]  ;;  %v6554_v10 = vld [vmem:[#allocation59_spill] sm:$0xff]  ;;  %v6557_v12 = vld [vmem:[#allocation64_spill] sm:$0xff] }
 0x3cd   : > { %v1248_v61 = vsel %vm1118_vm7, %v1245_v55, %v6542_v7  ;;  %v1355_v25 = vsel %vm1102_vm3, %v1352_v43, %v6550_v62  ;;  %v1356_v34 = vsel %vm1102_vm3, %v1353_v5, %v6551_v37  ;;  %v1268_v6 = vmul.f32 %v3071_v39, %v1249_v51  ;;  %v6559_v63 = vld [vmem:[#allocation8_spill] sm:$0xff]  ;;  %v6560_v13 = vld [vmem:[#allocation65_spill] sm:$0xff]  ;;  %v6564_v62 = vld [vmem:[#allocation70_spill] sm:$0xff] }
 0x3ce   : > { %v2568_v53 = vpop.permute.xlu1 %2567  ;;  %v1251_v0 = vsel %vm1122_vm8, %v1248_v61, %v6544_v54  ;;  %v1359_v48 = vsel %vm1106_vm4, %v1356_v34, %v6552_v26  ;;  %v1358_v58 = vsel %vm1106_vm4, %v1355_v25, %v6553_v27  ;;  %v6558_v61 = vld [vmem:[#allocation49_spill] sm:$0xff]  ;;  %v6561_v5 = vld [vmem:[#allocation68_spill] sm:$0xff]  ;;  %v6565_v26 = vld [vmem:[#allocation55_spill] sm:$0xff]  ;;  %v1275_v27 = vrot.slane %v1269_v59, 1 }
 0x3cf   : > { %v5610_v16 = vsel %vm1110_vm5, %v2608_v35, %v2568_v53  ;;  %v2566_v38 = vpop.permute.xlu0 %2565  ;;  %v1151_v35 = vrot.slane %v1144_v57, 1  ;;  %v1361_v3 = vsel %vm1110_vm5, %v1358_v58, %v6554_v10  ;;  %v1362_v24 = vsel %vm1110_vm5, %v1359_v48, %v6555_v46  ;;  %v3070_v57 = vld [vmem:[%s6238_s2 + $0x8] ss:$0 sm:$0xff]  ;;  %v6566_v10 = vld [vmem:[#allocation60_spill] sm:$0xff]  ;;  %v3073_v46 = vld [vmem:[%s6238_s2 + $0x11] ss:$0 sm:$0xff] }
 0x3d0   : > { %v2610_v41 = vsel %vm1110_vm5, %v2607_v20, %v2566_v38  ;;  %v1270_v20 = vmul.f32 %v3071_v39, %v1251_v0  ;;  %v1365_v53 = vsel %vm1114_vm6, %v1362_v24, %v6556_v47  ;;  %v1364_v49 = vsel %vm1114_vm6, %v1361_v3, %v6557_v12  ;;  %v6568_v59 = vld [vmem:[#allocation66_spill] sm:$0xff]  ;;  %v6569_v47 = vld [vmem:[#allocation67_spill] sm:$0xff] }
 0x3d1   : > { %v1351_v38 = vsel %vm1098_vm2, %v6559_v63, %v6558_v61  ;;  %v1259_v54 = vmul.f32 %v3070_v57, %v1251_v0  ;;  %v1367_v56 = vsel %vm1118_vm7, %v1364_v49, %v6560_v13  ;;  %v1368_v45 = vsel %vm1118_vm7, %v1365_v53, %v6561_v5 }
 0x3d2   : > { %v2575_v30 = vpop.permute.xlu1 %2574  ;;  %v1158_v39 = vadd.f32 %v1151_v35, %v1133_v31  ;;  %v1354_v43 = vsel %vm1102_vm3, %v1351_v38, %v6562_v33  ;;  %v1152_v0 = vsel %vm694_vm1, %v1149_v23, %v1151_v35  ;;  %v1258_v37 = vmul.f32 %v3070_v57, %v1250_v14 }
 0x3d3   : > { %v2613_v11 = vsel %vm1114_vm6, %v2610_v41, %v2575_v30  ;;  %v2570_v55 = vpop.permute.xlu0 %2569  ;;  %v6563_v41 = vld [vmem:[#allocation69_spill] sm:$0xff]  ;;  %v1277_v34 = vrot.slane %v1270_v20, 1  ;;  %v1357_v48 = vsel %vm1106_vm4, %v1354_v43, %v6565_v26  ;;  %v1257_v58 = vmul.f32 %v3070_v57, %v1249_v51  ;;  %v3072_v57 = vld [vmem:[%s6238_s2 + $0x1] ss:$0 sm:$0xff] }
 0x3d4   : > { %v2612_v7 = vsel %vm1110_vm5, %v2609_v19, %v2570_v55  ;;  %v1371_v32 = vsel %vm1122_vm8, %v1368_v45, %v6563_v41  ;;  %v1370_v19 = vsel %vm1122_vm8, %v1367_v56, %v6564_v62  ;;  %v1274_v30 = vrot.slane %v1268_v6, 1 }
 0x3d5   : > { %v1360_v3 = vsel %vm1110_vm5, %v1357_v48, %v6566_v10  ;;  %v1262_v24 = vadd.f32 %v1259_v54, %v1158_v39  ;;  %v1390_v14 = vmul.f32 %v3073_v46, %v1371_v32  ;;  %v1389_v35 = vmul.f32 %v3073_v46, %v1370_v19 }
 0x3d6   : > { %v2579_v25 = vpop.permute.xlu1 %2578  ;;  %v1363_v23 = vsel %vm1114_vm6, %v1360_v3, %v6567_v50  ;;  %v1156_v20 = vadd.f32 %v1150_v17, %v5556_v28  ;;  %v1157_v55 = vadd.f32 %v1152_v0, %v5552_v15  ;;  %v1379_v12 = vmul.f32 %v3072_v57, %v1371_v32  ;;  %v3093_v0 = vld [vmem:[%s6238_s2 + $0x16] ss:$0 sm:$0xff] }
 0x3d7   : > { %v2577_v31 = vpop.permute.xlu0 %2576  ;;  %v1366_v51 = vsel %vm1118_vm7, %v1363_v23, %v6568_v59  ;;  %v1278_v49 = vsel %vm694_vm1, %v1275_v27, %v1277_v34  ;;  %v1378_v28 = vmul.f32 %v3072_v57, %v1370_v19  ;;  %v1284_v17 = vadd.f32 %v1277_v34, %v1262_v24  ;;  %v6575_v23 = vld [vmem:[#allocation72_spill] sm:$0xff] }
 0x3d8   : > { %v1369_v53 = vsel %vm1122_vm8, %v1366_v51, %v6569_v47  ;;  %v1261_v63 = vadd.f32 %v1258_v37, %v1157_v55  ;;  %v1260_v38 = vadd.f32 %v1257_v58, %v1156_v20  ;;  %v1276_v15 = vsel %vm694_vm1, %v1274_v30, %v1275_v27  ;;  %v6577_v20 = vld [vmem:[#allocation74_spill] sm:$0xff]  ;;  %v6578_v59 = vld [vmem:[#allocation76_spill] sm:$0xff]  ;;  %v6579_v51 = vld [vmem:[#allocation71_spill] sm:$0xff] }
 0x3d9   : > { %v1397_v54 = vrot.slane %v1390_v14, 1  ;;  %v1395_v13 = vrot.slane %v1389_v35, 1  ;;  %v1377_v56 = vmul.f32 %v3072_v57, %v1369_v53  ;;  %v1388_v5 = vmul.f32 %v3073_v46, %v1369_v53  ;;  %v6576_v35 = vld [vmem:[#allocation75_spill] sm:$0xff]  ;;  %v6580_v53 = vld [vmem:[#allocation97_spill] sm:$0xff] }
 0x3da   : > { %v2586_v6 = vpop.permute.xlu1 %2585  ;;  %v1283_v45 = vadd.f32 %v1278_v49, %v1261_v63  ;;  %v1382_v33 = vadd.f32 %v1379_v12, %v1284_v17  ;;  %v1282_v32 = vadd.f32 %v1276_v15, %v1260_v38  ;;  %v2615_v34 = vsel %vm1114_vm6, %v2612_v7, %v2579_v25  ;;  %v6581_v12 = vld [vmem:[#allocation96_spill] sm:$0xff]  ;;  %v6583_v63 = vld [vmem:[#allocation98_spill] sm:$0xff]  ;;  %v6585_v17 = vld [vmem:[#allocation95_spill] sm:$0xff] }
 0x3db   : > { %v2584_v61 = vpop.permute.xlu0 %2583  ;;  %v1398_v37 = vsel %vm694_vm1, %v1395_v13, %v1397_v54  ;;  %v1394_v48 = vrot.slane %v1388_v5, 1  ;;  %v2614_v27 = vsel %vm1114_vm6, %v5610_v16, %v2577_v31  ;;  %v6574_v31 = vld [vmem:[#allocation73_spill] sm:$0xff]  ;;  %v1479_v55 = vsel %vm1098_vm2, %v6577_v20, %v6576_v35  ;;  %v6593_v35 = vld [vmem:[#allocation112_spill] sm:$0xff] }
 0x3dc   : > { %v2616_v43 = vsel %vm1118_vm7, %v2613_v11, %v2584_v61  ;;  %v1381_v62 = vadd.f32 %v1378_v28, %v1283_v45  ;;  %v5687_v26 = vadd.f32 %v1377_v56, %v1282_v32  ;;  %v5692_v30 = vadd.f32 %v1397_v54, %v1382_v33  ;;  %v6582_v61 = vld [vmem:[#allocation99_spill] sm:$0xff]  ;;  %v6584_v28 = vld [vmem:[#allocation100_spill] sm:$0xff]  ;;  %v6586_v56 = vld [vmem:[#allocation101_spill] sm:$0xff] }
 0x3dd   : > { %v2617_v10 = vsel %vm1118_vm7, %v2614_v27, %v2586_v6  ;;  %v5699_v7 = vsel %vm694_vm1, %v1394_v48, %v1395_v13  ;;  %v1477_v14 = vsel %vm1098_vm2, %v6575_v23, %v6574_v31  ;;  %v1478_v57 = vsel %vm1098_vm2, %v6579_v51, %v6578_v59  ;;  %v5719_v6 = vld [vmem:[%s6238_s2 + $0x6] ss:$0 sm:$0xff]  ;;  %v6587_v45 = vld [vmem:[#allocation102_spill] sm:$0xff]  ;;  %v6588_v32 = vld [vmem:[#allocation103_spill] sm:$0xff] }
 0x3de   : > { %v2593_v39 = vpop.permute.xlu1 %2592  ;;  %6570 = vst [vmem:[#allocation24_spill] sm:$0xff] %v5687_v26  ;;  %6571 = vst [vmem:[#allocation13_spill] sm:$0xff] %v5692_v30  ;;  %v5701_v25 = vadd.f32 %v1398_v37, %v1381_v62  ;;  %v1603_v49 = vsel %vm1098_vm2, %v6581_v12, %v6580_v53  ;;  %v1605_v38 = vsel %vm1098_vm2, %v6583_v63, %v6582_v61  ;;  %v6590_v27 = vld [vmem:[#allocation104_spill] sm:$0xff]  ;;  %v6592_v31 = vld [vmem:[#allocation105_spill] sm:$0xff] }
 0x3df   : > { %v2588_v41 = vpop.permute.xlu0 %2587  ;;  %v2619_v19 = vsel %vm1122_vm8, %v2616_v43, %v2593_v39  ;;  %6572 = vst [vmem:[#allocation9_spill] sm:$0xff] %v5699_v7  ;;  %v1604_v15 = vsel %vm1098_vm2, %v6585_v17, %v6584_v28  ;;  %v1606_v39 = vsel %vm1102_vm3, %v1603_v49, %v6587_v45  ;;  %v6594_v51 = vld [vmem:[#allocation77_spill] sm:$0xff]  ;;  %v6595_v53 = vld [vmem:[#allocation108_spill] sm:$0xff]  ;;  %v6596_v49 = vld [vmem:[#allocation110_spill] sm:$0xff] }
 0x3e0   : > { %v2618_v11 = vsel %vm1118_vm7, %v2615_v34, %v2588_v41  ;;  %v2638_v3 = vmul.f32 %v3093_v0, %v2619_v19  ;;  %6573 = vst [vmem:[#allocation18_spill] sm:$0xff] %v5701_v25  ;;  %v1607_v5 = vsel %vm1102_vm3, %v1604_v15, %v6586_v56  ;;  %v1609_v62 = vsel %vm1106_vm4, %v1606_v39, %v6588_v32  ;;  %v6597_v63 = vld [vmem:[#allocation113_spill] sm:$0xff]  ;;  %v6598_v17 = vld [vmem:[#allocation78_spill] sm:$0xff]  ;;  %v6600_v45 = vld [vmem:[#allocation111_spill] sm:$0xff] }
 0x3e1   : > { %v2627_v34 = vmul.f32 %v5719_v6, %v2619_v19  ;;  %v1612_v12 = vsel %vm1110_vm5, %v1609_v62, %v6595_v53  ;;  %v1480_v15 = vsel %vm1102_vm3, %v1477_v14, %v6598_v17  ;;  %v6599_v56 = vld [vmem:[#allocation109_spill] sm:$0xff]  ;;  %v6601_v39 = vld [vmem:[#allocation14_spill] sm:$0xff]  ;;  %v6603_v62 = vld [vmem:[#allocation80_spill] sm:$0xff] }
 0x3e2   : > { %v2597_v58 = vpop.permute.xlu1 %2596  ;;  %v2644_v33 = vrot.slane %v2638_v3, 1  ;;  %v6644_v25 = vld [vmem:[#allocation144_spill] sm:$0xff]  ;;  %v6645_v7 = vld [vmem:[#allocation143_spill] sm:$0xff] }
 0x3e3   : > { %v5696_v46 = vsel %vm1122_vm8, %v2618_v11, %v2597_v58  ;;  %v2595_v24 = vpop.permute.xlu0 %2594  ;;  %v1608_v11 = vsel %vm1102_vm3, %v1605_v38, %v6590_v27  ;;  %v6591_v58 = vld [vmem:[#allocation107_spill] sm:$0xff]  ;;  %v6606_v27 = vld [vmem:[#allocation81_spill] sm:$0xff]  ;;  %v6679_v30 = vld [vmem:[#allocation168_spill] sm:$0xff] }
 0x3e4   : > { %v5704_v50 = vmul.f32 %v3093_v0, %v5696_v46  ;;  %v2620_v16 = vsel %vm1122_vm8, %v2617_v10, %v2595_v24  ;;  %v1611_v23 = vsel %vm1106_vm4, %v1608_v11, %v6592_v31  ;;  %v6653_v26 = vld [vmem:[#allocation147_spill] sm:$0xff] }
 0x3e5   : > { %v2639_v47 = vmul.f32 %v3093_v0, %v2620_v16  ;;  %v6589_v0 = vld [vmem:[#allocation106_spill] sm:$0xff]  ;;  %v2628_v48 = vmul.f32 %v5719_v6, %v2620_v16  ;;  %v1614_v61 = vsel %vm1110_vm5, %v1611_v23, %v6596_v49 }
 0x3e6   : > { %v6277_v54 = vrot.slane %v5704_v50, 1  ;;  %v5731_v13 = vpop.permute.xlu1 %2690  ;;  %v1610_v37 = vsel %vm1106_vm4, %v1607_v5, %v6589_v0  ;;  %v1615_v5 = vsel %vm1114_vm6, %v1612_v12, %v6599_v56  ;;  %v1482_v0 = vsel %vm1102_vm3, %v1479_v55, %v6603_v62  ;;  %v6609_v55 = vld [vmem:[#allocation19_spill] sm:$0xff]  ;;  %v6610_v23 = vld [vmem:[#allocation118_spill] sm:$0xff]  ;;  %v6612_v12 = vld [vmem:[#allocation84_spill] sm:$0xff] }
 0x3e7   : > { %v2645_v43 = vrot.slane %v2639_v47, 1  ;;  %v5737_v41 = vpop.permute.xlu0 %2688  ;;  %v1613_v10 = vsel %vm1110_vm5, %v1610_v37, %v6591_v58  ;;  %v1481_v47 = vsel %vm1102_vm3, %v1478_v57, %v6594_v51  ;;  %v1617_v57 = vsel %vm1114_vm6, %v1614_v61, %v6600_v45  ;;  %v6604_v37 = vld [vmem:[#allocation114_spill] sm:$0xff] }
 0x3e8   : > { %v1616_v19 = vsel %vm1114_vm6, %v1613_v10, %v6593_v35  ;;  %v1485_v11 = vsel %vm1106_vm4, %v1482_v0, %v6606_v27  ;;  %v3077_v58 = vld [vmem:[%s6238_s2 + $0x12] ss:$0 sm:$0xff]  ;;  %v6607_v10 = vld [vmem:[#allocation115_spill] sm:$0xff]  ;;  %v1729_v35 = vsel %vm1098_vm2, %v6610_v23, %v6609_v55 }
 0x3e9   : > { %v2646_v3 = vsel %vm694_vm1, %v2644_v33, %v2645_v43  ;;  %v2648_v24 = vsel %vm694_vm1, %v2645_v43, %v6277_v54  ;;  %v1619_v38 = vsel %vm1118_vm7, %v1616_v19, %v6597_v63  ;;  %v6602_v43 = vld [vmem:[#allocation79_spill] sm:$0xff]  ;;  %v6611_v51 = vld [vmem:[#allocation82_spill] sm:$0xff] }
 0x3ea   : > { %v5757_v20 = vadd.f32 %v2646_v3, %v2627_v34  ;;  %v5759_v16 = vadd.f32 %v2648_v24, %v2628_v48  ;;  %v5761_v59 = vpop.permute.xlu1 %2697  ;;  %v1622_v33 = vsel %vm1122_vm8, %v1619_v38, %v6601_v39  ;;  %v1483_v32 = vsel %vm1106_vm4, %v1480_v15, %v6602_v43  ;;  %v6605_v48 = vld [vmem:[#allocation116_spill] sm:$0xff]  ;;  %v6608_v24 = vld [vmem:[#allocation117_spill] sm:$0xff]  ;;  %v6613_v63 = vld [vmem:[#allocation123_spill] sm:$0xff] }
 0x3eb   : > { %v5771_v28 = vpop.permute.xlu0 %2692  ;;  %v1618_v34 = vsel %vm1118_vm7, %v1615_v5, %v6604_v37  ;;  %v1620_v14 = vsel %vm1118_vm7, %v1617_v57, %v6605_v48  ;;  %v1484_v53 = vsel %vm1106_vm4, %v1481_v47, %v6611_v51  ;;  %v1486_v49 = vsel %vm1110_vm5, %v1483_v32, %v6612_v12  ;;  %v6614_v15 = vld [vmem:[#allocation83_spill] sm:$0xff]  ;;  %v6615_v5 = vld [vmem:[#allocation85_spill] sm:$0xff]  ;;  %v6617_v39 = vld [vmem:[#allocation20_spill] sm:$0xff] }
 0x3ec   : > { %v1621_v3 = vsel %vm1122_vm8, %v1618_v34, %v6607_v10  ;;  %v1623_v31 = vsel %vm1122_vm8, %v1620_v14, %v6608_v24  ;;  %v1641_v61 = vmul.f32 %v3077_v58, %v1622_v33  ;;  %v1732_v38 = vsel %vm1102_vm3, %v1729_v35, %v6613_v63  ;;  %v6616_v57 = vld [vmem:[#allocation121_spill] sm:$0xff]  ;;  %v6618_v47 = vld [vmem:[#allocation124_spill] sm:$0xff]  ;;  %v6619_v37 = vld [vmem:[#allocation122_spill] sm:$0xff] }
 0x3ed   : > { %v1487_v56 = vsel %vm1110_vm5, %v1484_v53, %v6614_v15  ;;  %v1489_v45 = vsel %vm1114_vm6, %v1486_v49, %v6615_v5  ;;  %v1730_v43 = vsel %vm1098_vm2, %v6617_v39, %v6616_v57  ;;  %v1735_v62 = vsel %vm1106_vm4, %v1732_v38, %v6618_v47  ;;  %v6620_v48 = vld [vmem:[#allocation129_spill] sm:$0xff]  ;;  %v6621_v27 = vld [vmem:[#allocation86_spill] sm:$0xff]  ;;  %v6622_v24 = vld [vmem:[#allocation120_spill] sm:$0xff] }
 0x3ee   : > { %v5801_v19 = vpop.permute.xlu1 %2701  ;;  %v1640_v32 = vmul.f32 %v3077_v58, %v1621_v3  ;;  %v1642_v0 = vmul.f32 %v3077_v58, %v1623_v31  ;;  %v1733_v34 = vsel %vm1102_vm3, %v1730_v43, %v6619_v37  ;;  %v1738_v14 = vsel %vm1110_vm5, %v1735_v62, %v6620_v48  ;;  %v6623_v55 = vld [vmem:[#allocation119_spill] sm:$0xff]  ;;  %v6625_v53 = vld [vmem:[#allocation130_spill] sm:$0xff]  ;;  %v6626_v63 = vld [vmem:[#allocation125_spill] sm:$0xff] }
 0x3ef   : > { %v5809_v17 = vpop.permute.xlu0 %2699  ;;  %v1488_v10 = vsel %vm1110_vm5, %v1485_v11, %v6621_v27  ;;  %v1731_v23 = vsel %vm1098_vm2, %v6623_v55, %v6622_v24  ;;  %v6624_v35 = vld [vmem:[#allocation127_spill] sm:$0xff]  ;;  %v1741_v12 = vsel %vm1114_vm6, %v1738_v14, %v6625_v53  ;;  %v1647_v49 = vrot.slane %v1641_v61, 1  ;;  %v6627_v15 = vld [vmem:[#allocation128_spill] sm:$0xff]  ;;  %v6629_v43 = vld [vmem:[#allocation90_spill] sm:$0xff] }
 0x3f0   : > { %v1736_v51 = vsel %vm1106_vm4, %v1733_v34, %v6624_v35  ;;  %v1734_v38 = vsel %vm1102_vm3, %v1731_v23, %v6626_v63  ;;  %v6628_v11 = vld [vmem:[#allocation135_spill] sm:$0xff]  ;;  %v1492_v47 = vsel %vm1118_vm7, %v1489_v45, %v6629_v43  ;;  %v6630_v62 = vld [vmem:[#allocation126_spill] sm:$0xff]  ;;  %v6631_v34 = vld [vmem:[#allocation133_spill] sm:$0xff]  ;;  %v1646_v55 = vrot.slane %v1640_v32, 1 }
 0x3f1   : > { %v1739_v5 = vsel %vm1110_vm5, %v1736_v51, %v6627_v15  ;;  %v1744_v57 = vsel %vm1118_vm7, %v1741_v12, %v6628_v11  ;;  %v1737_v37 = vsel %vm1106_vm4, %v1734_v38, %v6630_v62  ;;  %v3079_v48 = vld [vmem:[%s6238_s2 + $0x1a] ss:$0 sm:$0xff]  ;;  %v6632_v14 = vld [vmem:[#allocation136_spill] sm:$0xff]  ;;  %v1649_v23 = vrot.slane %v1642_v0, 1  ;;  %v6634_v51 = vld [vmem:[#allocation134_spill] sm:$0xff] }
 0x3f2   : > { %v5833_v58 = vpop.permute.xlu1 %2708  ;;  %v1742_v61 = vsel %vm1114_vm6, %v1739_v5, %v6631_v34  ;;  %v1747_v27 = vsel %vm1122_vm8, %v1744_v57, %v6632_v14  ;;  %v3076_v24 = vld [vmem:[%s6238_s2 + $0x2] ss:$0 sm:$0xff]  ;;  %v6633_v45 = vld [vmem:[#allocation131_spill] sm:$0xff]  ;;  %v5866_v38 = vld [vmem:[%s6238_s2 + $0x9] ss:$0 sm:$0xff] }
 0x3f3   : > { %v5841_v39 = vpop.permute.xlu0 %2706  ;;  %v1740_v35 = vsel %vm1110_vm5, %v1737_v37, %v6633_v45  ;;  %v1745_v53 = vsel %vm1118_vm7, %v1742_v61, %v6634_v51  ;;  %v6635_v12 = vld [vmem:[#allocation88_spill] sm:$0xff]  ;;  %v6636_v15 = vld [vmem:[#allocation91_spill] sm:$0xff]  ;;  %v1631_v62 = vmul.f32 %v3076_v24, %v1623_v31  ;;  %v1648_v37 = vsel %vm694_vm1, %v1646_v55, %v1647_v49  ;;  %v6639_v61 = vld [vmem:[#allocation137_spill] sm:$0xff] }
 0x3f4   : > { %v1490_v63 = vsel %vm1114_vm6, %v1487_v56, %v6635_v12  ;;  %v1495_v5 = vsel %vm1122_vm8, %v1492_v47, %v6636_v15  ;;  %v6637_v11 = vld [vmem:[#allocation132_spill] sm:$0xff]  ;;  %v6638_v0 = vld [vmem:[#allocation139_spill] sm:$0xff]  ;;  %v3078_v56 = vld [vmem:[%s6238_s2 + $0xa] ss:$0 sm:$0xff]  ;;  %v1766_v34 = vmul.f32 %v3079_v48, %v1747_v27  ;;  %v1629_v12 = vmul.f32 %v3076_v24, %v1621_v3 }
 0x3f5   : > { %v1743_v32 = vsel %vm1114_vm6, %v1740_v35, %v6637_v11  ;;  %v1748_v57 = vsel %vm1122_vm8, %v1745_v53, %v6638_v0  ;;  %v6640_v45 = vld [vmem:[#allocation87_spill] sm:$0xff]  ;;  %v6641_v51 = vld [vmem:[#allocation89_spill] sm:$0xff]  ;;  %v6642_v31 = vld [vmem:[#allocation138_spill] sm:$0xff]  ;;  %v5891_v11 = vmul.f32 %v5866_v38, %v1495_v5  ;;  %v1656_v55 = vadd.f32 %v1649_v23, %v1631_v62 }
 0x3f6   : > { %v5874_v43 = vpop.permute.xlu1 %2715  ;;  %v1746_v14 = vsel %vm1118_vm7, %v1743_v32, %v6639_v61  ;;  %v1491_v35 = vsel %vm1114_vm6, %v1488_v10, %v6640_v45  ;;  %v1493_v53 = vsel %vm1118_vm7, %v1490_v63, %v6641_v51  ;;  %v1630_v0 = vmul.f32 %v3076_v24, %v1622_v33  ;;  %v6646_v51 = vld [vmem:[#allocation145_spill] sm:$0xff] }
 0x3f7   : > { %v5882_v47 = vpop.permute.xlu0 %2710  ;;  %v1749_v15 = vsel %vm1122_vm8, %v1746_v14, %v6642_v31  ;;  %6643 = vst [vmem:[#allocation17_spill] sm:$0xff] %v5891_v11  ;;  %v1767_v44 = vmul.f32 %v3079_v48, %v1748_v57  ;;  %v1650_v32 = vsel %vm694_vm1, %v1647_v49, %v1649_v23  ;;  %v1654_v61 = vadd.f32 %v1648_v37, %v1629_v12  ;;  %v6647_v14 = vld [vmem:[#allocation140_spill] sm:$0xff]  ;;  %v6648_v11 = vld [vmem:[#allocation149_spill] sm:$0xff]  ;;  %v6649_v23 = vld [vmem:[#allocation142_spill] sm:$0xff] }
 0x3f8   : > { %v1755_v54 = vmul.f32 %v3078_v56, %v1747_v27  ;;  %v1857_v10 = vsel %vm1098_vm2, %v6645_v7, %v6644_v25  ;;  %v1772_v3 = vrot.slane %v1766_v34, 1  ;;  %v1757_v63 = vmul.f32 %v3078_v56, %v1749_v15  ;;  %v6650_v27 = vld [vmem:[#allocation141_spill] sm:$0xff]  ;;  %v6651_v37 = vld [vmem:[#allocation146_spill] sm:$0xff] }
 0x3f9   : > { %v1856_v31 = vsel %vm1098_vm2, %v6647_v14, %v6646_v51  ;;  %v1860_v33 = vsel %vm1102_vm3, %v1857_v10, %v6648_v11  ;;  %v1768_v49 = vmul.f32 %v3079_v48, %v1749_v15  ;;  %v1855_v62 = vsel %vm1098_vm2, %v6650_v27, %v6649_v23  ;;  %v6652_v25 = vld [vmem:[#allocation150_spill] sm:$0xff]  ;;  %v6654_v14 = vld [vmem:[#allocation151_spill] sm:$0xff]  ;;  %v6657_v27 = vld [vmem:[#allocation152_spill] sm:$0xff] }
 0x3fa   : > { %v5897_v45 = vpop.permute.xlu1 %2719  ;;  %v1859_v7 = vsel %vm1102_vm3, %v1856_v31, %v6651_v37  ;;  %v1863_v34 = vsel %vm1106_vm4, %v1860_v33, %v6652_v25  ;;  %v1773_v12 = vrot.slane %v1767_v44, 1  ;;  %v1858_v51 = vsel %vm1102_vm3, %v1855_v62, %v6653_v26  ;;  %v6655_v10 = vld [vmem:[#allocation155_spill] sm:$0xff]  ;;  %v6658_v37 = vld [vmem:[#allocation156_spill] sm:$0xff]  ;;  %v6661_v25 = vld [vmem:[#allocation161_spill] sm:$0xff] }
 0x3fb   : > { %v5904_v24 = vpop.permute.xlu0 %2717  ;;  %v1862_v11 = vsel %vm1106_vm4, %v1859_v7, %v6654_v14  ;;  %v1866_v48 = vsel %vm1110_vm5, %v1863_v34, %v6655_v10  ;;  %v1756_v15 = vmul.f32 %v3078_v56, %v1748_v57  ;;  %v1861_v23 = vsel %vm1106_vm4, %v1858_v51, %v6656_v60  ;;  %v5930_v26 = vld [vmem:[%s6238_s2 + $0x19] ss:$0 sm:$0xff]  ;;  %v6659_v7 = vld [vmem:[#allocation153_spill] sm:$0xff] }
 0x3fc   : > { %v1865_v31 = vsel %vm1110_vm5, %v1862_v11, %v6657_v27  ;;  %v1869_v33 = vsel %vm1114_vm6, %v1866_v48, %v6658_v37  ;;  %v1760_v62 = vadd.f32 %v1757_v63, %v1656_v55  ;;  %v1864_v57 = vsel %vm1110_vm5, %v1861_v23, %v6659_v7  ;;  %v6660_v56 = vld [vmem:[#allocation157_spill] sm:$0xff]  ;;  %v6662_v11 = vld [vmem:[#allocation154_spill] sm:$0xff]  ;;  %v6665_v23 = vld [vmem:[#allocation159_spill] sm:$0xff] }
 0x3fd   : > { %v1868_v60 = vsel %vm1114_vm6, %v1865_v31, %v6660_v56  ;;  %v1872_v34 = vsel %vm1118_vm7, %v1869_v33, %v6661_v25  ;;  %v1775_v14 = vrot.slane %v1768_v49, 1  ;;  %v1867_v10 = vsel %vm1114_vm6, %v1864_v57, %v6662_v11  ;;  %v6663_v48 = vld [vmem:[#allocation158_spill] sm:$0xff]  ;;  %v6666_v56 = vld [vmem:[#allocation15_spill] sm:$0xff]  ;;  %v6668_v25 = vld [vmem:[#allocation92_spill] sm:$0xff] }
 0x3fe   : > { %v5925_v44 = vpop.permute.xlu1 %2726  ;;  %v1871_v27 = vsel %vm1118_vm7, %v1868_v60, %v6663_v48  ;;  %v6664_v37 = vld [vmem:[#allocation162_spill] sm:$0xff]  ;;  %v1655_v63 = vadd.f32 %v1650_v32, %v1630_v0  ;;  %v1870_v7 = vsel %vm1118_vm7, %v1867_v10, %v6665_v23  ;;  %v1774_v31 = vsel %vm694_vm1, %v1772_v3, %v1773_v12  ;;  %v3080_v60 = vld [vmem:[%s6238_s2 + $0x3] ss:$0 sm:$0xff]  ;;  %v6670_v10 = vld [vmem:[#allocation93_spill] sm:$0xff] }
 0x3ff   : > { %v5938_v51 = vpop.permute.xlu0 %2724  ;;  %v1875_v55 = vsel %vm1122_vm8, %v1872_v34, %v6664_v37  ;;  %v1874_v33 = vsel %vm1122_vm8, %v1871_v27, %v6666_v56  ;;  %v5952_v49 = vmul.f32 %v5930_v26, %v1495_v5  ;;  %v1494_v57 = vsel %vm1118_vm7, %v1491_v35, %v6668_v25  ;;  %v3081_v0 = vld [vmem:[%s6238_s2 + $0x13] ss:$0 sm:$0xff]  ;;  %v6669_v32 = vld [vmem:[#allocation160_spill] sm:$0xff] }
 0x400   : > { %v1758_v11 = vadd.f32 %v1755_v54, %v1654_v61  ;;  %v1873_v3 = vsel %vm1122_vm8, %v1870_v7, %v6669_v32  ;;  %v5966_v5 = vsel %vm1122_vm8, %v1494_v57, %v6670_v10  ;;  %v6671_v48 = vld [vmem:[#allocation94_spill] sm:$0xff]  ;;  %v5972_v54 = vadd.f32 %v1756_v15, %v1655_v63  ;;  %v6674_v63 = vld [vmem:[#allocation163_spill] sm:$0xff] }
 0x401   : > { %6667 = vst [vmem:[#allocation16_spill] sm:$0xff] %v5952_v49  ;;  %v5970_v35 = vsel %vm1122_vm8, %v1493_v53, %v6671_v48  ;;  %v5974_v61 = vmul.f32 %v3081_v0, %v1875_v55  ;;  %v5976_v37 = vadd.f32 %v1775_v14, %v1760_v62  ;;  %v5981_v7 = vsel %vm694_vm1, %v1773_v12, %v1775_v14  ;;  %v6673_v15 = vld [vmem:[#allocation10_spill] sm:$0xff]  ;;  %v6675_v62 = vld [vmem:[#allocation165_spill] sm:$0xff]  ;;  %v6680_v49 = vld [vmem:[#allocation167_spill] sm:$0xff] }
 0x402   : > { %v2734_v34 = vpop.permute.xlu1 %2733  ;;  %6672 = vst [vmem:[#allocation22_spill] sm:$0xff] %v5970_v35  ;;  %v5978_v23 = vadd.f32 %v1774_v31, %v1758_v11  ;;  %v5983_v56 = vmul.f32 %v3081_v0, %v1874_v33  ;;  %v5985_v25 = vmul.f32 %v3080_v60, %v1873_v3  ;;  %v5987_v57 = vmul.f32 %v3081_v0, %v1873_v3  ;;  %v6676_v31 = vld [vmem:[#allocation164_spill] sm:$0xff]  ;;  %v6677_v12 = vld [vmem:[#allocation166_spill] sm:$0xff]  ;;  %v6678_v14 = vld [vmem:[#allocation21_spill] sm:$0xff] }
 0x403   : > { %v2729_v27 = vpop.permute.xlu0 %2728  ;;  %v5989_v53 = vmul.f32 %v3080_v60, %v1875_v55  ;;  %v1981_v32 = vsel %vm1098_vm2, %v6674_v63, %v6673_v15  ;;  %v5994_v10 = vmul.f32 %v3080_v60, %v1874_v33  ;;  %v1983_v11 = vsel %vm1098_vm2, %v6676_v31, %v6675_v62  ;;  %v6681_v15 = vld [vmem:[#allocation169_spill] sm:$0xff]  ;;  %v6682_v60 = vld [vmem:[#allocation170_spill] sm:$0xff] }
 0x404   : > { %v1982_v48 = vsel %vm1098_vm2, %v6678_v14, %v6677_v12  ;;  %v1984_v0 = vsel %vm1102_vm3, %v1981_v32, %v6679_v30  ;;  %v1986_v63 = vsel %vm1102_vm3, %v1983_v11, %v6682_v60  ;;  %v6684_v14 = vld [vmem:[#allocation172_spill] sm:$0xff]  ;;  %v6685_v32 = vld [vmem:[#allocation174_spill] sm:$0xff]  ;;  %v6687_v11 = vld [vmem:[#allocation175_spill] sm:$0xff] }
 0x405   : > { %v1985_v22 = vsel %vm1102_vm3, %v1982_v48, %v6680_v49  ;;  %v1987_v33 = vsel %vm1106_vm4, %v1984_v0, %v6681_v15  ;;  %v1989_v12 = vsel %vm1106_vm4, %v1986_v63, %v6683_v42  ;;  %v3095_v49 = vld [vmem:[%s6238_s2 + $0x1e] ss:$0 sm:$0xff]  ;;  %v6686_v48 = vld [vmem:[#allocation173_spill] sm:$0xff]  ;;  %v2629_v42 = vmul.f32 %v5719_v6, %v5696_v46  ;;  %v6688_v63 = vld [vmem:[#allocation176_spill] sm:$0xff] }
 0x406   : > { %v2738_v3 = vpop.permute.xlu1 %2737  ;;  %v1988_v30 = vsel %vm1106_vm4, %v1985_v22, %v6684_v14  ;;  %v1990_v55 = vsel %vm1110_vm5, %v1987_v33, %v6685_v32  ;;  %v2673_v60 = vmul.f32 %v3095_v49, %v5210_v52  ;;  %v1992_v22 = vsel %vm1110_vm5, %v1989_v12, %v6688_v63  ;;  %v6689_v14 = vld [vmem:[#allocation178_spill] sm:$0xff]  ;;  %v6690_v31 = vld [vmem:[#allocation177_spill] sm:$0xff] }
 0x407   : > { %v2736_v62 = vpop.permute.xlu0 %2735  ;;  %v1991_v0 = vsel %vm1110_vm5, %v1988_v30, %v6686_v48  ;;  %v1993_v15 = vsel %vm1114_vm6, %v1990_v55, %v6687_v11  ;;  %v2672_v32 = vmul.f32 %v3095_v49, %v5213_v1  ;;  %v2760_v30 = vsel %vm1098_vm2, %v5737_v41, %v5761_v59  ;;  %v6691_v11 = vld [vmem:[#allocation179_spill] sm:$0xff]  ;;  %v3094_v46 = vld [vmem:[%s6238_s2 + $0xe] ss:$0 sm:$0xff]  ;;  %v6693_v41 = vld [vmem:[#allocation180_spill] sm:$0xff] }
 0x408   : > { %v1994_v33 = vsel %vm1114_vm6, %v1991_v0, %v6689_v14  ;;  %v1995_v55 = vsel %vm1114_vm6, %v1992_v22, %v6690_v31  ;;  %v6692_v6 = vrot.slane %v5704_v50, 1  ;;  %v2763_v0 = vsel %vm1102_vm3, %v2760_v30, %v5841_v39 }
 0x409   : > { %v6040_v35 = vsel %vm1118_vm7, %v1994_v33, %v6691_v11  ;;  %v1996_v59 = vsel %vm1118_vm7, %v1993_v15, %v6693_v41  ;;  %v2671_v31 = vmul.f32 %v3095_v49, %v5350_v9  ;;  %v2662_v22 = vmul.f32 %v3094_v46, %v5210_v52 }
 0x40a   : > { %v2745_v48 = vpop.permute.xlu1 %2744  ;;  %v2654_v12 = vadd.f32 %v6692_v6, %v2629_v42  ;;  %v2766_v14 = vsel %vm1106_vm4, %v2763_v0, %v5874_v43  ;;  %v2680_v33 = vrot.slane %v2673_v60, 1  ;;  %v2661_v11 = vmul.f32 %v3094_v46, %v5213_v1 }
 0x40b   : > { %v2743_v63 = vpop.permute.xlu0 %2742  ;;  %v2762_v50 = vsel %vm1098_vm2, %v5771_v28, %v5801_v19  ;;  %v2769_v39 = vsel %vm1110_vm5, %v2766_v14, %v5938_v51  ;;  %v2678_v42 = vrot.slane %v2672_v32, 1  ;;  %v2761_v49 = vsel %vm1098_vm2, %v5731_v13, %v5809_v17 }
 0x40c   : > { %v2765_v52 = vsel %vm1102_vm3, %v2762_v50, %v5882_v47  ;;  %v2772_v43 = vsel %vm1114_vm6, %v2769_v39, %v2734_v34  ;;  %v2665_v60 = vadd.f32 %v2662_v22, %v2654_v12  ;;  %v2764_v1 = vsel %vm1102_vm3, %v2761_v49, %v5833_v58  ;;  %v3097_v47 = vld [vmem:[%s6238_s2 + $0x17] ss:$0 sm:$0xff]  ;;  %v6694_v49 = vld [vmem:[#allocation181_spill] sm:$0xff] }
 0x40d   : > { %v2768_v28 = vsel %vm1106_vm4, %v2765_v52, %v5897_v45  ;;  %v2775_v19 = vsel %vm1118_vm7, %v2772_v43, %v2743_v63  ;;  %v2660_v32 = vmul.f32 %v3094_v46, %v5350_v9  ;;  %v2767_v13 = vsel %vm1106_vm4, %v2764_v1, %v5904_v24  ;;  %v3096_v9 = vld [vmem:[%s6238_s2 + $0x7] ss:$0 sm:$0xff]  ;;  %v6695_v1 = vld [vmem:[#allocation182_spill] sm:$0xff] }
 0x40e   : > { %v2752_v15 = vpop.permute.xlu1 %2751  ;;  %v2771_v17 = vsel %vm1110_vm5, %v2768_v28, %v2729_v27  ;;  %v2677_v58 = vrot.slane %v2671_v31, 1  ;;  %v2664_v30 = vadd.f32 %v2661_v11, %v5759_v16  ;;  %v2770_v45 = vsel %vm1110_vm5, %v2767_v13, %v5925_v44  ;;  %v6696_v13 = vld [vmem:[#allocation184_spill] sm:$0xff] }
 0x40f   : > { %v2747_v51 = vpop.permute.xlu0 %2746  ;;  %v2778_v34 = vsel %vm1122_vm8, %v2775_v19, %v2752_v15  ;;  %v2774_v6 = vsel %vm1114_vm6, %v2771_v17, %v2738_v3  ;;  %v2773_v24 = vsel %vm1114_vm6, %v2770_v45, %v2736_v62  ;;  %v2663_v27 = vadd.f32 %v2660_v32, %v5757_v20 }
 0x410   : > { %v2777_v46 = vsel %vm1118_vm7, %v2774_v6, %v2747_v51  ;;  %v2681_v0 = vsel %vm694_vm1, %v2678_v42, %v2680_v33  ;;  %v2776_v16 = vsel %vm1118_vm7, %v2773_v24, %v2745_v48  ;;  %v2797_v63 = vmul.f32 %v3097_v47, %v2778_v34  ;;  %v3098_v48 = vld [vmem:[%s6238_s2 + $0xf] ss:$0 sm:$0xff] }
 0x411   : > { %v2687_v41 = vadd.f32 %v2680_v33, %v2665_v60  ;;  %v2786_v31 = vmul.f32 %v3096_v9, %v2778_v34  ;;  %v2679_v62 = vsel %vm694_vm1, %v2677_v58, %v2678_v42  ;;  %v2686_v20 = vadd.f32 %v2681_v0, %v2664_v30  ;;  %v6697_v58 = vld [vmem:[#allocation183_spill] sm:$0xff] }
 0x412   : > { %v2756_v12 = vpop.permute.xlu1 %2755  ;;  %v1999_v52 = vsel %vm1122_vm8, %v1996_v59, %v6694_v49  ;;  %v2685_v33 = vadd.f32 %v2679_v62, %v2663_v27  ;;  %v1998_v28 = vsel %vm1118_vm7, %v1995_v55, %v6695_v1  ;;  %v2803_v19 = vrot.slane %v2797_v63, 1 }
 0x413   : > { %v2780_v44 = vsel %vm1122_vm8, %v2777_v46, %v2756_v12  ;;  %v2754_v3 = vpop.permute.xlu0 %2753  ;;  %v2000_v17 = vsel %vm1122_vm8, %v6040_v35, %v6696_v13  ;;  %v2821_v59 = vmul.f32 %v3098_v48, %v5418_v18  ;;  %v2001_v30 = vsel %vm1122_vm8, %v1998_v28, %v6697_v58 }
 0x414   : > { %v2788_v22 = vmul.f32 %v3096_v9, %v2780_v44  ;;  %v2799_v14 = vmul.f32 %v3097_v47, %v2780_v44  ;;  %v2779_v11 = vsel %vm1122_vm8, %v2776_v16, %v2754_v3  ;;  %v2819_v45 = vmul.f32 %v3098_v48, %v5404_v36 }
 0x415   : > { %v2787_v50 = vmul.f32 %v3096_v9, %v2779_v11  ;;  %v2798_v39 = vmul.f32 %v3097_v47, %v2779_v11  ;;  %v2789_v47 = vadd.f32 %v2786_v31, %v2685_v33  ;;  %v3083_v9 = vld [vmem:[%s6238_s2 + $0x1b] ss:$0 sm:$0xff]  ;;  %v2820_v24 = vmul.f32 %v3098_v48, %v5425_v29 }
 0x416   : > { %v2791_v43 = vadd.f32 %v2788_v22, %v2687_v41  ;;  %v2806_v15 = vrot.slane %v2799_v14, 1  ;;  %v2453_v60 = vpop.permute.xlu1 %2452  ;;  %v1884_v12 = vadd.f32 %v5985_v25, %v5978_v23  ;;  %v1898_v0 = vrot.slane %v5987_v57, 1  ;;  %v3082_v41 = vld [vmem:[%s6238_s2 + $0xb] ss:$0 sm:$0xff] }
 0x417   : > { %v2790_v51 = vadd.f32 %v2787_v50, %v2686_v20  ;;  %v2804_v42 = vrot.slane %v2798_v39, 1  ;;  %v2448_v32 = vpop.permute.xlu0 %2447  ;;  %v1781_v36 = vadd.f32 %v5981_v7, %v5972_v54  ;;  %v2019_v16 = vmul.f32 %v3083_v9, %v2000_v17 }
 0x418   : > { %v2813_v34 = vadd.f32 %v2806_v15, %v2791_v43  ;;  %v2020_v44 = vmul.f32 %v3083_v9, %v2001_v30  ;;  %v6698_v29 = vrot.slane %v5422_v2, 1  ;;  %v1886_v23 = vadd.f32 %v5989_v53, %v5976_v37 }
 0x419   : > { %v2805_v6 = vsel %vm694_vm1, %v2803_v19, %v2804_v42  ;;  %v2807_v55 = vsel %vm694_vm1, %v2804_v42, %v2806_v15  ;;  %v1885_v25 = vadd.f32 %v5994_v10, %v1781_v36  ;;  %v6699_v57 = vrot.slane %v5983_v56, 1 }
 0x41a   : > { %v2824_v35 = vadd.f32 %v2821_v59, %v2813_v34  ;;  %v2811_v27 = vadd.f32 %v2805_v6, %v2789_v47  ;;  %v2812_v18 = vadd.f32 %v2807_v55, %v2790_v51  ;;  %v2457_v46 = vpop.permute.xlu1 %2456  ;;  %v2018_v7 = vmul.f32 %v3083_v9, %v1999_v52 }
 0x41b   : > { %v2455_v63 = vpop.permute.xlu0 %2454  ;;  %v1900_v54 = vsel %vm694_vm1, %v1898_v0, %v6699_v57  ;;  %v6700_v14 = vrot.slane %v5974_v61, 1  ;;  %v6701_v11 = vmov %v6699_v57  ;;  %v2007_v37 = vmul.f32 %v3082_v41, %v1999_v52  ;;  %v3091_v61 = vld [vmem:[%s6238_s2 + $0x1d] ss:$0 sm:$0xff] }
 0x41c   : > { %v2846_v3 = vadd.f32 %v6698_v29, %v2824_v35  ;;  %v2822_v31 = vadd.f32 %v2819_v45, %v2811_v27  ;;  %v2823_v22 = vadd.f32 %v2820_v24, %v2812_v18  ;;  %v2008_v53 = vmul.f32 %v3082_v41, %v2000_v17  ;;  %v6703_v24 = vld [vmem:[#allocation22_spill] sm:$0xff] }
 0x41d   : > { %v1902_v62 = vsel %vm694_vm1, %v6701_v11, %v6700_v14  ;;  %v2025_v10 = vrot.slane %v2019_v16, 1  ;;  %v2009_v48 = vmul.f32 %v3082_v41, %v2001_v30  ;;  %v2027_v33 = vrot.slane %v2020_v44, 1 }
 0x41e   : > { %v2868_v2 = vrot.slane %v2846_v3, 3  ;;  %v2844_v20 = vadd.f32 %v5439_v40, %v2822_v31  ;;  %v2845_v50 = vadd.f32 %v5444_v4, %v2823_v22  ;;  %v2464_v39 = vpop.permute.xlu1 %2463  ;;  %v1906_v1 = vadd.f32 %v1900_v54, %v1884_v12  ;;  %v3090_v40 = vld [vmem:[%s6238_s2 + $0xd] ss:$0 sm:$0xff]  ;;  %v6704_v12 = vld [vmem:[#allocation187_spill] sm:$0xff]  ;;  %v6706_v31 = vld [vmem:[#allocation16_spill] sm:$0xff] }
 0x41f   : > { %v2462_v49 = vpop.permute.xlu0 %2461  ;;  %v2024_v28 = vrot.slane %v2018_v7, 1  ;;  %v1907_v56 = vadd.f32 %v1902_v62, %v1885_v25  ;;  %v2491_v19 = vsel %vm1114_vm6, %v5489_v8, %v2453_v60  ;;  %v6702_v4 = vmov %v6700_v14  ;;  %v6707_v7 = vld [vmem:[#allocation13_spill] sm:$0xff] }
 0x420   : > { %v2865_v43 = vrot.slane %v2844_v20, 3  ;;  %v2866_v15 = vrot.slane %v2845_v50, 3  ;;  %v1908_v52 = vadd.f32 %v6702_v4, %v1886_v23  ;;  %v2494_v51 = vsel %vm1118_vm7, %v2491_v19, %v2462_v49  ;;  %v6710_v49 = vld [vmem:[#allocation9_spill] sm:$0xff] }
 0x421   : > { %v2010_v59 = vadd.f32 %v2007_v37, %v1906_v1  ;;  %v2011_v47 = vadd.f32 %v2008_v53, %v1907_v56  ;;  %v2026_v34 = vsel %vm694_vm1, %v2024_v28, %v2025_v10  ;;  %v2028_v60 = vsel %vm694_vm1, %v2025_v10, %v2027_v33  ;;  %v6709_v10 = vld [vmem:[#allocation24_spill] sm:$0xff]  ;;  %v6712_v56 = vld [vmem:[#allocation17_spill] sm:$0xff] }
 0x422   : > { %v2471_v42 = vpop.permute.xlu1 %2470  ;;  %v2867_v13 = vsel %vm2864_vm9, %v2865_v43, %v2866_v15  ;;  %v2869_v17 = vsel %vm2864_vm9, %v2866_v15, %v2868_v2  ;;  %v2012_v8 = vadd.f32 %v2009_v48, %v1908_v52  ;;  %v2490_v45 = vsel %vm1110_vm5, %v5478_v21, %v2448_v32  ;;  %v6705_v32 = vld [vmem:[#allocation185_spill] sm:$0xff]  ;;  %v6711_v43 = vld [vmem:[#allocation18_spill] sm:$0xff] }
 0x423   : > { %v2497_v58 = vsel %vm1122_vm8, %v2494_v51, %v2471_v42  ;;  %v2466_v30 = vpop.permute.xlu0 %2465  ;;  %v1505_v55 = vmul.f32 %v5866_v38, %v5966_v5  ;;  %v1516_v9 = vmul.f32 %v5930_v26, %v5966_v5  ;;  %v1515_v35 = vmul.f32 %v5930_v26, %v6703_v24 }
 0x424   : > { %v2505_v6 = vmul.f32 %v3090_v40, %v2497_v58  ;;  %v2493_v27 = vsel %vm1114_vm6, %v2490_v45, %v2457_v46  ;;  %v2032_v18 = vadd.f32 %v2026_v34, %v2010_v59  ;;  %v2492_v21 = vsel %vm1114_vm6, %v6704_v12, %v2455_v63 }
 0x425   : > { %v2496_v36 = vsel %vm1118_vm7, %v2493_v27, %v2466_v30  ;;  %v2033_v41 = vadd.f32 %v2028_v60, %v2011_v47  ;;  %v2495_v44 = vsel %vm1118_vm7, %v2492_v21, %v2464_v39  ;;  %v2514_v29 = vmul.f32 %v3091_v61, %v2497_v58  ;;  %v6708_v39 = vld [vmem:[#allocation186_spill] sm:$0xff] }
 0x426   : > { %v2507_v0 = vadd.f32 %v2505_v6, %v6705_v32  ;;  %v2475_v16 = vpop.permute.xlu1 %2474  ;;  %v1520_v26 = vrot.slane %v6706_v31, 1  ;;  %v2034_v22 = vadd.f32 %v2027_v33, %v2012_v8  ;;  %v1504_v63 = vmul.f32 %v5866_v38, %v6703_v24 }
 0x427   : > { %v2499_v5 = vsel %vm1122_vm8, %v2496_v36, %v2475_v16  ;;  %v2473_v3 = vpop.permute.xlu0 %2472  ;;  %v1521_v25 = vrot.slane %v1515_v35, 1  ;;  %v1508_v14 = vadd.f32 %v1505_v55, %v6707_v7  ;;  %v1523_v11 = vrot.slane %v1516_v9, 1  ;;  %v3100_v55 = vld [vmem:[%s6238_s2 + $0x20] ss:$0 sm:$0xff] }
 0x428   : > { %v2516_v46 = vmul.f32 %v3091_v61, %v2499_v5  ;;  %v2498_v23 = vsel %vm1122_vm8, %v2495_v44, %v2473_v3  ;;  %v2850_v62 = vrot.slane %v2032_v18, 1  ;;  %v2851_v20 = vrot.slane %v2033_v41, 1 }
 0x429   : > { %v2506_v57 = vmul.f32 %v3090_v40, %v2498_v23  ;;  %v2515_v54 = vmul.f32 %v3091_v61, %v2498_v23  ;;  %v2520_v50 = vrot.slane %v2514_v29, 1  ;;  %v1402_v48 = vadd.f32 %v6710_v49, %v6709_v10 }
 0x42a   : > { %v2523_v2 = vrot.slane %v2516_v46, 1  ;;  %v2853_v33 = vrot.slane %v2034_v22, 1  ;;  %v1507_v15 = vadd.f32 %v1504_v63, %v6711_v43  ;;  %v1522_v38 = vsel %vm694_vm1, %v1520_v26, %v1521_v25 }
 0x42b   : > { %v2508_v37 = vadd.f32 %v2506_v57, %v6708_v39  ;;  %v2521_v53 = vrot.slane %v2515_v54, 1  ;;  %v1506_v19 = vadd.f32 %v6712_v56, %v1402_v48  ;;  %v1524_v40 = vsel %vm694_vm1, %v1521_v25, %v1523_v11 }
 0x42c   : > { %v1530_v51 = vadd.f32 %v1523_v11, %v1508_v14  ;;  %v2852_v42 = vsel %vm694_vm1, %v2850_v62, %v2851_v20  ;;  %v2854_v47 = vsel %vm694_vm1, %v2851_v20, %v2853_v33  ;;  %v1529_v30 = vadd.f32 %v1524_v40, %v1507_v15 }
 0x42d   : > { %v2522_v1 = vsel %vm694_vm1, %v2520_v50, %v2521_v53  ;;  %v2524_v28 = vsel %vm694_vm1, %v2521_v53, %v2523_v2  ;;  %v1528_v59 = vadd.f32 %v1522_v38, %v1506_v19 }
 0x42e   : > { %v2527_v4 = vadd.f32 %v2522_v1, %v2507_v0  ;;  %v2528_v52 = vadd.f32 %v2524_v28, %v2508_v37  ;;  %v2860_v8 = vadd.f32 %v2853_v33, %v1530_v51  ;;  %v2859_v6 = vadd.f32 %v2854_v47, %v1529_v30 }
 0x42f   : > { %v2858_v60 = vadd.f32 %v2852_v42, %v1528_v59 }
 0x430   : > { %v2872_v34 = vadd.f32 %v2867_v13, %v2527_v4  ;;  %v2873_v58 = vadd.f32 %v2869_v17, %v2528_v52 }
 0x432   : > { %v2877_v45 = vrot.slane %v2872_v34, 6  ;;  %v2878_v61 = vrot.slane %v2873_v58, 6 }
 0x434   : > { %v2879_v9 = vsel %vm2876_vm10, %v2877_v45, %v2878_v61  ;;  %v2883_v24 = vadd.f32 %v2877_v45, %v2858_v60  ;;  %v2885_v35 = vadd.f32 %v2878_v61, %v2860_v8 }
 0x435   : > { %v2884_v27 = vadd.f32 %v2879_v9, %v2859_v6 }
 0x436   : > { %v2891_v18 = vadd.f32 %v3100_v55, %v2883_v24  ;;  %v2893_v12 = vadd.f32 %v3100_v55, %v2885_v35 }
 0x437   : > { %v2892_v13 = vadd.f32 %v3100_v55, %v2884_v27 }
 0x438   : > { %v2894_v17 = vmul.f32 0.5, %v2891_v18  ;;  %v2896_v21 = vmul.f32 0.5, %v2893_v12 }
 0x439   : > { %v2895_v32 = vmul.f32 0.5, %v2892_v13 }
 0x43a   : > { %3223 = vtanh.f32 %v2894_v17 }
 0x43b   : > { %3225 = vtanh.f32 %v2895_v32 }
 0x43c   : > { %3227 = vtanh.f32 %v2896_v21 }
 0x444   : > { %v3224_v0 = vpop.eup %3223 }
 0x445   : > { %v3226_v36 = vpop.eup %3225  ;;  %v2900_v16 = vmul.f32 0.5, %v3224_v0 }
 0x446   : > { %v3228_v41 = vpop.eup %3227  ;;  %v2901_v44 = vmul.f32 0.5, %v3226_v36 }
 0x447   : > { %v2902_v29 = vmul.f32 0.5, %v3228_v41  ;;  %v2903_v5 = vadd.f32 0.5, %v2900_v16 }
 0x448   : > { %v2904_v3 = vadd.f32 0.5, %v2901_v44 }
 0x449   : > { %v2905_v31 = vadd.f32 0.5, %v2902_v29  ;;  %v2906_v26 = vmul.f32 %v2903_v5, %v2891_v18 }
 0x44a   : > { %v2907_v22 = vmul.f32 %v2904_v3, %v2892_v13 }
 0x44b   : > { %v2908_v46 = vmul.f32 %v2905_v31, %v2893_v12  ;;  %2909 = vst [vmem:[%s177_s4 - $0x2] sm:$0xfc] %v2906_v26 }
 0x44c   : > { %2910 = vst [vmem:[%s177_s4 + $0x6] sm:$0xff] %v2907_v22 }
 0x44d   : > { %2911 = vst [vmem:[%s177_s4 + $0xe] sm:$0x3] %v2908_v46 }
 0x44e   : > { %3259 = shalt.err (!%p3256_p2)
}
 0x44f   : > { %s3260_s17 = scalar_lea.hbm %s6191_s24, 256  ;;  %s3264_s27 = scalar_lea.hbm %s6239_s3, 512 }
 0x450   : > { %p3261_p3 = scmp.ne.s32.totalorder %s6191_s24, %s3260_s17  ;;  %p3265_p8 = scmp.lt.u32.totalorder %s6191_s24, %s6239_s3 }
 0x451   : > { %p3266_p11 = scmp.lt.u32.totalorder %s3264_s27, %s3260_s17  ;;  %p3268_p10 = scmp.lt.u32.totalorder %s3260_s17, %s6191_s24 }
 0x452   : > { %p3262_p4 = pnand %p3261_p3, %p3415_p5 }
 0x453   : > { %p3267_p9 = por %p3266_p11, %p3265_p8 }
 0x454   : > { %p3263_p7 = pneg %p3262_p4 }
 0x455   : > { %p3269_p12 = por %p3268_p10, %p3267_p9 }
 0x457   : > { %p3270_p13 = pnand %p3269_p12, %p3263_p7 }
 0x459   : > { %3273 = shalt.err (!%p3270_p13)
}
 0x45a   : > { %s3355_s25 = smov 128   ;;  %s3356_s20 = smov 8  }
 0x45b   : > { %3112 = dma.vmem_to_hbm [thread:$0]  (%p3415_p5), %s6193_s5, 256, %s6191_s24, %s6195_s16, %s3355_s25, %s3355_s25, %s3356_s20  }
 0x45c PF: > { %p3124_p0 = scmp.ge.s32.totalorder %s3312_s15, 2  ;;  %s2941_s30 = sand.u32 1, %s3300_s12  }
 0x45d   : > { %s2942_s4 = scalar_lea.sflag [#allocation3], %s2941_s30 }
 0x45e   : > { %p3119_p1 = pnand %p3124_p0, %p3419_p6 }
 0x460   : > { %3295 = dma.done.wait (!%p3119_p1), %s2942_s4, 256  }
 0x461   : > { %3297 = vsyncadd (!%p3119_p1), %s2942_s4, 4294967040  ;;  %p14_p2 = scmp.ge.s32.totalorder %s3402_s18, 4   ;;  %s6713_s12 = smov %s3304_s13 }
 0x462   : > { %s6714_s13 = smov %s3308_s14  ;;  %s6715_s14 = smov %s3413_s21 }
 0x463   : > { %s6716_s15 = smov %s3402_s18  ;;  %16 = sbr.rel (!%p14_p2) target bundleno = 4 (0x4), region = 75 }
 0x46a   :  { %2947 = vsyncpa [#allocation3], 1 }
 0x46b   :  { %2949 = vsyncpa [#allocation3 + $0x1], 1 }
 0x46c   :  { %2950 = vsyncpa [#allocation4], 1 }
 0x46d   :  { %2952 = vsyncpa [#allocation4 + $0x1], 1 }

</bundles_post_ra>
